<compile_context>
chip_gen: v6e
topology: v6e:2x2x1
jax: 0.10.0
libtpu: 0.0.40
codegen_flags: <defaults>
</compile_context>

<pallas_src>
import functools
import math

import jax
import jax.numpy as jnp
from jax import lax
from jax.experimental import pallas as pl
from jax.experimental.pallas import tpu as pltpu

LANE = 128  # TPU lane width; feature dims are zero-padded to a multiple of this


def _round_up(n, m=LANE):
    return ((n + m - 1) // m) * m


def _pad_axis(x, axis, target):
    if x.shape[axis] == target:
        return x
    widths = [(0, 0)] * x.ndim
    widths[axis] = (0, target - x.shape[axis])
    return jnp.pad(x, widths)


# ----------------------------------------------------------------------------
# math helpers
# ----------------------------------------------------------------------------
def _layer_norm(x, w, b, eps=1e-5):
    mu = jnp.mean(x, axis=-1, keepdims=True)
    d = x - mu
    var = jnp.mean(d * d, axis=-1, keepdims=True)
    return d * jax.lax.rsqrt(var + eps) * w + b


def _gelu_erf(x):
    # reference GELU: erf via Abramowitz-Stegun 7.1.26 (abs err < 1.5e-7),
    # matching PyTorch nn.GELU() to well below the test tolerance.
    z = x * 0.7071067811865476
    s = jnp.where(z >= 0.0, 1.0, -1.0)
    a = jnp.abs(z)
    t = 1.0 / (1.0 + 0.3275911 * a)
    poly = t * (0.254829592 + t * (-0.284496736 + t * (1.421413741
                + t * (-1.453152027 + t * 1.061405429))))
    erf = s * (1.0 - poly * jnp.exp(-a * a))
    return 0.5 * x * (1.0 + erf)


def _gelu_tanh(x):
    # in-kernel GELU: tanh form lowers to the EUP slot (frees VALU bundles);
    # max abs diff vs exact erf GELU ~1e-3, inside the bf16-aware tolerance.
    return 0.5 * x * (1.0 + jnp.tanh(
        0.7978845608028654 * (x + 0.044715 * x * x * x)))


def extract_patches(x, patch=4):
    # NCHW -> (B, Hp*Wp, C*patch*patch); feature order (c, dh, dw) matches
    # Conv2d weight.reshape(E, C*4*4); token order matches flatten(2).T.
    B, C, H, W = x.shape
    Hp, Wp = H // patch, W // patch
    x = x.reshape(B, C, Hp, patch, Wp, patch)
    x = jnp.transpose(x, (0, 2, 4, 1, 3, 5))
    return x.reshape(B, Hp * Wp, C * patch * patch)


# ----------------------------------------------------------------------------
# The fused kernel: patch embed (step 0) -> HVT block per grid step ->
#                   mean-pool + projection head (last step)
# ----------------------------------------------------------------------------
def hvt_fused_kernel(
    # step-0-only patch-embed operands (stay in HBM; DMA'd once)
    rgbp_hbm, rgbw_hbm, rgbpb_hbm, specp_hbm, specw_hbm, specpb_hbm,
    # block-diagonal head-broadcast matrix (resident; used every step)
    bd_ref,
    # per-transformer-block weights (pipelined along the grid axis)
    wqkv_ref, bqkv_ref, wo_ref, bo_ref, n1w_ref, n1b_ref,
    w1_ref, b1_ref, w2_ref, b2_ref, n2w_ref, n2b_ref,
    # last-step-only projection head (stay in HBM; DMA'd once)
    phw1_hbm, phb1_hbm, phw2_hbm, phb2_hbm,
    # output
    out_ref,
    # scratch: token carry + K/V stash, all persist across grid steps in VMEM
    carry_ref, k_scr, v_scr,
    *, L, P, E, H):
    N = 2 * P                       # tokens per batch element (rgb + spectral)
    LN = L * N                      # all rows, (l, n) l-major
    Ep = carry_ref.shape[-1]        # lane-padded embedding dim
    blk = pl.program_id(0)
    nb = pl.num_programs(0)
    hd = E // H
    scale = 1.0 / math.sqrt(float(hd))
    inv_e = 1.0 / float(E)
    bf16 = jnp.bfloat16

    # lane-validity mask for the zero-padded embedding dim (lanes E..Ep are 0)
    lane = jax.lax.broadcasted_iota(jnp.int32, (1, Ep), 1)
    lane_mask = (lane < E).astype(jnp.float32)

    def masked_layer_norm(x, w, b, eps=1e-5):
        # padded lanes of x are exactly 0, so sums over Ep lanes == sums over E
        mu = jnp.sum(x, axis=-1, keepdims=True) * inv_e
        d = (x - mu) * lane_mask
        var = jnp.sum(d * d, axis=-1, keepdims=True) * inv_e
        return d * jax.lax.rsqrt(var + eps) * w + b

    # ---- grid step 0: patch embedding seeds the (L, N, Ep) carry -----------
    @pl.when(blk == 0)
    def _():
        def seed(rp, rw, rb, sp, sw, sb):
            # one-shot blocking copies; negligible (runs exactly once)
            pltpu.sync_copy(rgbp_hbm, rp)
            pltpu.sync_copy(rgbw_hbm, rw)
            pltpu.sync_copy(rgbpb_hbm, rb)
            pltpu.sync_copy(specp_hbm, sp)
            pltpu.sync_copy(specw_hbm, sw)
            pltpu.sync_copy(specpb_hbm, sb)
            rgb_tok = jnp.dot(rp[...], rw[...],
                              preferred_element_type=jnp.float32)
            spec_tok = jnp.dot(sp[...], sw[...],
                               preferred_element_type=jnp.float32)
            # two contiguous slab stores (rgb tokens 0..P-1, spectral P..N-1)
            carry_ref[:, 0:P, :] = rgb_tok.reshape(L, P, Ep) + rb[...][None]
            carry_ref[:, P:N, :] = spec_tok.reshape(L, P, Ep) + sb[...][None]

        pl.run_scoped(
            seed,
            pltpu.VMEM(rgbp_hbm.shape, rgbp_hbm.dtype),
            pltpu.VMEM(rgbw_hbm.shape, rgbw_hbm.dtype),
            pltpu.VMEM(rgbpb_hbm.shape, rgbpb_hbm.dtype),
            pltpu.VMEM(specp_hbm.shape, specp_hbm.dtype),
            pltpu.VMEM(specw_hbm.shape, specw_hbm.dtype),
            pltpu.VMEM(specpb_hbm.shape, specpb_hbm.dtype),
        )

    # ---- transformer block `blk` --------------------------------------------
    x3 = carry_ref[...]                                  # (L, N, Ep) f32
    x2 = x3.reshape(LN, Ep)

    # fused QKV projection: ONE (LN, Ep) x (Ep, 3Ep) bf16 MXU call
    qkv = (jnp.dot(x2.astype(bf16), wqkv_ref[0],
                   preferred_element_type=jnp.float32) + bqkv_ref[0])
    q3 = qkv[:, 0:Ep].reshape(L, N, Ep)
    k_scr[...] = qkv[:, Ep:2 * Ep].reshape(L, N, Ep)
    v_scr[...] = qkv[:, 2 * Ep:3 * Ep].reshape(L, N, Ep)

    bd_mat = bd_ref[...]

    # Attention mixes over the L (= batch) axis; tokens are the MHA batch
    # (nn.MultiheadAttention called with default batch_first=False on a
    # (B, tokens, E) tensor).  Online softmax over the key axis m keeps
    # temporaries at O(L*N*Ep).
    #
    # Padded-lane invariant (do not break): q/k/v/bd/wo and all biases are
    # EXACTLY zero on lanes >= E, so scores there are 0 for every m, den == L
    # and ctx == 0, and the masked LayerNorm keeps the carry zero there.
    def attn_step(m, state):
        smax, den, ctx = state
        k_m = k_scr[m]                                   # (N, Ep)
        v_m = v_scr[m]
        qk = (q3 * k_m[None, :, :]).reshape(LN, Ep)
        # per-head score, broadcast to every lane of its head via the block-
        # diagonal bd matrix in a single MXU call
        s = (jnp.dot(qk.astype(bf16), bd_mat,
                     preferred_element_type=jnp.float32) * scale
             ).reshape(L, N, Ep)
        m_new = jnp.maximum(smax, s)
        a = jnp.exp(smax - m_new)
        p = jnp.exp(s - m_new)
        den = den * a + p
        ctx = ctx * a + p * v_m[None, :, :]
        return m_new, den, ctx

    init = (jnp.full((L, N, Ep), -1e30, jnp.float32),
            jnp.zeros((L, N, Ep), jnp.float32),
            jnp.zeros((L, N, Ep), jnp.float32))
    _, den, ctx = lax.fori_loop(0, L, attn_step, init, unroll=True)

    ctx = (ctx * pl.reciprocal(den, approx=True)).reshape(LN, Ep)
    attn = (jnp.dot(ctx.astype(bf16), wo_ref[0],
                    preferred_element_type=jnp.float32) + bo_ref[0])

    h = masked_layer_norm(x2 + attn, n1w_ref[0], n1b_ref[0])

    # MLP batched over all L*N tokens: two bf16 MXU calls per block
    h1 = _gelu_tanh(jnp.dot(h.astype(bf16), w1_ref[0],
                            preferred_element_type=jnp.float32) + b1_ref[0])
    mlp = (jnp.dot(h1.astype(bf16), w2_ref[0],
                   preferred_element_type=jnp.float32) + b2_ref[0])
    y2 = masked_layer_norm(h + mlp, n2w_ref[0], n2b_ref[0])
    y3 = y2.reshape(L, N, Ep)
    carry_ref[...] = y3

    # ---- last grid step: token mean-pool + projection head ------------------
    @pl.when(blk == nb - 1)
    def _():
        def head(w1v, b1v, w2v, b2v):
            pltpu.sync_copy(phw1_hbm, w1v)
            pltpu.sync_copy(phb1_hbm, b1v)
            pltpu.sync_copy(phw2_hbm, w2v)
            pltpu.sync_copy(phb2_hbm, b2v)
            pooled = jnp.sum(y3, axis=1) * (1.0 / N)      # (L, Ep) XLU reduce
            hh = jnp.maximum(
                jnp.dot(pooled.astype(bf16), w1v[...],
                        preferred_element_type=jnp.float32) + b1v[...], 0.0)
            out_ref[...] = (jnp.dot(hh.astype(bf16), w2v[...],
                                    preferred_element_type=jnp.float32)
                            + b2v[...])

        pl.run_scoped(
            head,
            pltpu.VMEM(phw1_hbm.shape, phw1_hbm.dtype),
            pltpu.VMEM(phb1_hbm.shape, phb1_hbm.dtype),
            pltpu.VMEM(phw2_hbm.shape, phw2_hbm.dtype),
            pltpu.VMEM(phb2_hbm.shape, phb2_hbm.dtype),
        )


# ----------------------------------------------------------------------------
# Parameter packing: lane-pad, fuse QKV, bf16 weights, build bd matrix
# ----------------------------------------------------------------------------
def pack_operands(p, E, H):
    Ep = _round_up(E)            # padded embedding dim
    Mp = _round_up(4 * E)        # padded MLP hidden dim
    Pp = _round_up(2 * E)        # padded projection-head hidden dim
    hd = E // H
    bf16 = jnp.bfloat16

    def pad2(x, r, c):           # zero-pad the last two dims
        return _pad_axis(_pad_axis(x, -1, c), -2, r)

    ops = {}
    ops["rgb_w"] = _pad_axis(p["rgb_w"], -1, Ep).astype(bf16)
    ops["spec_w"] = _pad_axis(p["spec_w"], -1, Ep).astype(bf16)
    # conv bias + positional embedding, per patch row (broadcast over batch
    # in-kernel instead of pre-tiling to all B*P rows)
    ops["rgb_posb"] = _pad_axis(p["rgb_pos"][0] + p["rgb_b"], -1, Ep)
    ops["spec_posb"] = _pad_axis(p["spec_pos"][0] + p["spec_b"], -1, Ep)

    # block-diagonal 0/1 matrix: bd[e, f] = 1 iff lanes e, f belong to the
    # same head (and both are real, un-padded lanes)
    idx = jnp.arange(Ep)
    valid = idx < E
    bd = ((idx[:, None] // hd) == (idx[None, :] // hd)) \
        & valid[:, None] & valid[None, :]
    ops["bd"] = bd.astype(bf16)

    ops["wqkv"] = jnp.concatenate(
        [pad2(p["wq"], Ep, Ep), pad2(p["wk"], Ep, Ep), pad2(p["wv"], Ep, Ep)],
        axis=-1).astype(bf16)
    ops["bqkv"] = jnp.concatenate(
        [_pad_axis(p["bq"], -1, Ep), _pad_axis(p["bk"], -1, Ep),
         _pad_axis(p["bv"], -1, Ep)], axis=-1)
    ops["wo"] = pad2(p["wo"], Ep, Ep).astype(bf16)
    ops["bo"] = _pad_axis(p["bo"], -1, Ep)
    ops["n1w"] = _pad_axis(p["n1w"], -1, Ep)
    ops["n1b"] = _pad_axis(p["n1b"], -1, Ep)
    ops["w1"] = pad2(p["w1"], Ep, Mp).astype(bf16)
    ops["b1"] = _pad_axis(p["b1"], -1, Mp)
    ops["w2"] = pad2(p["w2"], Mp, Ep).astype(bf16)
    ops["b2"] = _pad_axis(p["b2"], -1, Ep)
    ops["n2w"] = _pad_axis(p["n2w"], -1, Ep)
    ops["n2b"] = _pad_axis(p["n2b"], -1, Ep)
    ops["ph_w1"] = pad2(p["ph_w1"], Ep, Pp).astype(bf16)
    ops["ph_b1"] = _pad_axis(p["ph_b1"], -1, Pp)
    ops["ph_w2"] = _pad_axis(p["ph_w2"], -2, Pp).astype(bf16)
    ops["ph_b2"] = p["ph_b2"]
    return ops


def _full_spec(a):
    nd = a.ndim
    return pl.BlockSpec(a.shape, lambda i, _nd=nd: (0,) * _nd)


def _per_block_spec(a):
    nd = a.ndim
    return pl.BlockSpec((1,) + a.shape[1:],
                        lambda i, _nd=nd: (i,) + (0,) * (_nd - 1))


# ----------------------------------------------------------------------------
# Full forward: one pallas_call for the whole network
# ----------------------------------------------------------------------------
def hvt_forward(rgb, spectral, params, num_heads):
    B = rgb.shape[0]
    E = params["rgb_w"].shape[1]
    P = params["rgb_pos"].shape[1]
    nb = params["wq"].shape[0]
    N = 2 * P
    Ep = _round_up(E)
    out_dim = params["ph_w2"].shape[1]

    rgb_p = extract_patches(rgb).reshape(B * P, -1).astype(jnp.bfloat16)
    spec_p = extract_patches(spectral).reshape(B * P, -1).astype(jnp.bfloat16)
    ops = pack_operands(params, E, num_heads)

    per_block = [ops["wqkv"], ops["bqkv"], ops["wo"], ops["bo"],
                 ops["n1w"], ops["n1b"], ops["w1"], ops["b1"],
                 ops["w2"], ops["b2"], ops["n2w"], ops["n2b"]]

    args = (rgb_p, ops["rgb_w"], ops["rgb_posb"],
            spec_p, ops["spec_w"], ops["spec_posb"],
            ops["bd"],
            *per_block,
            ops["ph_w1"], ops["ph_b1"], ops["ph_w2"], ops["ph_b2"])

    in_specs = ([pl.BlockSpec(memory_space=pl.ANY) for _ in range(6)]
                + [_full_spec(ops["bd"])]
                + [_per_block_spec(a) for a in per_block]
                + [pl.BlockSpec(memory_space=pl.ANY) for _ in range(4)])

    kern = functools.partial(hvt_fused_kernel, L=B, P=P, E=E, H=num_heads)
    return pl.pallas_call(
        kern,
        out_shape=jax.ShapeDtypeStruct((B, out_dim), jnp.float32),
        grid=(nb,),
        in_specs=in_specs,
        out_specs=pl.BlockSpec((B, out_dim), lambda i: (0, 0)),
        scratch_shapes=[pltpu.VMEM((B, N, Ep), jnp.float32),   # carry
                        pltpu.VMEM((B, N, Ep), jnp.float32),   # K stash
                        pltpu.VMEM((B, N, Ep), jnp.float32)],  # V stash
        compiler_params=pltpu.CompilerParams(
            dimension_semantics=("arbitrary",),
            # <= physical VMEM on v5e/v6e/v7x; at production widths derive
            # this per generation (v7x has 64 MiB physical per TensorCore).
            vmem_limit_bytes=64 * 1024 * 1024),
    )(*args)


# ----------------------------------------------------------------------------
# Deterministic parameter construction (synthetic, not a checkpoint load)
# ----------------------------------------------------------------------------
def init_params(key, embed_dim, num_heads, num_blocks, num_patches):
    E, nb = embed_dim, num_blocks
    ks = jax.random.split(key, 24)

    def nrm(k, shape, s=0.02):
        return jax.random.normal(k, shape, jnp.float32) * s

    p = {}
    p["rgb_w"] = nrm(ks[0], (3 * 16, E))                 # Conv2d(3,E,4,4) as matmul
    p["rgb_b"] = nrm(ks[1], (1, E))
    p["rgb_pos"] = nrm(ks[2], (1, num_patches, E))
    p["spec_w"] = nrm(ks[3], (10 * 16, E))               # Conv2d(10,E,4,4) as matmul
    p["spec_b"] = nrm(ks[4], (1, E))
    p["spec_pos"] = nrm(ks[5], (1, num_patches, E))
    p["wq"] = nrm(ks[6], (nb, E, E)); p["bq"] = nrm(ks[7], (nb, 1, E))
    p["wk"] = nrm(ks[8], (nb, E, E)); p["bk"] = nrm(ks[9], (nb, 1, E))
    p["wv"] = nrm(ks[10], (nb, E, E)); p["bv"] = nrm(ks[11], (nb, 1, E))
    p["wo"] = nrm(ks[12], (nb, E, E)); p["bo"] = nrm(ks[13], (nb, 1, E))
    p["n1w"] = jnp.ones((nb, 1, E), jnp.float32)
    p["n1b"] = jnp.zeros((nb, 1, E), jnp.float32)
    p["w1"] = nrm(ks[14], (nb, E, 4 * E)); p["b1"] = nrm(ks[15], (nb, 1, 4 * E))
    p["w2"] = nrm(ks[16], (nb, 4 * E, E)); p["b2"] = nrm(ks[17], (nb, 1, E))
    p["n2w"] = jnp.ones((nb, 1, E), jnp.float32)
    p["n2b"] = jnp.zeros((nb, 1, E), jnp.float32)
    p["ph_w1"] = nrm(ks[18], (E, 2 * E)); p["ph_b1"] = nrm(ks[19], (1, 2 * E))
    p["ph_w2"] = nrm(ks[20], (2 * E, 256)); p["ph_b2"] = nrm(ks[21], (1, 256))
    return p


# ----------------------------------------------------------------------------
# Pure-jnp f32 reference (same math, un-padded params) for the parity check
# ----------------------------------------------------------------------------
def reference_forward(rgb, spectral, p, num_heads):
    def tok(x, w, b, pos):
        return extract_patches(x) @ w + b + pos

    x = jnp.concatenate([tok(rgb, p["rgb_w"], p["rgb_b"], p["rgb_pos"]),
                         tok(spectral, p["spec_w"], p["spec_b"], p["spec_pos"])],
                        axis=1)
    L, N, E = x.shape
    H = num_heads
    hd = E // H
    for i in range(p["wq"].shape[0]):
        q = (x @ p["wq"][i] + p["bq"][i]).reshape(L, N, H, hd)
        k = (x @ p["wk"][i] + p["bk"][i]).reshape(L, N, H, hd)
        v = (x @ p["wv"][i] + p["bv"][i]).reshape(L, N, H, hd)
        # attention over the batch axis L (batch_first=False quirk)
        s = jnp.einsum("lnhd,mnhd->nhlm", q, k) / jnp.sqrt(jnp.float32(hd))
        a = jnp.einsum("nhlm,mnhd->lnhd",
                       jax.nn.softmax(s, axis=-1), v).reshape(L, N, E)
        a = a @ p["wo"][i] + p["bo"][i]
        x = _layer_norm(x + a, p["n1w"][i], p["n1b"][i])
        m = _gelu_erf(x @ p["w1"][i] + p["b1"][i]) @ p["w2"][i] + p["b2"][i]
        x = _layer_norm(x + m, p["n2w"][i], p["n2b"][i])
    pooled = x.mean(axis=1)
    h = jnp.maximum(pooled @ p["ph_w1"] + p["ph_b1"], 0.0)
    return h @ p["ph_w2"] + p["ph_b2"]


if __name__ == "__main__":
    key = jax.random.PRNGKey(0)
    k_rgb, k_spec, k_par = jax.random.split(key, 3)

    B = 2
    IMG = (16, 16)
    EMBED = 32
    HEADS = 4
    BLOCKS = 2
    P = (IMG[0] // 4) * (IMG[1] // 4)

    rgb = jax.random.normal(k_rgb, (B, 3, IMG[0], IMG[1]), jnp.float32)
    spectral = jax.random.normal(k_spec, (B, 10, IMG[0], IMG[1]), jnp.float32)
    params = init_params(k_par, EMBED, HEADS, BLOCKS, P)

    out = hvt_forward(rgb, spectral, params, num_heads=HEADS)
    out = jax.block_until_ready(out)
    assert out.shape == (B, 256), out.shape

    ref = reference_forward(rgb, spectral, params, HEADS)
    # bf16 MXU operands + tanh GELU + approx reciprocal => bf16-aware tolerance
    if not jnp.allclose(out, ref, atol=3e-2, rtol=3e-2):
        max_err = float(jnp.max(jnp.abs(out - ref)))
        raise AssertionError(
            f"Pallas output does not match jnp reference (max abs err {max_err})")

    print("KERNEL_OK")
</pallas_src>

<mosaic_0001>
module attributes {stable_mosaic.version = 11 : i64} {
  func.func @hvt_fused_kernel(%arg0: i32, %arg1: memref<32x48xbf16, #tpu.memory_space<any>>, %arg2: memref<48x128xbf16, #tpu.memory_space<any>>, %arg3: memref<16x128xf32, #tpu.memory_space<any>>, %arg4: memref<32x160xbf16, #tpu.memory_space<any>>, %arg5: memref<160x128xbf16, #tpu.memory_space<any>>, %arg6: memref<16x128xf32, #tpu.memory_space<any>>, %arg7: memref<128x128xbf16, #tpu.memory_space<vmem>>, %arg8: memref<1x128x384xbf16, #tpu.memory_space<vmem>>, %arg9: memref<1x1x384xf32, #tpu.memory_space<vmem>>, %arg10: memref<1x128x128xbf16, #tpu.memory_space<vmem>>, %arg11: memref<1x1x128xf32, #tpu.memory_space<vmem>>, %arg12: memref<1x1x128xf32, #tpu.memory_space<vmem>>, %arg13: memref<1x1x128xf32, #tpu.memory_space<vmem>>, %arg14: memref<1x128x128xbf16, #tpu.memory_space<vmem>>, %arg15: memref<1x1x128xf32, #tpu.memory_space<vmem>>, %arg16: memref<1x128x128xbf16, #tpu.memory_space<vmem>>, %arg17: memref<1x1x128xf32, #tpu.memory_space<vmem>>, %arg18: memref<1x1x128xf32, #tpu.memory_space<vmem>>, %arg19: memref<1x1x128xf32, #tpu.memory_space<vmem>>, %arg20: memref<128x128xbf16, #tpu.memory_space<any>>, %arg21: memref<1x128xf32, #tpu.memory_space<any>>, %arg22: memref<128x256xbf16, #tpu.memory_space<any>>, %arg23: memref<1x256xf32, #tpu.memory_space<any>>, %arg24: memref<2x256xf32, #tpu.memory_space<vmem>>, %arg25: memref<2x32x128xf32, #tpu.memory_space<vmem>>, %arg26: memref<2x32x128xf32, #tpu.memory_space<vmem>>, %arg27: memref<2x32x128xf32, #tpu.memory_space<vmem>>) attributes {dimension_semantics = [#tpu.dimension_semantics<arbitrary>], iteration_bounds = array<i64: 2>, scalar_prefetch = 0 : i64, scratch_operands = 3 : i64, tpu.core_type = #tpu.core_type<tc>, window_params = [{}, {}, {}, {}, {}, {}, {pipeline_mode = #tpu.pipeline_mode<synchronous>, transform_indices = @transform_6, window_bounds = array<i64: 128, 128>}, {transform_indices = @transform_7, window_bounds = array<i64: 1, 128, 384>}, {transform_indices = @transform_8, window_bounds = array<i64: 1, 1, 384>}, {transform_indices = @transform_9, window_bounds = array<i64: 1, 128, 128>}, {transform_indices = @transform_10, window_bounds = array<i64: 1, 1, 128>}, {transform_indices = @transform_11, window_bounds = array<i64: 1, 1, 128>}, {transform_indices = @transform_12, window_bounds = array<i64: 1, 1, 128>}, {transform_indices = @transform_13, window_bounds = array<i64: 1, 128, 128>}, {transform_indices = @transform_14, window_bounds = array<i64: 1, 1, 128>}, {transform_indices = @transform_15, window_bounds = array<i64: 1, 128, 128>}, {transform_indices = @transform_16, window_bounds = array<i64: 1, 1, 128>}, {transform_indices = @transform_17, window_bounds = array<i64: 1, 1, 128>}, {transform_indices = @transform_18, window_bounds = array<i64: 1, 1, 128>}, {}, {}, {}, {}, {pipeline_mode = #tpu.pipeline_mode<synchronous>, transform_indices = @transform_23, window_bounds = array<i64: 2, 256>}]} {
    %0 = tpu.iota {dimensions = array<i32: 1>} : vector<1x128xi32>
    %c32_i32 = arith.constant 32 : i32
    %1 = vector.broadcast %c32_i32 : i32 to vector<1x128xi32>
    %2 = arith.cmpi slt, %0, %1 : vector<1x128xi32>
    %3 = arith.extui %2 : vector<1x128xi1> to vector<1x128xi32>
    %4 = arith.sitofp %3 : vector<1x128xi32> to vector<1x128xf32>
    %c0_i32 = arith.constant 0 : i32
    %5 = arith.cmpi eq, %arg0, %c0_i32 : i32
    %6 = arith.extui %5 : i1 to i32
    %c0_i32_0 = arith.constant 0 : i32
    %7 = arith.cmpi ne, %6, %c0_i32_0 : i32
    scf.if %7 {
      "tpu.region"() ({
        %alloca = memref.alloca() : memref<32x48xbf16, #tpu.memory_space<vmem>>
        %alloca_85 = memref.alloca() : memref<48x128xbf16, #tpu.memory_space<vmem>>
        %alloca_86 = memref.alloca() : memref<16x128xf32, #tpu.memory_space<vmem>>
        %alloca_87 = memref.alloca() : memref<32x160xbf16, #tpu.memory_space<vmem>>
        %alloca_88 = memref.alloca() : memref<160x128xbf16, #tpu.memory_space<vmem>>
        %alloca_89 = memref.alloca() : memref<16x128xf32, #tpu.memory_space<vmem>>
        "tpu.region"() ({
          %201 = tpu.sem_alloc : memref<!tpu.dma_semaphore, #tpu.memory_space<semaphore_mem>>
          tpu.enqueue_dma source(%arg1 : memref<32x48xbf16, #tpu.memory_space<any>>) target(%alloca : memref<32x48xbf16, #tpu.memory_space<vmem>>) target_semaphore(%201 : memref<!tpu.dma_semaphore, #tpu.memory_space<semaphore_mem>>)
          tpu.wait_dma2 semaphore(%201 : memref<!tpu.dma_semaphore, #tpu.memory_space<semaphore_mem>>) src(%arg1 : memref<32x48xbf16, #tpu.memory_space<any>>) dst(%alloca : memref<32x48xbf16, #tpu.memory_space<vmem>>)
          tpu.yield
        }) : () -> ()
        "tpu.region"() ({
          %201 = tpu.sem_alloc : memref<!tpu.dma_semaphore, #tpu.memory_space<semaphore_mem>>
          tpu.enqueue_dma source(%arg2 : memref<48x128xbf16, #tpu.memory_space<any>>) target(%alloca_85 : memref<48x128xbf16, #tpu.memory_space<vmem>>) target_semaphore(%201 : memref<!tpu.dma_semaphore, #tpu.memory_space<semaphore_mem>>)
          tpu.wait_dma2 semaphore(%201 : memref<!tpu.dma_semaphore, #tpu.memory_space<semaphore_mem>>) src(%arg2 : memref<48x128xbf16, #tpu.memory_space<any>>) dst(%alloca_85 : memref<48x128xbf16, #tpu.memory_space<vmem>>)
          tpu.yield
        }) : () -> ()
        "tpu.region"() ({
          %201 = tpu.sem_alloc : memref<!tpu.dma_semaphore, #tpu.memory_space<semaphore_mem>>
          tpu.enqueue_dma source(%arg3 : memref<16x128xf32, #tpu.memory_space<any>>) target(%alloca_86 : memref<16x128xf32, #tpu.memory_space<vmem>>) target_semaphore(%201 : memref<!tpu.dma_semaphore, #tpu.memory_space<semaphore_mem>>)
          tpu.wait_dma2 semaphore(%201 : memref<!tpu.dma_semaphore, #tpu.memory_space<semaphore_mem>>) src(%arg3 : memref<16x128xf32, #tpu.memory_space<any>>) dst(%alloca_86 : memref<16x128xf32, #tpu.memory_space<vmem>>)
          tpu.yield
        }) : () -> ()
        "tpu.region"() ({
          %201 = tpu.sem_alloc : memref<!tpu.dma_semaphore, #tpu.memory_space<semaphore_mem>>
          tpu.enqueue_dma source(%arg4 : memref<32x160xbf16, #tpu.memory_space<any>>) target(%alloca_87 : memref<32x160xbf16, #tpu.memory_space<vmem>>) target_semaphore(%201 : memref<!tpu.dma_semaphore, #tpu.memory_space<semaphore_mem>>)
          tpu.wait_dma2 semaphore(%201 : memref<!tpu.dma_semaphore, #tpu.memory_space<semaphore_mem>>) src(%arg4 : memref<32x160xbf16, #tpu.memory_space<any>>) dst(%alloca_87 : memref<32x160xbf16, #tpu.memory_space<vmem>>)
          tpu.yield
        }) : () -> ()
        "tpu.region"() ({
          %201 = tpu.sem_alloc : memref<!tpu.dma_semaphore, #tpu.memory_space<semaphore_mem>>
          tpu.enqueue_dma source(%arg5 : memref<160x128xbf16, #tpu.memory_space<any>>) target(%alloca_88 : memref<160x128xbf16, #tpu.memory_space<vmem>>) target_semaphore(%201 : memref<!tpu.dma_semaphore, #tpu.memory_space<semaphore_mem>>)
          tpu.wait_dma2 semaphore(%201 : memref<!tpu.dma_semaphore, #tpu.memory_space<semaphore_mem>>) src(%arg5 : memref<160x128xbf16, #tpu.memory_space<any>>) dst(%alloca_88 : memref<160x128xbf16, #tpu.memory_space<vmem>>)
          tpu.yield
        }) : () -> ()
        "tpu.region"() ({
          %201 = tpu.sem_alloc : memref<!tpu.dma_semaphore, #tpu.memory_space<semaphore_mem>>
          tpu.enqueue_dma source(%arg6 : memref<16x128xf32, #tpu.memory_space<any>>) target(%alloca_89 : memref<16x128xf32, #tpu.memory_space<vmem>>) target_semaphore(%201 : memref<!tpu.dma_semaphore, #tpu.memory_space<semaphore_mem>>)
          tpu.wait_dma2 semaphore(%201 : memref<!tpu.dma_semaphore, #tpu.memory_space<semaphore_mem>>) src(%arg6 : memref<16x128xf32, #tpu.memory_space<any>>) dst(%alloca_89 : memref<16x128xf32, #tpu.memory_space<vmem>>)
          tpu.yield
        }) : () -> ()
        %c0_90 = arith.constant 0 : index
        %c0_91 = arith.constant 0 : index
        %183 = vector.load %alloca[%c0_90, %c0_91] : memref<32x48xbf16, #tpu.memory_space<vmem>>, vector<32x48xbf16>
        %c0_92 = arith.constant 0 : index
        %c0_93 = arith.constant 0 : index
        %184 = vector.load %alloca_85[%c0_92, %c0_93] : memref<48x128xbf16, #tpu.memory_space<vmem>>, vector<48x128xbf16>
        %cst_94 = arith.constant dense<0.000000e+00> : vector<32x128xf32>
        %185 = tpu.matmul %183, %184, %cst_94 {dimension_numbers = #tpu.dot_dimension_numbers<[1], [0], [0], [1], [0, 0, 1, 1], [], []>} : vector<32x48xbf16>, vector<48x128xbf16>, vector<32x128xf32> -> vector<32x128xf32>
        %c0_95 = arith.constant 0 : index
        %c0_96 = arith.constant 0 : index
        %186 = vector.load %alloca_87[%c0_95, %c0_96] : memref<32x160xbf16, #tpu.memory_space<vmem>>, vector<32x160xbf16>
        %c0_97 = arith.constant 0 : index
        %c0_98 = arith.constant 0 : index
        %187 = vector.load %alloca_88[%c0_97, %c0_98] : memref<160x128xbf16, #tpu.memory_space<vmem>>, vector<160x128xbf16>
        %cst_99 = arith.constant dense<0.000000e+00> : vector<32x128xf32>
        %188 = tpu.matmul %186, %187, %cst_99 {dimension_numbers = #tpu.dot_dimension_numbers<[1], [0], [0], [1], [0, 0, 1, 1], [], []>} : vector<32x160xbf16>, vector<160x128xbf16>, vector<32x128xf32> -> vector<32x128xf32>
        %189 = vector.shape_cast %185 : vector<32x128xf32> to vector<2x16x128xf32>
        %c0_100 = arith.constant 0 : index
        %c0_101 = arith.constant 0 : index
        %190 = vector.load %alloca_86[%c0_100, %c0_101] : memref<16x128xf32, #tpu.memory_space<vmem>>, vector<16x128xf32>
        %191 = vector.shape_cast %190 : vector<16x128xf32> to vector<1x16x128xf32>
        %192 = vector.broadcast %191 : vector<1x16x128xf32> to vector<2x16x128xf32>
        %193 = arith.addf %189, %192 : vector<2x16x128xf32>
        %c0_102 = arith.constant 0 : index
        %c0_103 = arith.constant 0 : index
        %c0_104 = arith.constant 0 : index
        %194 = vector.load %arg25[%c0_102, %c0_103, %c0_104] : memref<2x32x128xf32, #tpu.memory_space<vmem>>, vector<2x16x128xf32>
        tpu.vector_store %arg25[%c0_102, %c0_103, %c0_104], %193 {strides = array<i32>} : memref<2x32x128xf32, #tpu.memory_space<vmem>>, vector<2x16x128xf32>,
        %195 = vector.shape_cast %188 : vector<32x128xf32> to vector<2x16x128xf32>
        %c0_105 = arith.constant 0 : index
        %c0_106 = arith.constant 0 : index
        %196 = vector.load %alloca_89[%c0_105, %c0_106] : memref<16x128xf32, #tpu.memory_space<vmem>>, vector<16x128xf32>
        %197 = vector.shape_cast %196 : vector<16x128xf32> to vector<1x16x128xf32>
        %198 = vector.broadcast %197 : vector<1x16x128xf32> to vector<2x16x128xf32>
        %199 = arith.addf %195, %198 : vector<2x16x128xf32>
        %c0_107 = arith.constant 0 : index
        %c16 = arith.constant 16 : index
        %c0_108 = arith.constant 0 : index
        %200 = vector.load %arg25[%c0_107, %c16, %c0_108] : memref<2x32x128xf32, #tpu.memory_space<vmem>>, vector<2x16x128xf32>
        tpu.vector_store %arg25[%c0_107, %c16, %c0_108], %199 {strides = array<i32>} : memref<2x32x128xf32, #tpu.memory_space<vmem>>, vector<2x16x128xf32>,
        tpu.yield
      }) : () -> ()
    } else {
    }
    %c0 = arith.constant 0 : index
    %c0_1 = arith.constant 0 : index
    %c0_2 = arith.constant 0 : index
    %8 = vector.load %arg25[%c0, %c0_1, %c0_2] : memref<2x32x128xf32, #tpu.memory_space<vmem>>, vector<2x32x128xf32>
    %9 = vector.shape_cast %8 : vector<2x32x128xf32> to vector<64x128xf32>
    %10 = arith.truncf %9 : vector<64x128xf32> to vector<64x128xbf16>
    %c0_3 = arith.constant 0 : index
    %c0_4 = arith.constant 0 : index
    %c0_5 = arith.constant 0 : index
    %11 = vector.load %arg8[%c0_3, %c0_4, %c0_5] : memref<1x128x384xbf16, #tpu.memory_space<vmem>>, vector<1x128x384xbf16>
    %12 = vector.shape_cast %11 : vector<1x128x384xbf16> to vector<128x384xbf16>
    %cst = arith.constant dense<0.000000e+00> : vector<64x384xf32>
    %13 = tpu.matmul %10, %12, %cst {dimension_numbers = #tpu.dot_dimension_numbers<[1], [0], [0], [1], [0, 0, 1, 1], [], []>} : vector<64x128xbf16>, vector<128x384xbf16>, vector<64x384xf32> -> vector<64x384xf32>
    %c0_6 = arith.constant 0 : index
    %c0_7 = arith.constant 0 : index
    %c0_8 = arith.constant 0 : index
    %14 = vector.load %arg9[%c0_6, %c0_7, %c0_8] : memref<1x1x384xf32, #tpu.memory_space<vmem>>, vector<1x1x384xf32>
    %15 = vector.shape_cast %14 : vector<1x1x384xf32> to vector<1x384xf32>
    %16 = vector.broadcast %15 : vector<1x384xf32> to vector<64x384xf32>
    %17 = arith.addf %13, %16 : vector<64x384xf32>
    %18 = vector.extract_strided_slice %17 {offsets = [0, 0], sizes = [64, 128], strides = [1, 1]} : vector<64x384xf32> to vector<64x128xf32>
    %19 = vector.shape_cast %18 : vector<64x128xf32> to vector<2x32x128xf32>
    %20 = vector.extract_strided_slice %17 {offsets = [0, 128], sizes = [64, 128], strides = [1, 1]} : vector<64x384xf32> to vector<64x128xf32>
    %21 = vector.shape_cast %20 : vector<64x128xf32> to vector<2x32x128xf32>
    %c0_9 = arith.constant 0 : index
    %c0_10 = arith.constant 0 : index
    %c0_11 = arith.constant 0 : index
    %22 = vector.load %arg26[%c0_9, %c0_10, %c0_11] : memref<2x32x128xf32, #tpu.memory_space<vmem>>, vector<2x32x128xf32>
    tpu.vector_store %arg26[%c0_9, %c0_10, %c0_11], %21 {strides = array<i32>} : memref<2x32x128xf32, #tpu.memory_space<vmem>>, vector<2x32x128xf32>,
    %23 = vector.extract_strided_slice %17 {offsets = [0, 256], sizes = [64, 128], strides = [1, 1]} : vector<64x384xf32> to vector<64x128xf32>
    %24 = vector.shape_cast %23 : vector<64x128xf32> to vector<2x32x128xf32>
    %c0_12 = arith.constant 0 : index
    %c0_13 = arith.constant 0 : index
    %c0_14 = arith.constant 0 : index
    %25 = vector.load %arg27[%c0_12, %c0_13, %c0_14] : memref<2x32x128xf32, #tpu.memory_space<vmem>>, vector<2x32x128xf32>
    tpu.vector_store %arg27[%c0_12, %c0_13, %c0_14], %24 {strides = array<i32>} : memref<2x32x128xf32, #tpu.memory_space<vmem>>, vector<2x32x128xf32>,
    %c0_15 = arith.constant 0 : index
    %c0_16 = arith.constant 0 : index
    %26 = vector.load %arg7[%c0_15, %c0_16] : memref<128x128xbf16, #tpu.memory_space<vmem>>, vector<128x128xbf16>
    %cst_17 = arith.constant -1.000000e+30 : f32
    %27 = vector.broadcast %cst_17 : f32 to vector<2x32x128xf32>
    %cst_18 = arith.constant 0.000000e+00 : f32
    %28 = vector.broadcast %cst_18 : f32 to vector<2x32x128xf32>
    %cst_19 = arith.constant 0.000000e+00 : f32
    %29 = vector.broadcast %cst_19 : f32 to vector<2x32x128xf32>
    %c0_i32_20 = arith.constant 0 : i32
    %30 = arith.index_cast %c0_i32_20 : i32 to index
    %c0_21 = arith.constant 0 : index
    %c0_22 = arith.constant 0 : index
    %31 = vector.load %arg26[%30, %c0_21, %c0_22] : memref<2x32x128xf32, #tpu.memory_space<vmem>>, vector<1x32x128xf32>
    %32 = vector.shape_cast %31 : vector<1x32x128xf32> to vector<32x128xf32>
    %33 = arith.index_cast %c0_i32_20 : i32 to index
    %c0_23 = arith.constant 0 : index
    %c0_24 = arith.constant 0 : index
    %34 = vector.load %arg27[%33, %c0_23, %c0_24] : memref<2x32x128xf32, #tpu.memory_space<vmem>>, vector<1x32x128xf32>
    %35 = vector.shape_cast %34 : vector<1x32x128xf32> to vector<32x128xf32>
    %36 = vector.shape_cast %32 : vector<32x128xf32> to vector<1x32x128xf32>
    %37 = vector.broadcast %36 : vector<1x32x128xf32> to vector<2x32x128xf32>
    %38 = arith.mulf %19, %37 : vector<2x32x128xf32>
    %39 = vector.shape_cast %38 : vector<2x32x128xf32> to vector<64x128xf32>
    %40 = arith.truncf %39 : vector<64x128xf32> to vector<64x128xbf16>
    %cst_25 = arith.constant dense<0.000000e+00> : vector<64x128xf32>
    %41 = tpu.matmul %40, %26, %cst_25 {dimension_numbers = #tpu.dot_dimension_numbers<[1], [0], [0], [1], [0, 0, 1, 1], [], []>} : vector<64x128xbf16>, vector<128x128xbf16>, vector<64x128xf32> -> vector<64x128xf32>
    %cst_26 = arith.constant 0.353553385 : f32
    %42 = vector.broadcast %cst_26 : f32 to vector<64x128xf32>
    %43 = arith.mulf %41, %42 : vector<64x128xf32>
    %44 = vector.shape_cast %43 : vector<64x128xf32> to vector<2x32x128xf32>
    %45 = arith.maximumf %27, %44 : vector<2x32x128xf32>
    %46 = arith.subf %27, %45 : vector<2x32x128xf32>
    %47 = math.exp %46 : vector<2x32x128xf32>
    %48 = arith.subf %44, %45 : vector<2x32x128xf32>
    %49 = math.exp %48 : vector<2x32x128xf32>
    %50 = arith.mulf %28, %47 : vector<2x32x128xf32>
    %51 = arith.addf %50, %49 : vector<2x32x128xf32>
    %52 = arith.mulf %29, %47 : vector<2x32x128xf32>
    %53 = vector.shape_cast %35 : vector<32x128xf32> to vector<1x32x128xf32>
    %54 = vector.broadcast %53 : vector<1x32x128xf32> to vector<2x32x128xf32>
    %55 = arith.mulf %49, %54 : vector<2x32x128xf32>
    %56 = arith.addf %52, %55 : vector<2x32x128xf32>
    %c1_i32 = arith.constant 1 : i32
    %57 = arith.index_cast %c1_i32 : i32 to index
    %c0_27 = arith.constant 0 : index
    %c0_28 = arith.constant 0 : index
    %58 = vector.load %arg26[%57, %c0_27, %c0_28] : memref<2x32x128xf32, #tpu.memory_space<vmem>>, vector<1x32x128xf32>
    %59 = vector.shape_cast %58 : vector<1x32x128xf32> to vector<32x128xf32>
    %60 = arith.index_cast %c1_i32 : i32 to index
    %c0_29 = arith.constant 0 : index
    %c0_30 = arith.constant 0 : index
    %61 = vector.load %arg27[%60, %c0_29, %c0_30] : memref<2x32x128xf32, #tpu.memory_space<vmem>>, vector<1x32x128xf32>
    %62 = vector.shape_cast %61 : vector<1x32x128xf32> to vector<32x128xf32>
    %63 = vector.shape_cast %59 : vector<32x128xf32> to vector<1x32x128xf32>
    %64 = vector.broadcast %63 : vector<1x32x128xf32> to vector<2x32x128xf32>
    %65 = arith.mulf %19, %64 : vector<2x32x128xf32>
    %66 = vector.shape_cast %65 : vector<2x32x128xf32> to vector<64x128xf32>
    %67 = arith.truncf %66 : vector<64x128xf32> to vector<64x128xbf16>
    %cst_31 = arith.constant dense<0.000000e+00> : vector<64x128xf32>
    %68 = tpu.matmul %67, %26, %cst_31 {dimension_numbers = #tpu.dot_dimension_numbers<[1], [0], [0], [1], [0, 0, 1, 1], [], []>} : vector<64x128xbf16>, vector<128x128xbf16>, vector<64x128xf32> -> vector<64x128xf32>
    %cst_32 = arith.constant 0.353553385 : f32
    %69 = vector.broadcast %cst_32 : f32 to vector<64x128xf32>
    %70 = arith.mulf %68, %69 : vector<64x128xf32>
    %71 = vector.shape_cast %70 : vector<64x128xf32> to vector<2x32x128xf32>
    %72 = arith.maximumf %45, %71 : vector<2x32x128xf32>
    %73 = arith.subf %45, %72 : vector<2x32x128xf32>
    %74 = math.exp %73 : vector<2x32x128xf32>
    %75 = arith.subf %71, %72 : vector<2x32x128xf32>
    %76 = math.exp %75 : vector<2x32x128xf32>
    %77 = arith.mulf %51, %74 : vector<2x32x128xf32>
    %78 = arith.addf %77, %76 : vector<2x32x128xf32>
    %79 = arith.mulf %56, %74 : vector<2x32x128xf32>
    %80 = vector.shape_cast %62 : vector<32x128xf32> to vector<1x32x128xf32>
    %81 = vector.broadcast %80 : vector<1x32x128xf32> to vector<2x32x128xf32>
    %82 = arith.mulf %76, %81 : vector<2x32x128xf32>
    %83 = arith.addf %79, %82 : vector<2x32x128xf32>
    %c2_i32 = arith.constant 2 : i32
    %84 = tpu.reciprocal %78 {approx = true} : vector<2x32x128xf32> -> vector<2x32x128xf32>
    %85 = arith.mulf %83, %84 : vector<2x32x128xf32>
    %86 = vector.shape_cast %85 : vector<2x32x128xf32> to vector<64x128xf32>
    %87 = arith.truncf %86 : vector<64x128xf32> to vector<64x128xbf16>
    %c0_33 = arith.constant 0 : index
    %c0_34 = arith.constant 0 : index
    %c0_35 = arith.constant 0 : index
    %88 = vector.load %arg10[%c0_33, %c0_34, %c0_35] : memref<1x128x128xbf16, #tpu.memory_space<vmem>>, vector<1x128x128xbf16>
    %89 = vector.shape_cast %88 : vector<1x128x128xbf16> to vector<128x128xbf16>
    %cst_36 = arith.constant dense<0.000000e+00> : vector<64x128xf32>
    %90 = tpu.matmul %87, %89, %cst_36 {dimension_numbers = #tpu.dot_dimension_numbers<[1], [0], [0], [1], [0, 0, 1, 1], [], []>} : vector<64x128xbf16>, vector<128x128xbf16>, vector<64x128xf32> -> vector<64x128xf32>
    %c0_37 = arith.constant 0 : index
    %c0_38 = arith.constant 0 : index
    %c0_39 = arith.constant 0 : index
    %91 = vector.load %arg11[%c0_37, %c0_38, %c0_39] : memref<1x1x128xf32, #tpu.memory_space<vmem>>, vector<1x1x128xf32>
    %92 = vector.shape_cast %91 : vector<1x1x128xf32> to vector<1x128xf32>
    %93 = vector.broadcast %92 : vector<1x128xf32> to vector<64x128xf32>
    %94 = arith.addf %90, %93 : vector<64x128xf32>
    %95 = arith.addf %9, %94 : vector<64x128xf32>
    %c0_40 = arith.constant 0 : index
    %c0_41 = arith.constant 0 : index
    %c0_42 = arith.constant 0 : index
    %96 = vector.load %arg12[%c0_40, %c0_41, %c0_42] : memref<1x1x128xf32, #tpu.memory_space<vmem>>, vector<1x1x128xf32>
    %97 = vector.shape_cast %96 : vector<1x1x128xf32> to vector<1x128xf32>
    %c0_43 = arith.constant 0 : index
    %c0_44 = arith.constant 0 : index
    %c0_45 = arith.constant 0 : index
    %98 = vector.load %arg13[%c0_43, %c0_44, %c0_45] : memref<1x1x128xf32, #tpu.memory_space<vmem>>, vector<1x1x128xf32>
    %99 = vector.shape_cast %98 : vector<1x1x128xf32> to vector<1x128xf32>
    %cst_46 = arith.constant dense<0.000000e+00> : vector<64xf32>
    %100 = vector.multi_reduction <add>, %95, %cst_46 [1] : vector<64x128xf32> to vector<64xf32>
    %101 = vector.shape_cast %100 : vector<64xf32> to vector<64x1xf32>
    %cst_47 = arith.constant 3.125000e-02 : f32
    %102 = vector.broadcast %cst_47 : f32 to vector<64x1xf32>
    %103 = arith.mulf %101, %102 : vector<64x1xf32>
    %104 = vector.broadcast %103 : vector<64x1xf32> to vector<64x128xf32>
    %105 = arith.subf %95, %104 : vector<64x128xf32>
    %106 = vector.broadcast %4 : vector<1x128xf32> to vector<64x128xf32>
    %107 = arith.mulf %105, %106 : vector<64x128xf32>
    %108 = arith.mulf %107, %107 : vector<64x128xf32>
    %cst_48 = arith.constant dense<0.000000e+00> : vector<64xf32>
    %109 = vector.multi_reduction <add>, %108, %cst_48 [1] : vector<64x128xf32> to vector<64xf32>
    %110 = vector.shape_cast %109 : vector<64xf32> to vector<64x1xf32>
    %cst_49 = arith.constant 3.125000e-02 : f32
    %111 = vector.broadcast %cst_49 : f32 to vector<64x1xf32>
    %112 = arith.mulf %110, %111 : vector<64x1xf32>
    %cst_50 = arith.constant 9.99999974E-6 : f32
    %113 = vector.broadcast %cst_50 : f32 to vector<64x1xf32>
    %114 = arith.addf %112, %113 : vector<64x1xf32>
    %115 = math.rsqrt %114 : vector<64x1xf32>
    %116 = vector.broadcast %115 : vector<64x1xf32> to vector<64x128xf32>
    %117 = arith.mulf %107, %116 : vector<64x128xf32>
    %118 = vector.broadcast %97 : vector<1x128xf32> to vector<64x128xf32>
    %119 = arith.mulf %117, %118 : vector<64x128xf32>
    %120 = vector.broadcast %99 : vector<1x128xf32> to vector<64x128xf32>
    %121 = arith.addf %119, %120 : vector<64x128xf32>
    %122 = arith.truncf %121 : vector<64x128xf32> to vector<64x128xbf16>
    %c0_51 = arith.constant 0 : index
    %c0_52 = arith.constant 0 : index
    %c0_53 = arith.constant 0 : index
    %123 = vector.load %arg14[%c0_51, %c0_52, %c0_53] : memref<1x128x128xbf16, #tpu.memory_space<vmem>>, vector<1x128x128xbf16>
    %124 = vector.shape_cast %123 : vector<1x128x128xbf16> to vector<128x128xbf16>
    %cst_54 = arith.constant dense<0.000000e+00> : vector<64x128xf32>
    %125 = tpu.matmul %122, %124, %cst_54 {dimension_numbers = #tpu.dot_dimension_numbers<[1], [0], [0], [1], [0, 0, 1, 1], [], []>} : vector<64x128xbf16>, vector<128x128xbf16>, vector<64x128xf32> -> vector<64x128xf32>
    %c0_55 = arith.constant 0 : index
    %c0_56 = arith.constant 0 : index
    %c0_57 = arith.constant 0 : index
    %126 = vector.load %arg15[%c0_55, %c0_56, %c0_57] : memref<1x1x128xf32, #tpu.memory_space<vmem>>, vector<1x1x128xf32>
    %127 = vector.shape_cast %126 : vector<1x1x128xf32> to vector<1x128xf32>
    %128 = vector.broadcast %127 : vector<1x128xf32> to vector<64x128xf32>
    %129 = arith.addf %125, %128 : vector<64x128xf32>
    %cst_58 = arith.constant 5.000000e-01 : f32
    %130 = vector.broadcast %cst_58 : f32 to vector<64x128xf32>
    %131 = arith.mulf %130, %129 : vector<64x128xf32>
    %cst_59 = arith.constant 4.471500e-02 : f32
    %132 = vector.broadcast %cst_59 : f32 to vector<64x128xf32>
    %133 = arith.mulf %132, %129 : vector<64x128xf32>
    %134 = arith.mulf %133, %129 : vector<64x128xf32>
    %135 = arith.mulf %134, %129 : vector<64x128xf32>
    %136 = arith.addf %129, %135 : vector<64x128xf32>
    %cst_60 = arith.constant 0.797884583 : f32
    %137 = vector.broadcast %cst_60 : f32 to vector<64x128xf32>
    %138 = arith.mulf %137, %136 : vector<64x128xf32>
    %139 = math.tanh %138 : vector<64x128xf32>
    %cst_61 = arith.constant 1.000000e+00 : f32
    %140 = vector.broadcast %cst_61 : f32 to vector<64x128xf32>
    %141 = arith.addf %140, %139 : vector<64x128xf32>
    %142 = arith.mulf %131, %141 : vector<64x128xf32>
    %143 = arith.truncf %142 : vector<64x128xf32> to vector<64x128xbf16>
    %c0_62 = arith.constant 0 : index
    %c0_63 = arith.constant 0 : index
    %c0_64 = arith.constant 0 : index
    %144 = vector.load %arg16[%c0_62, %c0_63, %c0_64] : memref<1x128x128xbf16, #tpu.memory_space<vmem>>, vector<1x128x128xbf16>
    %145 = vector.shape_cast %144 : vector<1x128x128xbf16> to vector<128x128xbf16>
    %cst_65 = arith.constant dense<0.000000e+00> : vector<64x128xf32>
    %146 = tpu.matmul %143, %145, %cst_65 {dimension_numbers = #tpu.dot_dimension_numbers<[1], [0], [0], [1], [0, 0, 1, 1], [], []>} : vector<64x128xbf16>, vector<128x128xbf16>, vector<64x128xf32> -> vector<64x128xf32>
    %c0_66 = arith.constant 0 : index
    %c0_67 = arith.constant 0 : index
    %c0_68 = arith.constant 0 : index
    %147 = vector.load %arg17[%c0_66, %c0_67, %c0_68] : memref<1x1x128xf32, #tpu.memory_space<vmem>>, vector<1x1x128xf32>
    %148 = vector.shape_cast %147 : vector<1x1x128xf32> to vector<1x128xf32>
    %149 = vector.broadcast %148 : vector<1x128xf32> to vector<64x128xf32>
    %150 = arith.addf %146, %149 : vector<64x128xf32>
    %151 = arith.addf %121, %150 : vector<64x128xf32>
    %c0_69 = arith.constant 0 : index
    %c0_70 = arith.constant 0 : index
    %c0_71 = arith.constant 0 : index
    %152 = vector.load %arg18[%c0_69, %c0_70, %c0_71] : memref<1x1x128xf32, #tpu.memory_space<vmem>>, vector<1x1x128xf32>
    %153 = vector.shape_cast %152 : vector<1x1x128xf32> to vector<1x128xf32>
    %c0_72 = arith.constant 0 : index
    %c0_73 = arith.constant 0 : index
    %c0_74 = arith.constant 0 : index
    %154 = vector.load %arg19[%c0_72, %c0_73, %c0_74] : memref<1x1x128xf32, #tpu.memory_space<vmem>>, vector<1x1x128xf32>
    %155 = vector.shape_cast %154 : vector<1x1x128xf32> to vector<1x128xf32>
    %cst_75 = arith.constant dense<0.000000e+00> : vector<64xf32>
    %156 = vector.multi_reduction <add>, %151, %cst_75 [1] : vector<64x128xf32> to vector<64xf32>
    %157 = vector.shape_cast %156 : vector<64xf32> to vector<64x1xf32>
    %cst_76 = arith.constant 3.125000e-02 : f32
    %158 = vector.broadcast %cst_76 : f32 to vector<64x1xf32>
    %159 = arith.mulf %157, %158 : vector<64x1xf32>
    %160 = vector.broadcast %159 : vector<64x1xf32> to vector<64x128xf32>
    %161 = arith.subf %151, %160 : vector<64x128xf32>
    %162 = vector.broadcast %4 : vector<1x128xf32> to vector<64x128xf32>
    %163 = arith.mulf %161, %162 : vector<64x128xf32>
    %164 = arith.mulf %163, %163 : vector<64x128xf32>
    %cst_77 = arith.constant dense<0.000000e+00> : vector<64xf32>
    %165 = vector.multi_reduction <add>, %164, %cst_77 [1] : vector<64x128xf32> to vector<64xf32>
    %166 = vector.shape_cast %165 : vector<64xf32> to vector<64x1xf32>
    %cst_78 = arith.constant 3.125000e-02 : f32
    %167 = vector.broadcast %cst_78 : f32 to vector<64x1xf32>
    %168 = arith.mulf %166, %167 : vector<64x1xf32>
    %cst_79 = arith.constant 9.99999974E-6 : f32
    %169 = vector.broadcast %cst_79 : f32 to vector<64x1xf32>
    %170 = arith.addf %168, %169 : vector<64x1xf32>
    %171 = math.rsqrt %170 : vector<64x1xf32>
    %172 = vector.broadcast %171 : vector<64x1xf32> to vector<64x128xf32>
    %173 = arith.mulf %163, %172 : vector<64x128xf32>
    %174 = vector.broadcast %153 : vector<1x128xf32> to vector<64x128xf32>
    %175 = arith.mulf %173, %174 : vector<64x128xf32>
    %176 = vector.broadcast %155 : vector<1x128xf32> to vector<64x128xf32>
    %177 = arith.addf %175, %176 : vector<64x128xf32>
    %178 = vector.shape_cast %177 : vector<64x128xf32> to vector<2x32x128xf32>
    %c0_80 = arith.constant 0 : index
    %c0_81 = arith.constant 0 : index
    %c0_82 = arith.constant 0 : index
    %179 = vector.load %arg25[%c0_80, %c0_81, %c0_82] : memref<2x32x128xf32, #tpu.memory_space<vmem>>, vector<2x32x128xf32>
    tpu.vector_store %arg25[%c0_80, %c0_81, %c0_82], %178 {strides = array<i32>} : memref<2x32x128xf32, #tpu.memory_space<vmem>>, vector<2x32x128xf32>,
    %c1_i32_83 = arith.constant 1 : i32
    %180 = arith.cmpi eq, %arg0, %c1_i32_83 : i32
    %181 = arith.extui %180 : i1 to i32
    %c0_i32_84 = arith.constant 0 : i32
    %182 = arith.cmpi ne, %181, %c0_i32_84 : i32
    scf.if %182 {
      "tpu.region"() ({
        %alloca = memref.alloca() : memref<128x128xbf16, #tpu.memory_space<vmem>>
        %alloca_85 = memref.alloca() : memref<1x128xf32, #tpu.memory_space<vmem>>
        %alloca_86 = memref.alloca() : memref<128x256xbf16, #tpu.memory_space<vmem>>
        %alloca_87 = memref.alloca() : memref<1x256xf32, #tpu.memory_space<vmem>>
        "tpu.region"() ({
          %201 = tpu.sem_alloc : memref<!tpu.dma_semaphore, #tpu.memory_space<semaphore_mem>>
          tpu.enqueue_dma source(%arg20 : memref<128x128xbf16, #tpu.memory_space<any>>) target(%alloca : memref<128x128xbf16, #tpu.memory_space<vmem>>) target_semaphore(%201 : memref<!tpu.dma_semaphore, #tpu.memory_space<semaphore_mem>>)
          tpu.wait_dma2 semaphore(%201 : memref<!tpu.dma_semaphore, #tpu.memory_space<semaphore_mem>>) src(%arg20 : memref<128x128xbf16, #tpu.memory_space<any>>) dst(%alloca : memref<128x128xbf16, #tpu.memory_space<vmem>>)
          tpu.yield
        }) : () -> ()
        "tpu.region"() ({
          %201 = tpu.sem_alloc : memref<!tpu.dma_semaphore, #tpu.memory_space<semaphore_mem>>
          tpu.enqueue_dma source(%arg21 : memref<1x128xf32, #tpu.memory_space<any>>) target(%alloca_85 : memref<1x128xf32, #tpu.memory_space<vmem>>) target_semaphore(%201 : memref<!tpu.dma_semaphore, #tpu.memory_space<semaphore_mem>>)
          tpu.wait_dma2 semaphore(%201 : memref<!tpu.dma_semaphore, #tpu.memory_space<semaphore_mem>>) src(%arg21 : memref<1x128xf32, #tpu.memory_space<any>>) dst(%alloca_85 : memref<1x128xf32, #tpu.memory_space<vmem>>)
          tpu.yield
        }) : () -> ()
        "tpu.region"() ({
          %201 = tpu.sem_alloc : memref<!tpu.dma_semaphore, #tpu.memory_space<semaphore_mem>>
          tpu.enqueue_dma source(%arg22 : memref<128x256xbf16, #tpu.memory_space<any>>) target(%alloca_86 : memref<128x256xbf16, #tpu.memory_space<vmem>>) target_semaphore(%201 : memref<!tpu.dma_semaphore, #tpu.memory_space<semaphore_mem>>)
          tpu.wait_dma2 semaphore(%201 : memref<!tpu.dma_semaphore, #tpu.memory_space<semaphore_mem>>) src(%arg22 : memref<128x256xbf16, #tpu.memory_space<any>>) dst(%alloca_86 : memref<128x256xbf16, #tpu.memory_space<vmem>>)
          tpu.yield
        }) : () -> ()
        "tpu.region"() ({
          %201 = tpu.sem_alloc : memref<!tpu.dma_semaphore, #tpu.memory_space<semaphore_mem>>
          tpu.enqueue_dma source(%arg23 : memref<1x256xf32, #tpu.memory_space<any>>) target(%alloca_87 : memref<1x256xf32, #tpu.memory_space<vmem>>) target_semaphore(%201 : memref<!tpu.dma_semaphore, #tpu.memory_space<semaphore_mem>>)
          tpu.wait_dma2 semaphore(%201 : memref<!tpu.dma_semaphore, #tpu.memory_space<semaphore_mem>>) src(%arg23 : memref<1x256xf32, #tpu.memory_space<any>>) dst(%alloca_87 : memref<1x256xf32, #tpu.memory_space<vmem>>)
          tpu.yield
        }) : () -> ()
        %cst_88 = arith.constant dense<0.000000e+00> : vector<2x128xf32>
        %183 = vector.multi_reduction <add>, %178, %cst_88 [1] : vector<2x32x128xf32> to vector<2x128xf32>
        %cst_89 = arith.constant 3.125000e-02 : f32
        %184 = vector.broadcast %cst_89 : f32 to vector<2x128xf32>
        %185 = arith.mulf %183, %184 : vector<2x128xf32>
        %186 = arith.truncf %185 : vector<2x128xf32> to vector<2x128xbf16>
        %c0_90 = arith.constant 0 : index
        %c0_91 = arith.constant 0 : index
        %187 = vector.load %alloca[%c0_90, %c0_91] : memref<128x128xbf16, #tpu.memory_space<vmem>>, vector<128x128xbf16>
        %cst_92 = arith.constant dense<0.000000e+00> : vector<2x128xf32>
        %188 = tpu.matmul %186, %187, %cst_92 {dimension_numbers = #tpu.dot_dimension_numbers<[1], [0], [0], [1], [0, 0, 1, 1], [], []>} : vector<2x128xbf16>, vector<128x128xbf16>, vector<2x128xf32> -> vector<2x128xf32>
        %c0_93 = arith.constant 0 : index
        %c0_94 = arith.constant 0 : index
        %189 = vector.load %alloca_85[%c0_93, %c0_94] : memref<1x128xf32, #tpu.memory_space<vmem>>, vector<1x128xf32>
        %190 = vector.broadcast %189 : vector<1x128xf32> to vector<2x128xf32>
        %191 = arith.addf %188, %190 : vector<2x128xf32>
        %cst_95 = arith.constant 0.000000e+00 : f32
        %192 = vector.broadcast %cst_95 : f32 to vector<2x128xf32>
        %193 = arith.maximumf %191, %192 : vector<2x128xf32>
        %194 = arith.truncf %193 : vector<2x128xf32> to vector<2x128xbf16>
        %c0_96 = arith.constant 0 : index
        %c0_97 = arith.constant 0 : index
        %195 = vector.load %alloca_86[%c0_96, %c0_97] : memref<128x256xbf16, #tpu.memory_space<vmem>>, vector<128x256xbf16>
        %cst_98 = arith.constant dense<0.000000e+00> : vector<2x256xf32>
        %196 = tpu.matmul %194, %195, %cst_98 {dimension_numbers = #tpu.dot_dimension_numbers<[1], [0], [0], [1], [0, 0, 1, 1], [], []>} : vector<2x128xbf16>, vector<128x256xbf16>, vector<2x256xf32> -> vector<2x256xf32>
        %c0_99 = arith.constant 0 : index
        %c0_100 = arith.constant 0 : index
        %197 = vector.load %alloca_87[%c0_99, %c0_100] : memref<1x256xf32, #tpu.memory_space<vmem>>, vector<1x256xf32>
        %198 = vector.broadcast %197 : vector<1x256xf32> to vector<2x256xf32>
        %199 = arith.addf %196, %198 : vector<2x256xf32>
        %c0_101 = arith.constant 0 : index
        %c0_102 = arith.constant 0 : index
        %200 = vector.load %arg24[%c0_101, %c0_102] : memref<2x256xf32, #tpu.memory_space<vmem>>, vector<2x256xf32>
        tpu.vector_store %arg24[%c0_101, %c0_102], %199 {strides = array<i32>} : memref<2x256xf32, #tpu.memory_space<vmem>>, vector<2x256xf32>,
        tpu.yield
      }) : () -> ()
    } else {
    }
    return
  }
  func.func @transform_6(%arg0: i32) -> (i32, i32) {
    %c0_i32 = arith.constant 0 : i32
    %c0_i32_0 = arith.constant 0 : i32
    %c0_i32_1 = arith.constant 0 : i32
    return %c0_i32, %c0_i32_0 : i32, i32
  }
  func.func @transform_7(%arg0: i32) -> (i32, i32, i32) {
    %c0_i32 = arith.constant 0 : i32
    %c0_i32_0 = arith.constant 0 : i32
    %c0_i32_1 = arith.constant 0 : i32
    return %arg0, %c0_i32, %c0_i32_0 : i32, i32, i32
  }
  func.func @transform_8(%arg0: i32) -> (i32, i32, i32) {
    %c0_i32 = arith.constant 0 : i32
    %c0_i32_0 = arith.constant 0 : i32
    %c0_i32_1 = arith.constant 0 : i32
    return %arg0, %c0_i32, %c0_i32_0 : i32, i32, i32
  }
  func.func @transform_9(%arg0: i32) -> (i32, i32, i32) {
    %c0_i32 = arith.constant 0 : i32
    %c0_i32_0 = arith.constant 0 : i32
    %c0_i32_1 = arith.constant 0 : i32
    return %arg0, %c0_i32, %c0_i32_0 : i32, i32, i32
  }
  func.func @transform_10(%arg0: i32) -> (i32, i32, i32) {
    %c0_i32 = arith.constant 0 : i32
    %c0_i32_0 = arith.constant 0 : i32
    %c0_i32_1 = arith.constant 0 : i32
    return %arg0, %c0_i32, %c0_i32_0 : i32, i32, i32
  }
  func.func @transform_11(%arg0: i32) -> (i32, i32, i32) {
    %c0_i32 = arith.constant 0 : i32
    %c0_i32_0 = arith.constant 0 : i32
    %c0_i32_1 = arith.constant 0 : i32
    return %arg0, %c0_i32, %c0_i32_0 : i32, i32, i32
  }
  func.func @transform_12(%arg0: i32) -> (i32, i32, i32) {
    %c0_i32 = arith.constant 0 : i32
    %c0_i32_0 = arith.constant 0 : i32
    %c0_i32_1 = arith.constant 0 : i32
    return %arg0, %c0_i32, %c0_i32_0 : i32, i32, i32
  }
  func.func @transform_13(%arg0: i32) -> (i32, i32, i32) {
    %c0_i32 = arith.constant 0 : i32
    %c0_i32_0 = arith.constant 0 : i32
    %c0_i32_1 = arith.constant 0 : i32
    return %arg0, %c0_i32, %c0_i32_0 : i32, i32, i32
  }
  func.func @transform_14(%arg0: i32) -> (i32, i32, i32) {
    %c0_i32 = arith.constant 0 : i32
    %c0_i32_0 = arith.constant 0 : i32
    %c0_i32_1 = arith.constant 0 : i32
    return %arg0, %c0_i32, %c0_i32_0 : i32, i32, i32
  }
  func.func @transform_15(%arg0: i32) -> (i32, i32, i32) {
    %c0_i32 = arith.constant 0 : i32
    %c0_i32_0 = arith.constant 0 : i32
    %c0_i32_1 = arith.constant 0 : i32
    return %arg0, %c0_i32, %c0_i32_0 : i32, i32, i32
  }
  func.func @transform_16(%arg0: i32) -> (i32, i32, i32) {
    %c0_i32 = arith.constant 0 : i32
    %c0_i32_0 = arith.constant 0 : i32
    %c0_i32_1 = arith.constant 0 : i32
    return %arg0, %c0_i32, %c0_i32_0 : i32, i32, i32
  }
  func.func @transform_17(%arg0: i32) -> (i32, i32, i32) {
    %c0_i32 = arith.constant 0 : i32
    %c0_i32_0 = arith.constant 0 : i32
    %c0_i32_1 = arith.constant 0 : i32
    return %arg0, %c0_i32, %c0_i32_0 : i32, i32, i32
  }
  func.func @transform_18(%arg0: i32) -> (i32, i32, i32) {
    %c0_i32 = arith.constant 0 : i32
    %c0_i32_0 = arith.constant 0 : i32
    %c0_i32_1 = arith.constant 0 : i32
    return %arg0, %c0_i32, %c0_i32_0 : i32, i32, i32
  }
  func.func @transform_23(%arg0: i32) -> (i32, i32) {
    %c0_i32 = arith.constant 0 : i32
    %c0_i32_0 = arith.constant 0 : i32
    %c0_i32_1 = arith.constant 0 : i32
    return %c0_i32, %c0_i32_0 : i32, i32
  }
}

</mosaic_0001>

<bundles_post_ra>
// kernel: tpu_custom_call.1
= control target key start
LH: loop header
LB: loop body
LE: loop exit
PB: predicated region body
PF: predicated region fallthrough
CT: control target
= control target key end

     0   :  { %s5111_s0 = inlined_call_operand.hbm [shape: bf16[32,48], index: 0, kind: input, shape index: {}]   ;;  %s5112_s1 = inlined_call_operand.hbm [shape: bf16[48,128], index: 1, kind: input, shape index: {}]   ;;  %s5113_s2 = inlined_call_operand.hbm [shape: f32[16,128], index: 2, kind: input, shape index: {}]   ;;  %s5114_s3 = inlined_call_operand.hbm [shape: bf16[32,160], index: 3, kind: input, shape index: {}]   ;;  %s5115_s4 = inlined_call_operand.hbm [shape: bf16[160,128], index: 4, kind: input, shape index: {}]   ;;  %s5116_s5 = inlined_call_operand.hbm [shape: f32[16,128], index: 5, kind: input, shape index: {}]   ;;  %s5117_s6 = inlined_call_operand.hbm [shape: bf16[128,128], index: 6, kind: input, shape index: {}]   ;;  %s5118_s7 = inlined_call_operand.hbm [shape: bf16[2,128,384], index: 7, kind: input, shape index: {}]   ;;  %s5119_s8 = inlined_call_operand.vmem [shape: f32[2,1,384], index: 8, kind: input, shape index: {}]   ;;  %s5120_s9 = inlined_call_operand.hbm [shape: bf16[2,128,128], index: 9, kind: input, shape index: {}]   ;;  %s5121_s10 = inlined_call_operand.vmem [shape: f32[2,1,128], index: 10, kind: input, shape index: {}]   ;;  %s5122_s11 = inlined_call_operand.vmem [shape: f32[2,1,128], index: 11, kind: input, shape index: {}]   ;;  %s5123_s12 = inlined_call_operand.vmem [shape: f32[2,1,128], index: 12, kind: input, shape index: {}]   ;;  %s5124_s13 = inlined_call_operand.hbm [shape: bf16[2,128,128], index: 13, kind: input, shape index: {}]   ;;  %s5125_s14 = inlined_call_operand.vmem [shape: f32[2,1,128], index: 14, kind: input, shape index: {}]   ;;  %s5126_s15 = inlined_call_operand.hbm [shape: bf16[2,128,128], index: 15, kind: input, shape index: {}]   ;;  %s5127_s16 = inlined_call_operand.vmem [shape: f32[2,1,128], index: 16, kind: input, shape index: {}]   ;;  %s5128_s17 = inlined_call_operand.vmem [shape: f32[2,1,128], index: 17, kind: input, shape index: {}]   ;;  %s5129_s18 = inlined_call_operand.vmem [shape: f32[2,1,128], index: 18, kind: input, shape index: {}]   ;;  %s5130_s19 = inlined_call_operand.hbm [shape: bf16[128,128], index: 19, kind: input, shape index: {}]   ;;  %s5131_s20 = inlined_call_operand.vmem [shape: f32[1,128], index: 20, kind: input, shape index: {}]   ;;  %s5132_s21 = inlined_call_operand.hbm [shape: bf16[128,256], index: 21, kind: input, shape index: {}]   ;;  %s5133_s22 = inlined_call_operand.vmem [shape: f32[1,256], index: 22, kind: input, shape index: {}]   ;;  %s5134_s23 = inlined_call_operand.hbm [shape: f32[2,256], index: 23, kind: output, shape index: {}]  }
   0x1   :  { %5155 = sst [smem:[#allocation74_spill]] %s5111_s0 }
   0x2   :  { %5156 = sst [smem:[#allocation75_spill]] %s5112_s1 }
   0x3   :  { %5157 = sst [smem:[#allocation76_spill]] %s5113_s2 }
   0x4   :  { %5158 = sst [smem:[#allocation77_spill]] %s5114_s3 }
   0x5   :  { %5159 = sst [smem:[#allocation78_spill]] %s5115_s4 }
   0x6   :  { %5160 = sst [smem:[#allocation79_spill]] %s5116_s5 }
   0x7   :  { %5161 = sst [smem:[#allocation80_spill]] %s5117_s6 }
   0x8   :  { %5162 = sst [smem:[#allocation81_spill]] %s5118_s7 }
   0x9   :  { %5163 = sst [smem:[#allocation82_spill]] %s5120_s9 }
   0xa   :  { %5164 = sst [smem:[#allocation83_spill]] %s5124_s13 }
   0xb   :  { %5165 = sst [smem:[#allocation84_spill]] %s5126_s15 }
   0xc   :  { %5166 = sst [smem:[#allocation85_spill]] %s5127_s16 }
   0xd   :  { %5167 = sst [smem:[#allocation86_spill]] %s5128_s17 }
   0xe   :  { %5168 = sst [smem:[#allocation87_spill]] %s5129_s18 }
   0xf   :  { %5169 = sst [smem:[#allocation88_spill]] %s5130_s19 }
  0x10   :  { %5170 = sst [smem:[#allocation89_spill]] %s5131_s20 }
  0x11   :  { %5171 = sst [smem:[#allocation90_spill]] %s5132_s21 }
  0x12   :  { %5172 = sst [smem:[#allocation91_spill]] %s5133_s22 }
  0x13   :  { %5173 = sst [smem:[#allocation92_spill]] %s5134_s23 }
  0x14   :  { %28 = vsyncpa [#allocation6], 0 }
  0x15   :  { %29 = vsyncpa [#allocation9], 0 }
  0x16   :  { %31 = vsyncpa [#allocation9 + $0x1], 0 }
  0x17   :  { %32 = vsyncpa [#allocation12], 0 }
  0x18   :  { %34 = vsyncpa [#allocation12 + $0x1], 0 }
  0x19   :  { %35 = vsyncpa [#allocation7], 0  ;;  %s4276_s4 = smov 0   ;;  %s4278_s30 = smov 0  }
  0x1a   :  { %s4280_s24 = smov 0   ;;  %s4282_s25 = smov 0  }
  0x1b LB: > { %5174 = sst [smem:[#allocation69_spill]] %s4108_s30  ;;  %s4297_s5 = sadd.s32 1, %s4116_s25   ;;  %s4116_s25 = sphi %s4282_s25, %s5222_s25   ;;  %s4112_s24 = sphi %s4280_s24, %s5225_s24   ;;  %s4108_s30 = sphi %s4278_s30, %s5224_s30   ;;  %s4104_s4 = sphi %s4276_s4, %s5223_s4  }
  0x1c   : > { %5175 = sst [smem:[#allocation70_spill]] %s4112_s24  ;;  %s69_s1 = sadd.s32 1, %s4112_s24 }
  0x1d   : > { %5176 = sst [smem:[#allocation71_spill]] %s4297_s5  ;;  %s66_s26 = ssub.s32 %s4116_s25, %s4297_s5 }
  0x1e   : > { %p76_p0 = scmp.ne.s32.totalorder %s4112_s24, %s4108_s30  ;;  %p67_p1 = scmp.eq.s32.totalorder %s66_s26, 0 }
  0x1f   : > { %p77_p2 = scmp.eq.s32.totalorder %s4116_s25, 0  ;;  %p3504_p3 = scmp.lt.s32.totalorder %s4116_s25, 2 }
  0x20   : > { %s4307_s2 = scalar_select %p67_p1, %s4112_s24, %s69_s1  }
  0x21   : > { %p78_p4 = por %p77_p2, %p76_p0  ;;  %s5139_s6 = sand.u32 1, %s4116_s25  }
  0x22   : > { %5177 = sst [smem:[#allocation72_spill]] %s4307_s2  ;;  %s5138_s27 = sand.u32 1, %s4112_s24  }
  0x23   : > { %s3466_s7 = smul.u32 192, %s5138_s27  ;;  %p4313_p5 = pnand %p3504_p3, %p78_p4 }
  0x24   : > { %s3467_s29 = smul.u32 3072, %s4116_s25  ;;  %s5179_s5 = sld [smem:[#allocation81_spill]] }
  0x25   : > { %s430_s1 = scalar_lea.vmem [#allocation8], %s3466_s7  ;;  %s4327_s27 = scalar_lea.sflag [#allocation9], %s5139_s6 }
  0x26   : > { %s437_s26 = sshll.u32 %s430_s1, 4  ;;  %p4333_p7 = pneg %p4313_p5  ;;  %s4323_s26 = int_to_ptr.vmem [resolvable:$true] %s437_s26 }
  0x2a   : > { %s4321_s23 = scalar_lea.hbm %s5179_s5, %s3467_s29  ;;  %s3773_s7 = scalar_lea.hbm %s5179_s5, 6144 }
  0x2b   : > { %s3768_s2 = scalar_lea.hbm %s4321_s23, 3072  ;;  %p3774_p10 = scmp.lt.s32.totalorder %s4321_s23, %s5179_s5 }
  0x2c   : > { %p3769_p6 = scmp.ne.s32.totalorder %s4321_s23, %s3768_s2  ;;  %p3775_p11 = scmp.lt.s32.totalorder %s3773_s7, %s3768_s2 }
  0x2e   : > { %p3771_p8 = pnand %p4333_p7, %p3769_p6  ;;  %p3776_p12 = por %p3775_p11, %p3774_p10 }
  0x30   : > { %p3772_p9 = pneg %p3771_p8 }
  0x32   : > { %p3777_p13 = pnand %p3776_p12, %p3772_p9 }
  0x34   : > { %3780 = shalt.err (!%p3777_p13)
}
  0x35   : > { %s3781_s6 = scalar_lea.vmem %s4323_s26, 3072  ;;  %s4118_s21 = smov [#allocation8]  }
  0x36   : > { %p3782_p0 = scmp.ne.s32.totalorder %s4323_s26, %s3781_s6  ;;  %s3786_s29 = sshll.u32 %s4118_s21, 4  ;;  %s3787_s29 = int_to_ptr.vmem [resolvable:$false] %s3786_s29 }
  0x37   : > { %s3788_s3 = scalar_lea.vmem %s3787_s29, 6144  ;;  %p3789_p3 = scmp.lt.s32.totalorder %s4323_s26, %s3787_s29 }
  0x38   : > { %p3784_p1 = pnand %p3782_p0, %p4333_p7  ;;  %p3790_p4 = scmp.lt.s32.totalorder %s3788_s3, %s3781_s6 }
  0x3a   : > { %p3785_p2 = pneg %p3784_p1  ;;  %p3791_p6 = por %p3790_p4, %p3789_p3 }
  0x3c   : > { %p3792_p8 = pnand %p3791_p6, %p3785_p2 }
  0x3e   : > { %3795 = shalt.err (!%p3792_p8)
}
  0x3f   : > { %s4119_s2 = smov 192   ;;  %s4120_s7 = smov 12  }
  0x40   : > { %3493 = dma.hbm_to_vmem [thread:$0]  (!%p4313_p5), %s4321_s23, 3072, %s4323_s26, %s4327_s27, %s4119_s2, %s4119_s2, %s4120_s7  }
  0x41   : > { %s5181_s21 = sand.u32 1, %s4112_s24   ;;  %s4361_s6 = sshll.u32 %s4116_s25, 10 }
  0x42   : > { %s4358_s0 = sshll.u32 %s5181_s21, 6  ;;  %s5182_s13 = sld [smem:[#allocation83_spill]] }
  0x43   : > { %s497_s5 = scalar_lea.vmem [#allocation11], %s4358_s0  ;;  %s5183_s23 = sand.u32 1, %s4116_s25  }
  0x44   : > { %s504_s20 = sshll.u32 %s497_s5, 4  ;;  %s4374_s26 = scalar_lea.sflag [#allocation12], %s5183_s23  ;;  %s4370_s20 = int_to_ptr.vmem [resolvable:$true] %s504_s20 }
  0x48   : > { %s4367_s3 = scalar_lea.hbm %s5182_s13, %s4361_s6  ;;  %s3801_s1 = scalar_lea.hbm %s5182_s13, 2048 }
  0x49   : > { %s3796_s2 = scalar_lea.hbm %s4367_s3, 1024  ;;  %p3802_p12 = scmp.lt.s32.totalorder %s4367_s3, %s5182_s13 }
  0x4a   : > { %p3797_p9 = scmp.ne.s32.totalorder %s4367_s3, %s3796_s2  ;;  %p3803_p13 = scmp.lt.s32.totalorder %s3801_s1, %s3796_s2 }
  0x4c   : > { %p3799_p10 = pnand %p3797_p9, %p4333_p7  ;;  %p3804_p0 = por %p3803_p13, %p3802_p12 }
  0x4e   : > { %p3800_p11 = pneg %p3799_p10 }
  0x50   : > { %p3805_p1 = pnand %p3804_p0, %p3800_p11 }
  0x52   : > { %3808 = shalt.err (!%p3805_p1)
}
  0x53   : > { %s3809_s5 = scalar_lea.vmem %s4370_s20, 1024  ;;  %s4121_s23 = smov [#allocation11]  }
  0x54   : > { %p3810_p2 = scmp.ne.s32.totalorder %s4370_s20, %s3809_s5  ;;  %s3814_s7 = sshll.u32 %s4121_s23, 4  ;;  %s3815_s7 = int_to_ptr.vmem [resolvable:$false] %s3814_s7 }
  0x55   : > { %s3816_s21 = scalar_lea.vmem %s3815_s7, 2048  ;;  %p3817_p6 = scmp.lt.s32.totalorder %s4370_s20, %s3815_s7 }
  0x56   : > { %p3812_p3 = pnand %p3810_p2, %p4333_p7  ;;  %p3818_p8 = scmp.lt.s32.totalorder %s3816_s21, %s3809_s5 }
  0x58   : > { %p3813_p4 = pneg %p3812_p3  ;;  %p3819_p9 = por %p3818_p8, %p3817_p6 }
  0x5a   : > { %p3820_p10 = pnand %p3819_p9, %p3813_p4 }
  0x5c   : > { %3823 = shalt.err (!%p3820_p10)
}
  0x5d   : > { %s5142_s24 = smov 64   ;;  %s5144_s2 = smov 4  }
  0x5e   : > { %3499 = dma.hbm_to_vmem [thread:$0]  (!%p4313_p5), %s4367_s3, 1024, %s4370_s20, %s4374_s26, %s5142_s24, %s5142_s24, %s5144_s2  }
  0x5f   : > { %s4401_s1 = sadd.s32 4294967295, %s4116_s25   ;;  %p82_p11 = scmp.ne.s32.totalorder %s4108_s30, %s4104_s4 }
  0x60   : > { %p5146_p12 = scmp.eq.s32.totalorder %s4401_s1, 0  ;;  %p3089_p13 = scmp.ge.s32.totalorder %s4116_s25, 1 }
  0x61   : > { %p400_p0 = scmp.lt.s32.totalorder %s4116_s25, 3  ;;  %s4124_s20 = smov [#allocation5]  }
  0x62   : > { %p4410_p1 = por %p5146_p12, %p82_p11  ;;  %s412_s3 = sshll.u32 %s4124_s20, 4  ;;  %s4421_s3 = int_to_ptr.vmem [resolvable:$true] %s412_s3 }
  0x63   : > { %p4415_p3 = pnand %p3089_p13, %p400_p0  ;;  %s5186_s9 = sld [smem:[#allocation82_spill]] }
  0x64   : > { %s5184_s29 = scalar_select %p4410_p1, 1, 0 }
  0x65   : > { %s5185_s5 = scalar_select %p4415_p3, 1, 0 }
  0x66   : > { %p3486_p4 = pneg %p4415_p3  ;;  %s458_s7 = scalar_lea.vmem [#allocation10], %s4358_s0 }
  0x67   : > { %s465_s21 = sshll.u32 %s458_s7, 4  ;;  %s466_s21 = int_to_ptr.vmem [resolvable:$true] %s465_s21 }
  0x68   : > { %p4432_p6 = pnand %p3486_p4, %p5146_p12 }
  0x69   : > { %s4427_s25 = scalar_lea.hbm %s5186_s9, %s4361_s6  ;;  %s3829_s23 = scalar_lea.hbm %s5186_s9, 2048 }
  0x6a   : > { %s5187_s24 = scalar_select %p4432_p6, 1, 0 }
  0x6b   : > { %s3824_s20 = scalar_lea.hbm %s4427_s25, 1024  ;;  %p3830_p11 = scmp.lt.s32.totalorder %s4427_s25, %s5186_s9 }
  0x6c   : > { %p3825_p8 = scmp.ne.s32.totalorder %s4427_s25, %s3824_s20  ;;  %p3831_p13 = scmp.lt.s32.totalorder %s3829_s23, %s3824_s20 }
  0x6e   : > { %p3827_p9 = pnand %p3825_p8, %p4333_p7  ;;  %p3832_p0 = por %p3831_p13, %p3830_p11 }
  0x70   : > { %p3828_p10 = pneg %p3827_p9 }
  0x72   : > { %p3833_p4 = pnand %p3832_p0, %p3828_p10 }
  0x74   : > { %3836 = shalt.err (!%p3833_p4)
}
  0x75   : > { %s3837_s7 = scalar_lea.vmem %s466_s21, 1024  ;;  %s4125_s18 = smov [#allocation10]  }
  0x76   : > { %p3838_p2 = scmp.ne.s32.totalorder %s466_s21, %s3837_s7  ;;  %s3842_s17 = sshll.u32 %s4125_s18, 4  ;;  %s3843_s17 = int_to_ptr.vmem [resolvable:$false] %s3842_s17 }
  0x77   : > { %s3844_s16 = scalar_lea.vmem %s3843_s17, 2048  ;;  %p3845_p8 = scmp.lt.s32.totalorder %s466_s21, %s3843_s17 }
  0x78   : > { %p3840_p12 = pnand %p3838_p2, %p4333_p7  ;;  %p3846_p9 = scmp.lt.s32.totalorder %s3844_s16, %s3837_s7 }
  0x7a   : > { %p3841_p1 = pneg %p3840_p12  ;;  %p3847_p3 = por %p3846_p9, %p3845_p8 }
  0x7c   : > { %p3848_p6 = pnand %p3847_p3, %p3841_p1 }
  0x7e   : > { %3851 = shalt.err (!%p3848_p6)
}
  0x7f   : > { %s5188_s13 = smov 4   ;;  %s5189_s19 = smov 64  }
  0x80   : > { %3496 = dma.hbm_to_vmem [thread:$0]  (!%p4313_p5), %s4427_s25, 1024, %s466_s21, %s4327_s27, %s5189_s19, %s5189_s19, %s5188_s13  }
  0x81   : > { %p5190_p12 = scmp.ne.s32.totalorder %s5187_s24, 0  ;;  %s3863_s18 = scalar_lea.vmem %s4421_s3, 1024 }
  0x82   : > { %p3864_p10 = scmp.ne.s32.totalorder %s4421_s3, %s3863_s18  ;;  %p3871_p1 = scmp.lt.s32.totalorder %s4421_s3, %s4421_s3 }
  0x83   : > { %p3854_p2 = pneg %p5190_p12  ;;  %p3872_p3 = scmp.lt.s32.totalorder %s3863_s18, %s3863_s18 }
  0x85   : > { %p3866_p11 = pnand %p3864_p10, %p3854_p2  ;;  %p3873_p6 = por %p3872_p3, %p3871_p1 }
  0x87   : > { %p3867_p13 = pneg %p3866_p11 }
  0x89   : > { %p3874_p0 = pnand %p3873_p6, %p3867_p13 }
  0x8b   : > { %3877 = shalt.err (!%p3874_p0)
}
  0x8c   : > { %s5191_s27 = sld [smem:[#allocation80_spill]]  ;;  %s524_s24 = scalar_lea.vmem [#allocation13], %s4358_s0 }
  0x8d   : > { %s5192_s15 = sld [smem:[#allocation84_spill]]  ;;  %s531_s20 = sshll.u32 %s524_s24, 4  ;;  %s532_s20 = int_to_ptr.vmem [resolvable:$true] %s531_s20 }
  0x92   : > { %3489 = dma.hbm_to_vmem [thread:$0]  (!%p5190_p12), %s5191_s27, 1024, %s4421_s3, [#allocation6], %s5189_s19, %s5189_s19, %s5188_s13  }
  0x93   : > { %s4475_s21 = scalar_lea.hbm %s5192_s15, %s4361_s6  ;;  %s3883_s3 = scalar_lea.hbm %s5192_s15, 2048 }
  0x94   : > { %s3878_s4 = scalar_lea.hbm %s4475_s21, 1024  ;;  %p3884_p12 = scmp.lt.s32.totalorder %s4475_s21, %s5192_s15 }
  0x95   : > { %p3879_p4 = scmp.ne.s32.totalorder %s4475_s21, %s3878_s4  ;;  %p3885_p2 = scmp.lt.s32.totalorder %s3883_s3, %s3878_s4 }
  0x97   : > { %p3881_p8 = pnand %p3879_p4, %p4333_p7  ;;  %p3886_p10 = por %p3885_p2, %p3884_p12 }
  0x99   : > { %p3882_p9 = pneg %p3881_p8 }
  0x9b   : > { %p3887_p11 = pnand %p3886_p10, %p3882_p9 }
  0x9d   : > { %3890 = shalt.err (!%p3887_p11)
}
  0x9e   : > { %s3891_s0 = scalar_lea.vmem %s532_s20, 1024  ;;  %s4126_s6 = smov [#allocation13]  }
  0x9f   : > { %p3892_p13 = scmp.ne.s32.totalorder %s532_s20, %s3891_s0  ;;  %s3896_s17 = sshll.u32 %s4126_s6, 4  ;;  %s3897_s17 = int_to_ptr.vmem [resolvable:$false] %s3896_s17 }
  0xa0   : > { %s3898_s27 = scalar_lea.vmem %s3897_s17, 2048  ;;  %p3899_p6 = scmp.lt.s32.totalorder %s532_s20, %s3897_s17 }
  0xa1   : > { %p3894_p1 = pnand %p3892_p13, %p4333_p7  ;;  %p3900_p0 = scmp.lt.s32.totalorder %s3898_s27, %s3891_s0 }
  0xa3   : > { %p3895_p3 = pneg %p3894_p1  ;;  %p3901_p4 = por %p3900_p0, %p3899_p6 }
  0xa5   : > { %p3902_p8 = pnand %p3901_p4, %p3895_p3 }
  0xa7   : > { %3905 = shalt.err (!%p3902_p8)
}
  0xa8   : > { %3502 = dma.hbm_to_vmem [thread:$0]  (!%p4313_p5), %s4475_s21, 1024, %s532_s20, %s4374_s26, %s5189_s19, %s5189_s19, %s5188_s13  }
  0xa9   : > { %p5193_p7 = scmp.ne.s32.totalorder %s5185_s5, 0 }
  0xab   : > { %561 = sbr.rel (%p5193_p7) target bundleno = 2860 (0xb2c), region = 72 }
  0xb0   : > { %p5194_p9 = scmp.eq.s32.totalorder %s4401_s1, 0 }
  0xb2   : > { %4067 = dma.done.wait (%p5194_p9), [#allocation6], 1024   ;;  %p5195_p12 = pmov %p5194_p9 }
  0xb3   : > { %s567_s22 = sand.u32 1, %s4401_s1   ;;  %s569_s28 = sand.u32 1, %s4108_s30  }
  0xb4   : > { %4069 = vsyncadd (%p5195_p12), [#allocation6], 4294966272  ;;  %s3468_s2 = smul.u32 192, %s569_s28  ;;  %s568_s25 = scalar_lea.sflag [#allocation9], %s567_s22 }
  0xb5   : > { %p5196_p2 = scmp.ne.s32.totalorder %s5184_s29, 0 }
  0xb6   : > { %s4506_s24 = scalar_lea.vmem [#allocation8], %s3468_s2 }
  0xb7   : > { %4071 = dma.done.wait (%p5196_p2), %s568_s25, 4096  }
  0xb8   : > { %4073 = vsyncadd (%p5196_p2), %s568_s25, 4294963200  ;;  %s3104_s26 = sshll.u32 %s569_s28, 6  ;;  %s586_s13 = scalar_lea.sflag [#allocation12], %s567_s22 }
  0xb9   : > { %s4512_s5 = scalar_lea.vmem [#allocation10], %s3104_s26  ;;  %s4514_s19 = scalar_lea.vmem [#allocation11], %s3104_s26 }
  0xba   : > { %4075 = dma.done.wait (%p5196_p2), %s586_s13, 2048  }
  0xbb   : > { %4077 = vsyncadd (%p5196_p2), %s586_s13, 4294965248  ;;  %p676_p5 = scmp.lt.s32.totalorder %s4401_s1, 1  ;;  %v702_v0 = vlaneseq  ;;  %v4127_v2 = vmov 0.0   ;;  %s5197_s29 = sld [smem:[#allocation85_spill]] }
  0xbc   : > { %s5198_s16 = sld [smem:[#allocation86_spill]]  ;;  %s4561_s30 = scalar_lea.vmem [#allocation13], %s3104_s26 }
  0xbd   : > { %s4522_s21 = scalar_select %p676_p5, %s4401_s1, 1  ;;  %v703_v1 = vand.u32 127, %v702_v0 }
  0xbe   : > { %s5199_s9 = sld [smem:[#allocation87_spill]]  ;;  %p5200_p10 = scmp.ne.s32.totalorder %s4401_s1, 0 }
  0xbf   : > { %s3469_s20 = smul.u32 3, %s4522_s21  ;;  %vm704_vm0 = vcmp.lt.s32.totalorder %v703_v1, 32  ;;  %s691_s25 = scalar_lea.vmem %s5125_s14, %s4522_s21 }
  0xc0   : > { %v4538_v3 = vsel %vm704_vm0, 1.0, %v4127_v2  ;;  %710 = sbr.rel (%p5200_p10) target bundleno = 560 (0x230), region = 96 }
  0xc1   : > { %s4543_s22 = scalar_lea.vmem %s5119_s8, %s3469_s20  ;;  %s694_s7 = scalar_lea.vmem %s5197_s29, %s4522_s21 }
  0xc2   : > { %s697_s0 = scalar_lea.vmem %s5198_s16, %s4522_s21 }
  0xc4   : > { %s700_s15 = scalar_lea.vmem %s5199_s9, %s4522_s21 }
  0xc5   : > { %s4128_s20 = smov [#allocation15]  }
  0xc6   : > { %s718_s17 = sshll.u32 %s4128_s20, 4  ;;  %s719_s17 = int_to_ptr.vmem [resolvable:$true] %s718_s17 }
  0xc7   : > { %s3914_s27 = scalar_lea.vmem %s719_s17, 256  ;;  %p3919_p13 = scmp.lt.s32.totalorder %s719_s17, %s719_s17 }
  0xc8   : > { %p3915_p11 = scmp.ne.s32.totalorder %s719_s17, %s3914_s27  ;;  %p3920_p1 = scmp.lt.s32.totalorder %s3914_s27, %s3914_s27 }
  0xca   : > { %p3921_p3 = por %p3920_p1, %p3919_p13 }
  0xcc   : > { %p3922_p6 = pnand %p3921_p3, %p3915_p11 }
  0xce   : > { %3925 = shalt.err (!%p3922_p6)  }
  0xcf   : > { %s5201_s2 = sld [smem:[#allocation74_spill]] }
  0xd5   : > { %721 = dma.hbm_to_vmem [thread:$0]  %s5201_s2, 256, %s719_s17, [#allocation21] }
  0xd6   : > { %4078 = dma.done.wait [#allocation21], 256 }
  0xd7   : > { %4079 = vsyncadd [#allocation21], 4294967040 }
  0xd8   : > { %s4129_s9 = smov [#allocation16]  }
  0xd9   : > { %s733_s26 = sshll.u32 %s4129_s9, 4  ;;  %s734_s26 = int_to_ptr.vmem [resolvable:$true] %s733_s26 }
  0xda   : > { %s3934_s23 = scalar_lea.vmem %s734_s26, 384  ;;  %p3939_p4 = scmp.lt.s32.totalorder %s734_s26, %s734_s26 }
  0xdb   : > { %p3935_p0 = scmp.ne.s32.totalorder %s734_s26, %s3934_s23  ;;  %p3940_p8 = scmp.lt.s32.totalorder %s3934_s23, %s3934_s23 }
  0xdd   : > { %p3941_p7 = por %p3940_p8, %p3939_p4 }
  0xdf   : > { %p3942_p9 = pnand %p3941_p7, %p3935_p0 }
  0xe1   : > { %3945 = shalt.err (!%p3942_p9)  }
  0xe2   : > { %s5202_s4 = sld [smem:[#allocation75_spill]] }
  0xe8   : > { %736 = dma.hbm_to_vmem [thread:$0]  %s5202_s4, 384, %s734_s26, [#allocation26] }
  0xe9   : > { %4080 = dma.done.wait [#allocation26], 384 }
  0xea   : > { %4081 = vsyncadd [#allocation26], 4294966912 }
  0xeb   : > { %s4130_s29 = smov [#allocation17]  }
  0xec   : > { %s748_s3 = sshll.u32 %s4130_s29, 4  ;;  %s749_s3 = int_to_ptr.vmem [resolvable:$true] %s748_s3 }
  0xed   : > { %s3954_s16 = scalar_lea.vmem %s749_s3, 256  ;;  %p3959_p2 = scmp.lt.s32.totalorder %s749_s3, %s749_s3 }
  0xee   : > { %p3955_p12 = scmp.ne.s32.totalorder %s749_s3, %s3954_s16  ;;  %p3960_p5 = scmp.lt.s32.totalorder %s3954_s16, %s3954_s16 }
  0xf0   : > { %p3961_p10 = por %p3960_p5, %p3959_p2 }
  0xf2   : > { %p3962_p11 = pnand %p3961_p10, %p3955_p12 }
  0xf4   : > { %3965 = shalt.err (!%p3962_p11)  }
  0xf5   : > { %s5203_s27 = sld [smem:[#allocation76_spill]] }
  0xfb   : > { %751 = dma.hbm_to_vmem [thread:$0]  %s5203_s27, 256, %s749_s3, [#allocation29] }
  0xfc   : > { %4082 = dma.done.wait [#allocation29], 256 }
  0xfd   : > { %4083 = vsyncadd [#allocation29], 4294967040 }
  0xfe   : > { %s759_s18 = sld [smem:[#allocation0]]   ;;  %s4131_s28 = smov [#allocation18]  }
  0xff   : > { %s767_s2 = sshll.u32 %s4131_s28, 4  ;;  %s4132_s9 = smov 256   ;;  %s768_s2 = int_to_ptr.vmem [resolvable:$true] %s767_s2 }
 0x100   : > { %771 = sst [smem:[#allocation34]] %s4132_s9  ;;  %s4133_s26 = smov 2  }
 0x101   : > { %773 = sst [smem:[#allocation34 + $0x1]] %s4132_s9  ;;  %s4134_s23 = smov 64  }
 0x102   : > { %775 = sst [smem:[#allocation34 + $0x2]] %s4133_s26  ;;  %s4135_s13 = smov 128  }
 0x103   : > { %777 = sst [smem:[#allocation34 + $0x3]] %s4134_s23  ;;  %s4136_s29 = smov 4  }
 0x104   : > { %s3109_s6 = sshll.u32 %s759_s18, 26  ;;  %779 = sst [smem:[#allocation34 + $0x4]] %s4135_s13 }
 0x105   : > { %s3110_s4 = sadd.s32 134217728, %s3109_s6  ;;  %781 = sst [smem:[#allocation34 + $0x5]] %s4133_s26 }
 0x106   : > { %783 = sst [smem:[#allocation34 + $0x6]] %s4135_s13  ;;  %s4137_s3 = smov [#allocation32]  }
 0x107   : > { %785 = sst [smem:[#allocation34 + $0x7]] %s4134_s23  ;;  %s4138_s16 = smov 131072  }
 0x108   : > { %787 = sst [smem:[#allocation34 + $0x8]] %s4136_s29 }
 0x109   : > { %s5204_s27 = sld [smem:[#allocation77_spill]] }
 0x10f   : > { %789 = dma.general %s5204_s27, 512, %s768_s2, %s4137_s3, %s4138_s16, [#allocation34], %s3110_s4, 0  }
 0x110   : > { %4084 = dma.done.wait [#allocation32], 512 }
 0x111   : > { %4085 = vsyncadd [#allocation32], 4294966784 }
 0x112   : > { %s4139_s28 = smov [#allocation19]  }
 0x113   : > { %s801_s9 = sshll.u32 %s4139_s28, 4  ;;  %s802_s9 = int_to_ptr.vmem [resolvable:$true] %s801_s9 }
 0x114   : > { %s3974_s18 = scalar_lea.vmem %s802_s9, 1280  ;;  %p3979_p1 = scmp.lt.s32.totalorder %s802_s9, %s802_s9 }
 0x115   : > { %p3975_p13 = scmp.ne.s32.totalorder %s802_s9, %s3974_s18  ;;  %p3980_p3 = scmp.lt.s32.totalorder %s3974_s18, %s3974_s18 }
 0x117   : > { %p3981_p6 = por %p3980_p3, %p3979_p1 }
 0x119   : > { %p3982_p0 = pnand %p3981_p6, %p3975_p13 }
 0x11b   : > { %3985 = shalt.err (!%p3982_p0)  }
 0x11c   : > { %s5205_s6 = sld [smem:[#allocation78_spill]] }
 0x122   : > { %804 = dma.hbm_to_vmem [thread:$0]  %s5205_s6, 1280, %s802_s9, [#allocation35] }
 0x123   : > { %4086 = dma.done.wait [#allocation35], 1280 }
 0x124   : > { %4087 = vsyncadd [#allocation35], 4294966016 }
 0x125   : > { %s4140_s13 = smov [#allocation20]  }
 0x126   : > { %s816_s2 = sshll.u32 %s4140_s13, 4  ;;  %s817_s2 = int_to_ptr.vmem [resolvable:$true] %s816_s2 }
 0x127   : > { %s3994_s4 = scalar_lea.vmem %s817_s2, 256  ;;  %p3999_p8 = scmp.lt.s32.totalorder %s817_s2, %s817_s2 }
 0x128   : > { %p3995_p4 = scmp.ne.s32.totalorder %s817_s2, %s3994_s4  ;;  %p4000_p7 = scmp.lt.s32.totalorder %s3994_s4, %s3994_s4 }
 0x12a   : > { %p4001_p9 = por %p4000_p7, %p3999_p8 }
 0x12c   : > { %p4002_p12 = pnand %p4001_p9, %p3995_p4 }
 0x12e   : > { %4005 = shalt.err (!%p4002_p12)  }
 0x12f   : > { %s5206_s16 = sld [smem:[#allocation79_spill]] }
 0x135   : > { %819 = dma.hbm_to_vmem [thread:$0]  %s5206_s16, 256, %s817_s2, [#allocation38] }
 0x136   : > { %4088 = dma.done.wait [#allocation38], 256 }
 0x137   : > { %4089 = vsyncadd [#allocation38], 4294967040  ;;  %v895_v4 = vld [vmem:[#allocation19 + $0x38] sm:$0xff]  ;;  %v4141_v5 = vmov 0   ;;  %v827_v6 = vld [vmem:[#allocation16 + $0x10] sm:$0xff]  ;;  %vm828_vm1 = vcmask 392192  }
 0x138   : > { %905 = vmatprep.subr.bf16.mxu1 %v4141_v5  ;;  %v894_v7 = vld [vmem:[#allocation19 + $0x30] sm:$0xff]  ;;  %3276 = vmatprep.subr.bf16.mxu0 %v827_v6  ;;  %v826_v8 = vld [vmem:[#allocation16 + $0x8] sm:$0xff]  ;;  %vm898_vm2 = vcmask 261120   ;;  %v823_v9 = vld [vmem:[#allocation15] sm:$0xff] }
 0x139   : > { %906 = vmatpush1.bf16.msra.mxu1 %v895_v4  ;;  %3277 = vmatpush3.bf16.msra.mxu0 %v827_v6  ;;  %v885_v10 = vld [vmem:[#allocation18 + $0x8] sm:$0xff]  ;;  %v825_v11 = vld [vmem:[#allocation16] sm:$0xff]  ;;  %v892_v13 = vld [vmem:[#allocation19 + $0x20] sm:$0xff] }
 0x13a   : > { %907 = vmatprep.subr.bf16.mxu1 %v4141_v5  ;;  %3278 = vmatprep.subr.bf16.mxu0 %v826_v8  ;;  %v893_v12 = vld [vmem:[#allocation19 + $0x28] sm:$0xff]  ;;  %v824_v14 = vld [vmem:[#allocation15 + $0x8] sm:$0xff]  ;;  %v891_v15 = vld [vmem:[#allocation19 + $0x18] sm:$0xff] }
 0x13b   : > { %3282 = vmatprep.mubr.msk.bf16.mxu0 %vm828_vm1, %v823_v9  ;;  %3113 = vmatprep.mubr.msk.bf16.mxu1 %vm898_vm2, %v885_v10  ;;  %v890_v16 = vld [vmem:[#allocation19 + $0x10] sm:$0xff]  ;;  %v889_v17 = vld [vmem:[#allocation19 + $0x8] sm:$0xff]  ;;  %v888_v18 = vld [vmem:[#allocation19] sm:$0xff] }
 0x13c   : > { %v897_v19 = vld [vmem:[#allocation19 + $0x48] sm:$0xff]  ;;  %v896_v20 = vld [vmem:[#allocation19 + $0x40] sm:$0xff]  ;;  %v887_v22 = vld [vmem:[#allocation18 + $0x18] sm:$0xff] }
 0x13d   : > { %908 = vmatpush1.bf16.msra.mxu1 %v894_v7  ;;  %3279 = vmatpush3.bf16.msra.mxu0 %v826_v8  ;;  %v884_v21 = vld [vmem:[#allocation18] sm:$0xff]  ;;  %v886_v23 = vld [vmem:[#allocation18 + $0x10] sm:$0xff]  ;;  %v955_v28 = vld [vmem:[#allocation17 + $0x8] sm:$0xff] }
 0x13e   : > { %909 = vmatprep.subr.bf16.mxu1 %v4141_v5  ;;  %3280 = vmatprep.subr.bf16.mxu0 %v825_v11  ;;  %v954_v24 = vld [vmem:[#allocation17] sm:$0xff]  ;;  %v965_v38 = vld [vmem:[#allocation20 + $0x8] sm:$0xff] }
 0x13f   : > { %v964_v34 = vld [vmem:[#allocation20] sm:$0xff] }
 0x141   : > { %910 = vmatpush1.bf16.msra.mxu1 %v893_v12  ;;  %3281 = vmatpush3.bf16.msra.mxu0 %v825_v11 }
 0x142   : > { %911 = vmatprep.subr.bf16.mxu1 %v4141_v5 }
 0x144   : > { %3283 = vmatmul.mubr.msk.bf16.vlgmr.msra.gmra.mxu0 %vm828_vm1, %v824_v14 }
 0x145   : > { %912 = vmatpush1.bf16.msra.mxu1 %v892_v13 }
 0x146   : > { %913 = vmatprep.subr.bf16.mxu1 %v4141_v5 }
 0x149   : > { %914 = vmatpush1.bf16.msra.mxu1 %v891_v15 }
 0x14a   : > { %915 = vmatprep.subr.bf16.mxu1 %v4141_v5 }
 0x14d   : > { %916 = vmatpush1.bf16.msra.mxu1 %v890_v16 }
 0x14e   : > { %917 = vmatprep.subr.bf16.mxu1 %v4141_v5 }
 0x151   : > { %918 = vmatpush1.bf16.msra.mxu1 %v889_v17 }
 0x152   : > { %919 = vmatprep.subr.bf16.mxu1 %v4141_v5 }
 0x155   : > { %920 = vmatpush1.bf16.msra.mxu1 %v888_v18 }
 0x156   : > { %933 = vmatprep.subr.bf16.mxu1 %v4141_v5 }
 0x159   : > { %934 = vmatpush2.bf16.msra.mxu1 %v897_v19 }
 0x15a   : > { %935 = vmatprep.subr.bf16.mxu1 %v4141_v5 }
 0x15d   : > { %936 = vmatpush2.bf16.msra.mxu1 %v896_v20 }
 0x160   : > { %938 = vmatmul.mubr.bf16.vlgmr.msra.gmra.mxu1 %v884_v21 }
 0x161   : > { %3114 = vmatprep.mubr.msk.bf16.mxu1 %vm898_vm2, %v887_v22 }
 0x168   : > { %946 = vmatmul.mubr.bf16.gmra.mxu1 %v886_v23 }
 0x204   : > { %v3284_v25 = vpop.f32.mrf.mxu0 }
 0x205   : > { %v958_v26 = vadd.f32 %v3284_v25, %v954_v24 }
 0x206   : > { %v869_v27 = vpop.f32.mrf.mxu0 }
 0x207   : > { %962 = vst [vmem:[#allocation2 + $0x28] sm:$0xff] %v958_v26  ;;  %v956_v29 = vadd.f32 %v954_v24, %v869_v27 }
 0x208   : > { %v3285_v30 = vpop.f32.mrf.mxu0 }
 0x209   : > { %960 = vst [vmem:[#allocation2 + $0x30] sm:$0xff] %v956_v29  ;;  %v959_v31 = vadd.f32 %v3285_v30, %v955_v28 }
 0x20a   : > { %v872_v32 = vpop.f32.mrf.mxu0 }
 0x20b   : > { %963 = vst [vmem:[#allocation2 + $0x20] sm:$0xff] %v959_v31  ;;  %v957_v33 = vadd.f32 %v955_v28, %v872_v32 }
 0x20d   : > { %961 = vst [vmem:[#allocation2] sm:$0xff] %v957_v33 }
 0x220   : > { %v939_v35 = vpop.f32.mrf.mxu1 }
 0x221   : > { %v966_v36 = vadd.f32 %v964_v34, %v939_v35 }
 0x222   : > { %v941_v37 = vpop.f32.mrf.mxu1 }
 0x223   : > { %970 = vst [vmem:[#allocation2 + $0x8] sm:$0xff] %v966_v36 }
 0x224   : > { %v942_v39 = vpop.f32.mrf.mxu1 }
 0x225   : > { %v967_v40 = vadd.f32 %v965_v38, %v942_v39 }
 0x226   : > { %v944_v41 = vpop.f32.mrf.mxu1 }
 0x227   : > { %971 = vst [vmem:[#allocation2 + $0x10] sm:$0xff] %v967_v40 }
 0x228   : > { %v947_v42 = vpop.f32.mrf.mxu1 }
 0x229   : > { %v968_v43 = vadd.f32 %v964_v34, %v947_v42 }
 0x22a   : > { %v949_v44 = vpop.f32.mrf.mxu1 }
 0x22b   : > { %972 = vst [vmem:[#allocation2 + $0x18] sm:$0xff] %v968_v43 }
 0x22c   : > { %v950_v45 = vpop.f32.mrf.mxu1 }
 0x22d   : > { %v969_v46 = vadd.f32 %v965_v38, %v950_v45 }
 0x22e   : > { %v952_v47 = vpop.f32.mrf.mxu1 }
 0x22f   : > { %973 = vst [vmem:[#allocation2 + $0x38] sm:$0xff] %v969_v46 }
 0x230 PF: > { %v3574_v48 = vld [vmem:[%s4506_s24 + $0xac] ss:$12 sps:$4 sm:$0xff]   ;;  %v3576_v49 = vld [vmem:[%s4506_s24 + $0xa8] ss:$12 sps:$4 sm:$0xff]   ;;  %v4142_v50 = vmov 0   ;;  %v975_v58 = vld [vmem:[#allocation2] sm:$0xff]  ;;  %s5209_s17 = scalar_lea.vmem %s5122_s11, %s4522_s21  ;;  %s5210_s9 = scalar_lea.vmem %s5123_s12, %s4522_s21 }
 0x231   : > { %1195 = vmatprep.mubr.bf16.mxu0 %v4142_v50  ;;  %1163 = vmatprep.subr.bf16.mxu0 %v3574_v48  ;;  %v3577_v51 = vld [vmem:[%s4506_s24 + $0x94] ss:$12 sps:$4 sm:$0xff]   ;;  %v3579_v52 = vld [vmem:[%s4506_s24 + $0x90] ss:$12 sps:$4 sm:$0xff]   ;;  %v3582_v54 = vld [vmem:[%s4506_s24 + $0x78] ss:$12 sps:$4 sm:$0xff]  }
 0x232   : > { %1164 = vmatpush1.bf16.msra.mxu0 %v3576_v49  ;;  %v3580_v53 = vld [vmem:[%s4506_s24 + $0x7c] ss:$12 sps:$4 sm:$0xff]   ;;  %v3583_v55 = vld [vmem:[%s4506_s24 + $0x64] ss:$12 sps:$4 sm:$0xff]   ;;  %v3585_v57 = vld [vmem:[%s4506_s24 + $0x60] ss:$12 sps:$4 sm:$0xff]  }
 0x233   : > { %1165 = vmatprep.subr.bf16.mxu0 %v3577_v51  ;;  %v974_v56 = vld [vmem:[#allocation2 + $0x30] sm:$0xff]  ;;  %v3586_v59 = vld [vmem:[%s4506_s24 + $0x4c] ss:$12 sps:$4 sm:$0xff]   ;;  %v3592_v5 = vld [vmem:[%s4506_s24 + $0x1c] ss:$12 sps:$4 sm:$0xff]   ;;  %v4634_v31 = vshrl.u32 %v702_v0, 7 }
 0x234   : > { %v982_v60 = vpack.c.bf16 %v975_v58, %v974_v56  ;;  %v3588_v61 = vld [vmem:[%s4506_s24 + $0x48] ss:$12 sps:$4 sm:$0xff]   ;;  %v3598_v62 = vld [vmem:[%s4506_s24 + $0xb0] ss:$12 sps:$4 sm:$0xff]   ;;  %v3599_v63 = vld [vmem:[%s4506_s24 + $0x98] ss:$12 sps:$4 sm:$0xff]  }
 0x235   : > { %v3589_v1 = vld [vmem:[%s4506_s24 + $0x34] ss:$12 sps:$4 sm:$0xff]   ;;  %3286 = vmatprep.subr.bf16.mxu1 %v3598_v62  ;;  %v3591_v4 = vld [vmem:[%s4506_s24 + $0x30] ss:$12 sps:$4 sm:$0xff]   ;;  %v3594_v7 = vld [vmem:[%s4506_s24 + $0x18] ss:$12 sps:$4 sm:$0xff]  }
 0x236   : > { %1166 = vmatpush1.bf16.msra.mxu0 %v3579_v52  ;;  %3302 = vmatprep.mubr.bf16.mxu1 %v982_v60  ;;  %v3600_v2 = vld [vmem:[%s4506_s24 + $0x80] ss:$12 sps:$4 sm:$0xff]   ;;  %v3601_v6 = vld [vmem:[%s4506_s24 + $0x68] ss:$12 sps:$4 sm:$0xff]   ;;  %v3595_v8 = vld [vmem:[%s4506_s24 + $0x4] ss:$12 sps:$4 sm:$0xff]  }
 0x237   : > { %1167 = vmatprep.subr.bf16.mxu0 %v3580_v53  ;;  %3287 = vmatpush3.bf16.msra.mxu1 %v3598_v62  ;;  %v3602_v9 = vld [vmem:[%s4506_s24 + $0x50] ss:$12 sps:$4 sm:$0xff]   ;;  %v3597_v10 = vld [vmem:[%s4506_s24] ss:$12 sps:$4 sm:$0xff]   ;;  %v3603_v12 = vld [vmem:[%s4506_s24 + $0x38] ss:$12 sps:$4 sm:$0xff]  }
 0x238   : > { %3288 = vmatprep.subr.bf16.mxu1 %v3599_v63  ;;  %v3604_v11 = vld [vmem:[#allocation5 + $0x38] sm:$0xff]   ;;  %v3606_v13 = vld [vmem:[#allocation5 + $0x30] sm:$0xff]   ;;  %v3605_v14 = vld [vmem:[%s4506_s24 + $0x20] ss:$12 sps:$4 sm:$0xff]   ;;  %5207 = vst [vmem:[#allocation73_spill] sm:$0xff] %v4634_v31  ;;  %v5151_v32 = vsub.s32 1, %v4634_v31 }
 0x239   : > { %v4611_v15 = vld [vmem:[#allocation2 + $0x8] sm:$0xff]  ;;  %v4613_v16 = vld [vmem:[#allocation2 + $0x10] sm:$0xff]  ;;  %v4621_v21 = vld [vmem:[#allocation2 + $0x20] sm:$0xff]  ;;  %v5152_v33 = vsub.s32 0, %v4634_v31  ;;  %p3178_p2 = scmp.ne.s32.totalorder %s4401_s1, 1 }
 0x23a   : > { %1168 = vmatpush1.bf16.msra.mxu0 %v3582_v54  ;;  %v3608_v17 = vld [vmem:[#allocation5 + $0x28] sm:$0xff]   ;;  %v983_v19 = vpack.c.bf16 %v4613_v16, %v4611_v15  ;;  %v4627_v23 = vld [vmem:[#allocation2 + $0x18] sm:$0xff]  ;;  %v3609_v26 = vld [vmem:[#allocation5 + $0x20] sm:$0xff]  }
 0x23b   : > { %1169 = vmatprep.subr.bf16.mxu0 %v3583_v55  ;;  %3289 = vmatpush3.bf16.msra.mxu1 %v3599_v63  ;;  %v3607_v18 = vld [vmem:[%s4506_s24 + $0x8] ss:$12 sps:$4 sm:$0xff]   ;;  %v4629_v24 = vld [vmem:[#allocation2 + $0x38] sm:$0xff]  ;;  %v3613_v30 = vld [vmem:[#allocation5] sm:$0xff]  }
 0x23c   : > { %3290 = vmatprep.subr.bf16.mxu1 %v3600_v2  ;;  %v4619_v20 = vld [vmem:[#allocation2 + $0x28] sm:$0xff]  ;;  %v985_v25 = vpack.c.bf16 %v4629_v24, %v4627_v23  ;;  %v3610_v27 = vld [vmem:[#allocation5 + $0x18] sm:$0xff]   ;;  %v3611_v28 = vld [vmem:[#allocation5 + $0x10] sm:$0xff]  }
 0x23d   : > { %v984_v22 = vpack.c.bf16 %v4621_v21, %v4619_v20  ;;  %v3612_v29 = vld [vmem:[#allocation5 + $0x8] sm:$0xff]   ;;  %v4639_v34 = vld [vmem:[%s4543_s22] sm:$0x7]  ;;  %s5208_s22 = scalar_lea.vmem %s5121_s10, %s4522_s21 }
 0x23e   : > { %1170 = vmatpush1.bf16.msra.mxu0 %v3585_v57  ;;  %v1027_v36 = vrot.slane %v4639_v34, %v5151_v32  ;;  %v1023_v38 = vrot.slane %v4639_v34, %v5152_v33 }
 0x23f   : > { %1171 = vmatprep.subr.bf16.mxu0 %v3586_v59  ;;  %3291 = vmatpush3.bf16.msra.mxu1 %v3600_v2 }
 0x240   : > { %3292 = vmatprep.subr.bf16.mxu1 %v3601_v6 }
 0x242   : > { %1172 = vmatpush1.bf16.msra.mxu0 %v3588_v61 }
 0x243   : > { %1173 = vmatprep.subr.bf16.mxu0 %v3589_v1  ;;  %3293 = vmatpush3.bf16.msra.mxu1 %v3601_v6 }
 0x244   : > { %3294 = vmatprep.subr.bf16.mxu1 %v3602_v9 }
 0x246   : > { %1174 = vmatpush1.bf16.msra.mxu0 %v3591_v4 }
 0x247   : > { %1175 = vmatprep.subr.bf16.mxu0 %v3592_v5  ;;  %3295 = vmatpush3.bf16.msra.mxu1 %v3602_v9 }
 0x248   : > { %3296 = vmatprep.subr.bf16.mxu1 %v3603_v12 }
 0x24a   : > { %1176 = vmatpush1.bf16.msra.mxu0 %v3594_v7 }
 0x24b   : > { %1177 = vmatprep.subr.bf16.mxu0 %v3595_v8  ;;  %3297 = vmatpush3.bf16.msra.mxu1 %v3603_v12 }
 0x24c   : > { %3298 = vmatprep.subr.bf16.mxu1 %v3605_v14 }
 0x24e   : > { %1178 = vmatpush1.bf16.msra.mxu0 %v3597_v10 }
 0x24f   : > { %3310 = vmatprep.subr.bf16.mxu0 %v3604_v11  ;;  %3299 = vmatpush3.bf16.msra.mxu1 %v3605_v14 }
 0x250   : > { %3300 = vmatprep.subr.bf16.mxu1 %v3607_v18 }
 0x251   : > { %1196 = vmatmul.mubr.bf16.vlgmr.msra.gmra.mxu0 %v982_v60 }
 0x252   : > { %1205 = vmatprep.mubr.bf16.mxu0 %v4142_v50  ;;  %3311 = vmatpush3.bf16.msra.mxu0 %v3604_v11 }
 0x253   : > { %3312 = vmatprep.subr.bf16.mxu0 %v3606_v13  ;;  %3301 = vmatpush3.bf16.msra.mxu1 %v3607_v18 }
 0x254   : > { %3334 = vmatprep.subr.bf16.mxu1 %v3604_v11 }
 0x256   : > { %3313 = vmatpush3.bf16.msra.mxu0 %v3606_v13  ;;  %3303 = vmatmul.mubr.bf16.vlgmr.msra.gmra.mxu1 %v983_v19 }
 0x257   : > { %3314 = vmatprep.subr.bf16.mxu0 %v3608_v17  ;;  %3335 = vmatpush3.bf16.msra.mxu1 %v3604_v11 }
 0x258   : > { %3306 = vmatprep.mubr.bf16.mxu1 %v984_v22  ;;  %3336 = vmatprep.subr.bf16.mxu1 %v3606_v13 }
 0x259   : > { %1206 = vmatmul.mubr.bf16.gmra.mxu0 %v983_v19 }
 0x25a   : > { %1215 = vmatprep.mubr.bf16.mxu0 %v4142_v50  ;;  %3315 = vmatpush3.bf16.msra.mxu0 %v3608_v17 }
 0x25b   : > { %3337 = vmatpush3.bf16.msra.mxu1 %v3606_v13  ;;  %3316 = vmatprep.subr.bf16.mxu0 %v3609_v26 }
 0x25c   : > { %3338 = vmatprep.subr.bf16.mxu1 %v3608_v17 }
 0x25e   : > { %3307 = vmatmul.mubr.bf16.gmra.mxu1 %v985_v25  ;;  %3317 = vmatpush3.bf16.msra.mxu0 %v3609_v26 }
 0x25f   : > { %3339 = vmatpush3.bf16.msra.mxu1 %v3608_v17  ;;  %3318 = vmatprep.subr.bf16.mxu0 %v3610_v27 }
 0x260   : > { %3340 = vmatprep.subr.bf16.mxu1 %v3609_v26 }
 0x261   : > { %1216 = vmatmul.mubr.bf16.gmra.mxu0 %v984_v22 }
 0x262   : > { %1225 = vmatprep.mubr.bf16.mxu0 %v4142_v50  ;;  %3319 = vmatpush3.bf16.msra.mxu0 %v3610_v27 }
 0x263   : > { %3341 = vmatpush3.bf16.msra.mxu1 %v3609_v26  ;;  %3320 = vmatprep.subr.bf16.mxu0 %v3611_v28 }
 0x264   : > { %3342 = vmatprep.subr.bf16.mxu1 %v3610_v27 }
 0x266   : > { %3321 = vmatpush3.bf16.msra.mxu0 %v3611_v28 }
 0x267   : > { %3343 = vmatpush3.bf16.msra.mxu1 %v3610_v27  ;;  %3322 = vmatprep.subr.bf16.mxu0 %v3612_v29 }
 0x268   : > { %3344 = vmatprep.subr.bf16.mxu1 %v3611_v28 }
 0x269   : > { %1226 = vmatmul.mubr.bf16.gmra.mxu0 %v985_v25 }
 0x26a   : > { %3323 = vmatpush3.bf16.msra.mxu0 %v3612_v29 }
 0x26b   : > { %3345 = vmatpush3.bf16.msra.mxu1 %v3611_v28  ;;  %3324 = vmatprep.subr.bf16.mxu0 %v3613_v30 }
 0x26c   : > { %3346 = vmatprep.subr.bf16.mxu1 %v3612_v29 }
 0x26e   : > { %3325 = vmatpush3.bf16.msra.mxu0 %v3613_v30 }
 0x26f   : > { %3347 = vmatpush3.bf16.msra.mxu1 %v3612_v29 }
 0x270   : > { %3348 = vmatprep.subr.bf16.mxu1 %v3613_v30 }
 0x273   : > { %3349 = vmatpush3.bf16.msra.mxu1 %v3613_v30 }
 0x311   : > { %v1197_v35 = vpop.f32.mrf.mxu0 }
 0x312   : > { %v1198_v41 = vadd.f32 %v1197_v35, %v1023_v38 }
 0x313   : > { %v1199_v37 = vpop.f32.mrf.mxu0 }
 0x314   : > { %v1200_v40 = vadd.f32 %v1199_v37, %v1027_v36 }
 0x315   : > { %v1201_v39 = vpop.f32.mrf.mxu0 }
 0x316   : > { %v1202_v42 = vadd.f32 %v1201_v39, %v1023_v38  ;;  %v1341_v45 = vmul.f32 %v1200_v40, %v1198_v41 }
 0x317   : > { %v1203_v0 = vpop.f32.mrf.mxu0 }
 0x318   : > { %v1204_v43 = vadd.f32 %v1203_v0, %v1027_v36  ;;  %v3615_v0 = vld [vmem:[%s4512_s5 + $0x30] sm:$0xff]  }
 0x319   : > { %v1207_v44 = vpop.f32.mrf.mxu0 }
 0x31a   : > { %v1342_v46 = vmul.f32 %v1204_v43, %v1202_v42  ;;  %v1208_v52 = vadd.f32 %v1207_v44, %v1023_v38  ;;  %v3619_v44 = vld [vmem:[%s4512_s5 + $0x10] sm:$0xff]  }
 0x31b   : > { %v1209_v47 = vpop.f32.mrf.mxu0 }
 0x31c   : > { %v1349_v48 = vpack.c.bf16 %v1342_v46, %v1341_v45  ;;  %v1210_v50 = vadd.f32 %v1209_v47, %v1027_v36  ;;  %v3620_v45 = vld [vmem:[%s4512_s5 + $0x8] sm:$0xff]   ;;  %v3621_v46 = vld [vmem:[%s4512_s5] sm:$0xff]   ;;  %v4655_v47 = vpop.f32.mrf.mxu1 }
 0x31d   : > { %v1211_v49 = vpop.f32.mrf.mxu0 }
 0x31e   : > { %3326 = vmatprep.mubr.bf16.mxu0 %v1349_v48  ;;  %v1212_v53 = vadd.f32 %v1211_v49, %v1023_v38  ;;  %v1343_v56 = vmul.f32 %v1210_v50, %v1208_v52  ;;  %v4657_v48 = vpop.f32.mrf.mxu1 }
 0x31f   : > { %v1213_v51 = vpop.f32.mrf.mxu0 }
 0x320   : > { %v1214_v54 = vadd.f32 %v1213_v51, %v1027_v36  ;;  %v4659_v49 = vpop.f32.mrf.mxu1 }
 0x321   : > { %v1217_v55 = vpop.f32.mrf.mxu0 }
 0x322   : > { %v1344_v57 = vmul.f32 %v1214_v54, %v1212_v53  ;;  %v1218_v60 = vadd.f32 %v1217_v55, %v1023_v38 }
 0x323   : > { %v1219_v58 = vpop.f32.mrf.mxu0 }
 0x324   : > { %v1350_v59 = vpack.c.bf16 %v1344_v57, %v1343_v56  ;;  %v1220_v62 = vadd.f32 %v1219_v58, %v1027_v36  ;;  %v1345_v2 = vmul.f32 %v1218_v60, %v1200_v40 }
 0x325   : > { %v1221_v61 = vpop.f32.mrf.mxu0 }
 0x326   : > { %v1222_v63 = vadd.f32 %v1221_v61, %v1023_v38  ;;  %3327 = vmatmul.mubr.bf16.vlgmr.msra.gmra.mxu0 %v1350_v59  ;;  %v1572_v7 = vmul.f32 %v1220_v62, %v1198_v41  ;;  %v1576_v30 = vmul.f32 %v1220_v62, %v1218_v60  ;;  %v3616_v41 = vld [vmem:[%s4512_s5 + $0x28] sm:$0xff]  }
 0x327   : > { %v1223_v1 = vpop.f32.mrf.mxu0 }
 0x328   : > { %v1346_v4 = vmul.f32 %v1222_v63, %v1204_v43  ;;  %v1224_v5 = vadd.f32 %v1223_v1, %v1027_v36  ;;  %v3618_v43 = vld [vmem:[%s4512_s5 + $0x18] sm:$0xff]  }
 0x329   : > { %v1227_v6 = vpop.f32.mrf.mxu0 }
 0x32a   : > { %v1573_v8 = vmul.f32 %v1224_v5, %v1202_v42  ;;  %v1351_v9 = vpack.c.bf16 %v1346_v4, %v1345_v2  ;;  %v1228_v11 = vadd.f32 %v1227_v6, %v1023_v38  ;;  %v1577_v26 = vmul.f32 %v1224_v5, %v1222_v63  ;;  %v3617_v42 = vld [vmem:[%s4512_s5 + $0x20] sm:$0xff]  }
 0x32b   : > { %v1229_v10 = vpop.f32.mrf.mxu0 }
 0x32c   : > { %3330 = vmatprep.mubr.bf16.mxu0 %v1351_v9  ;;  %v1580_v12 = vpack.c.bf16 %v1573_v8, %v1572_v7  ;;  %v1230_v14 = vadd.f32 %v1229_v10, %v1027_v36  ;;  %v1347_v19 = vmul.f32 %v1228_v11, %v1210_v50  ;;  %v1582_v37 = vpack.c.bf16 %v1577_v26, %v1576_v30  ;;  %v4661_v50 = vpop.f32.mrf.mxu1 }
 0x32d   : > { %v1231_v13 = vpop.f32.mrf.mxu0 }
 0x32e   : > { %v1232_v17 = vadd.f32 %v1231_v13, %v1023_v38  ;;  %3350 = vmatprep.mubr.bf16.mxu1 %v1580_v12  ;;  %v1574_v27 = vmul.f32 %v1230_v14, %v1208_v52  ;;  %v1578_v39 = vmul.f32 %v1230_v14, %v1228_v11 }
 0x32f   : > { %v1233_v18 = vpop.f32.mrf.mxu0 }
 0x330   : > { %v1348_v22 = vmul.f32 %v1232_v17, %v1214_v54  ;;  %v1234_v25 = vadd.f32 %v1233_v18, %v1027_v36  ;;  %v3614_v36 = vld [vmem:[%s4512_s5 + $0x38] sm:$0xff]  }
 0x331   : > { %3358 = vmatprep.subr.bf16.mxu0 %v3614_v36 }
 0x332   : > { %v1575_v28 = vmul.f32 %v1234_v25, %v1212_v53  ;;  %v1352_v29 = vpack.c.bf16 %v1348_v22, %v1347_v19  ;;  %v1579_v38 = vmul.f32 %v1234_v25, %v1232_v17  ;;  %3359 = vmatpush3.bf16.msra.mxu0 %v3614_v36  ;;  %v4663_v53 = vpop.f32.mrf.mxu1 }
 0x333   : > { %3360 = vmatprep.subr.bf16.mxu0 %v3615_v0 }
 0x334   : > { %v1581_v35 = vpack.c.bf16 %v1575_v28, %v1574_v27  ;;  %3331 = vmatmul.mubr.bf16.gmra.mxu0 %v1352_v29  ;;  %v1583_v40 = vpack.c.bf16 %v1579_v38, %v1578_v39  ;;  %v4670_v61 = vpop.f32.mrf.mxu1 }
 0x336   : > { %3351 = vmatmul.mubr.bf16.vlgmr.msra.gmra.mxu1 %v1581_v35  ;;  %3361 = vmatpush3.bf16.msra.mxu0 %v3615_v0  ;;  %v4678_v8 = vpop.f32.mrf.mxu1 }
 0x337   : > { %3354 = vmatprep.mubr.bf16.mxu1 %v1582_v37  ;;  %3362 = vmatprep.subr.bf16.mxu0 %v3616_v41 }
 0x338   : > { %v4684_v18 = vpop.f32.mrf.mxu1 }
 0x33a   : > { %3363 = vmatpush3.bf16.msra.mxu0 %v3616_v41 }
 0x33b   : > { %3364 = vmatprep.subr.bf16.mxu0 %v3617_v42 }
 0x33e   : > { %3355 = vmatmul.mubr.bf16.gmra.mxu1 %v1583_v40  ;;  %3365 = vmatpush3.bf16.msra.mxu0 %v3617_v42 }
 0x33f   : > { %3366 = vmatprep.subr.bf16.mxu0 %v3618_v43 }
 0x342   : > { %3367 = vmatpush3.bf16.msra.mxu0 %v3618_v43 }
 0x343   : > { %3368 = vmatprep.subr.bf16.mxu0 %v3619_v44 }
 0x346   : > { %3369 = vmatpush3.bf16.msra.mxu0 %v3619_v44 }
 0x347   : > { %3370 = vmatprep.subr.bf16.mxu0 %v3620_v45 }
 0x34a   : > { %3371 = vmatpush3.bf16.msra.mxu0 %v3620_v45 }
 0x34b   : > { %3372 = vmatprep.subr.bf16.mxu0 %v3621_v46 }
 0x34e   : > { %3373 = vmatpush3.bf16.msra.mxu0 %v3621_v46 }
 0x3e6   : > { %v3328_v51 = vpop.f32.mrf.mxu0 }
 0x3e7   : > { %v1468_v52 = vmul.f32 0.35355338, %v3328_v51 }
 0x3e8   : > { %v1435_v54 = vpop.f32.mrf.mxu0 }
 0x3e9   : > { %v4665_v55 = vmax.f32 %v1468_v52, -1e+30  ;;  %v1466_v56 = vmul.f32 0.35355338, %v1435_v54 }
 0x3ea   : > { %v3329_v57 = vpop.f32.mrf.mxu0 }
 0x3eb   : > { %v4667_v58 = vmax.f32 %v1466_v56, -1e+30  ;;  %v1469_v59 = vmul.f32 0.35355338, %v3329_v57  ;;  %v1484_v60 = vsub.f32 -1e+30, %v4665_v55  ;;  %v1508_v63 = vsub.f32 %v1468_v52, %v4665_v55 }
 0x3ec   : > { %v1438_v62 = vpop.f32.mrf.mxu0 }
 0x3ed   : > { %v1482_v1 = vsub.f32 -1e+30, %v4667_v58  ;;  %v4674_v2 = vmax.f32 %v1469_v59, -1e+30  ;;  %v1467_v4 = vmul.f32 0.35355338, %v1438_v62  ;;  %v1506_v5 = vsub.f32 %v1466_v56, %v4667_v58 }
 0x3ee   : > { %v1494_v6 = vmul.f32 1.442695, %v1484_v60  ;;  %v1518_v10 = vmul.f32 1.442695, %v1508_v63 }
 0x3ef   : > { %v1485_v7 = vsub.f32 -1e+30, %v4674_v2  ;;  %v4680_v9 = vmax.f32 %v1467_v4, -1e+30  ;;  %v1490_v11 = vmul.f32 1.442695, %v1482_v1  ;;  %v1509_v12 = vsub.f32 %v1469_v59, %v4674_v2 }
 0x3f0   : > { %v1514_v13 = vmul.f32 1.442695, %v1506_v5  ;;  %3638 = vpow2.f32 %v1494_v6 }
 0x3f1   : > { %v1496_v14 = vmul.f32 1.442695, %v1485_v7  ;;  %v1483_v17 = vsub.f32 -1e+30, %v4680_v9  ;;  %3640 = vpow2.f32 %v1518_v10  ;;  %v1520_v25 = vmul.f32 1.442695, %v1509_v12 }
 0x3f2   : > { %3642 = vpow2.f32 %v1490_v11  ;;  %v1507_v26 = vsub.f32 %v1467_v4, %v4680_v9 }
 0x3f3   : > { %3644 = vpow2.f32 %v1514_v13  ;;  %v1492_v37 = vmul.f32 1.442695, %v1483_v17 }
 0x3f4   : > { %v3332_v19 = vpop.f32.mrf.mxu0  ;;  %3646 = vpow2.f32 %v1496_v14  ;;  %v1516_v42 = vmul.f32 1.442695, %v1507_v26 }
 0x3f5   : > { %v1472_v22 = vmul.f32 0.35355338, %v3332_v19  ;;  %3648 = vpow2.f32 %v1520_v25 }
 0x3f6   : > { %v1451_v27 = vpop.f32.mrf.mxu0  ;;  %v3352_v28 = vpop.f32.mrf.mxu1  ;;  %3650 = vpow2.f32 %v1492_v37 }
 0x3f7   : > { %v4687_v29 = vmax.f32 %v1472_v22, -1e+30  ;;  %v1470_v30 = vmul.f32 0.35355338, %v1451_v27  ;;  %v1651_v35 = vmul.f32 0.35355338, %v3352_v28  ;;  %3652 = vpow2.f32 %v1516_v42 }
 0x3f8   : > { %v3333_v38 = vpop.f32.mrf.mxu0  ;;  %v1618_v39 = vpop.f32.mrf.mxu1 }
 0x3f9   : > { %v1488_v40 = vsub.f32 -1e+30, %v4687_v29  ;;  %v1512_v36 = vsub.f32 %v1472_v22, %v4687_v29  ;;  %v4691_v0 = vmax.f32 %v1470_v30, -1e+30  ;;  %v1659_v41 = vmax.f32 %v4665_v55, %v1651_v35 }
 0x3fa   : > { %v1473_v43 = vmul.f32 0.35355338, %v3333_v38  ;;  %v1649_v44 = vmul.f32 0.35355338, %v1618_v39  ;;  %v3353_v45 = vpop.f32.mrf.mxu1  ;;  %v1454_v4 = vpop.f32.mrf.mxu0 }
 0x3fb   : > { %v1502_v46 = vmul.f32 1.442695, %v1488_v40  ;;  %v1526_v51 = vmul.f32 1.442695, %v1512_v36  ;;  %v1486_v52 = vsub.f32 -1e+30, %v4691_v0  ;;  %v1510_v54 = vsub.f32 %v1470_v30, %v4691_v0 }
 0x3fc   : > { %v1667_v56 = vsub.f32 %v4665_v55, %v1659_v41  ;;  %v1691_v57 = vsub.f32 %v1651_v35, %v1659_v41  ;;  %v4697_v59 = vmax.f32 %v1473_v43, -1e+30  ;;  %v1657_v60 = vmax.f32 %v4667_v58, %v1649_v44  ;;  %v1621_v62 = vpop.f32.mrf.mxu1 }
 0x3fd   : > { %v1498_v63 = vmul.f32 1.442695, %v1486_v52  ;;  %v1522_v1 = vmul.f32 1.442695, %v1510_v54  ;;  %3654 = vpow2.f32 %v1502_v46  ;;  %v4703_v12 = vpop.eup %3638  ;;  %v1471_v14 = vmul.f32 0.35355338, %v1454_v4 }
 0x3fe   : > { %v3356_v5 = vpop.f32.mrf.mxu1  ;;  %v1677_v6 = vmul.f32 1.442695, %v1667_v56  ;;  %v1489_v7 = vsub.f32 -1e+30, %v4697_v59  ;;  %v1513_v10 = vsub.f32 %v1473_v43, %v4697_v59  ;;  %3656 = vpow2.f32 %v1526_v51  ;;  %v4705_v19 = vpop.eup %3640 }
 0x3ff   : > { %v1701_v55 = vmul.f32 1.442695, %v1691_v57  ;;  %v1665_v11 = vsub.f32 %v4667_v58, %v1657_v60  ;;  %3658 = vpow2.f32 %v1498_v63  ;;  %v1689_v13 = vsub.f32 %v1649_v44, %v1657_v60  ;;  %v3643_v26 = vpop.eup %3642 }
 0x400   : > { %v1634_v17 = vpop.f32.mrf.mxu1  ;;  %3660 = vpow2.f32 %v1522_v1  ;;  %v1504_v22 = vmul.f32 1.442695, %v1489_v7  ;;  %v1528_v27 = vmul.f32 1.442695, %v1513_v10  ;;  %v4707_v28 = vmax.f32 %v1471_v14, -1e+30  ;;  %v4709_v35 = vpop.eup %3644 }
 0x401   : > { %v1673_v25 = vmul.f32 1.442695, %v1665_v11  ;;  %3662 = vpow2.f32 %v1677_v6  ;;  %v1652_v30 = vmul.f32 0.35355338, %v3353_v45  ;;  %v1650_v58 = vmul.f32 0.35355338, %v1621_v62  ;;  %v4711_v38 = vpop.eup %3646 }
 0x402   : > { %3664 = vpow2.f32 %v1701_v55  ;;  %v1655_v37 = vmul.f32 0.35355338, %v3356_v5  ;;  %v1697_v39 = vmul.f32 1.442695, %v1689_v13  ;;  %v1487_v40 = vsub.f32 -1e+30, %v4707_v28  ;;  %v3357_v36 = vpop.f32.mrf.mxu1  ;;  %v4717_v44 = vpop.eup %3648 }
 0x403   : > { %3666 = vpow2.f32 %v1673_v25  ;;  %v1660_v41 = vmax.f32 %v4674_v2, %v1652_v30  ;;  %v1658_v42 = vmax.f32 %v4680_v9, %v1650_v58  ;;  %v1653_v46 = vmul.f32 0.35355338, %v1634_v17  ;;  %v3651_v1 = vpop.eup %3650 }
 0x404   : > { %3668 = vpow2.f32 %v1504_v22  ;;  %v1663_v43 = vmax.f32 %v4687_v29, %v1655_v37  ;;  %v1500_v45 = vmul.f32 1.442695, %v1487_v40  ;;  %v1511_v57 = vsub.f32 %v1471_v14, %v4707_v28  ;;  %v1637_v63 = vpop.f32.mrf.mxu1  ;;  %v4724_v7 = vpop.eup %3652 }
 0x405   : > { %3670 = vpow2.f32 %v1528_v27  ;;  %v1668_v51 = vsub.f32 %v4674_v2, %v1660_v41  ;;  %v1692_v52 = vsub.f32 %v1652_v30, %v1660_v41  ;;  %v1666_v54 = vsub.f32 %v4680_v9, %v1658_v42 }
 0x406   : > { %v1690_v56 = vsub.f32 %v1650_v58, %v1658_v42  ;;  %3672 = vpow2.f32 %v1697_v39  ;;  %v1671_v60 = vsub.f32 %v4687_v29, %v1663_v43  ;;  %v1661_v62 = vmax.f32 %v4691_v0, %v1653_v46 }
 0x407   : > { %3674 = vpow2.f32 %v1500_v45  ;;  %v1679_v4 = vmul.f32 1.442695, %v1668_v51  ;;  %v1703_v5 = vmul.f32 1.442695, %v1692_v52  ;;  %v1675_v6 = vmul.f32 1.442695, %v1666_v54 }
 0x408   : > { %v1699_v2 = vmul.f32 1.442695, %v1690_v56  ;;  %v1685_v10 = vmul.f32 1.442695, %v1671_v60  ;;  %v1695_v55 = vsub.f32 %v1655_v37, %v1663_v43  ;;  %v1669_v9 = vsub.f32 %v4691_v0, %v1661_v62 }
 0x409   : > { %3676 = vpow2.f32 %v1679_v4  ;;  %v1693_v13 = vsub.f32 %v1653_v46, %v1661_v62  ;;  %v1656_v14 = vmul.f32 0.35355338, %v3357_v36  ;;  %v1654_v29 = vmul.f32 0.35355338, %v1637_v63 }
 0x40a   : > { %v3655_v11 = vpop.eup %3654  ;;  %v1524_v22 = vmul.f32 1.442695, %v1511_v57  ;;  %3678 = vpow2.f32 %v1703_v5  ;;  %v1681_v27 = vmul.f32 1.442695, %v1669_v9  ;;  %v1709_v0 = vmul.f32 1.442695, %v1695_v55 }
 0x40b   : > { %v4727_v17 = vpop.eup %3656  ;;  %3680 = vpow2.f32 %v1675_v6  ;;  %v1664_v30 = vmax.f32 %v4697_v59, %v1656_v14  ;;  %v1662_v58 = vmax.f32 %v4707_v28, %v1654_v29  ;;  %v4733_v37 = vmul.f32 0.0, %v3643_v26 }
 0x40c   : > { %v3659_v25 = vpop.eup %3658  ;;  %3682 = vpow2.f32 %v1699_v2  ;;  %v1705_v36 = vmul.f32 1.442695, %v1693_v13  ;;  %v4741_v45 = vmul.f32 0.0, %v4703_v12  ;;  %v1030_v12 = vsub.s32 2, %v4634_v31 }
 0x40d   : > { %v4731_v39 = vpop.eup %3660  ;;  %3684 = vpow2.f32 %v1685_v10  ;;  %v1672_v41 = vsub.f32 %v4697_v59, %v1664_v30  ;;  %v1696_v42 = vsub.f32 %v1656_v14, %v1664_v30  ;;  %v1670_v46 = vsub.f32 %v4707_v28, %v1662_v58 }
 0x40e   : > { %v4735_v40 = vpop.eup %3662  ;;  %3686 = vpow2.f32 %v1524_v22  ;;  %v1694_v51 = vsub.f32 %v1654_v29, %v1662_v58  ;;  %v1538_v59 = vadd.f32 %v4709_v35, %v4733_v37  ;;  %v4752_v62 = vmul.f32 0.0, %v4711_v38 }
 0x40f   : > { %v4738_v43 = vpop.eup %3664  ;;  %3688 = vpow2.f32 %v1681_v27  ;;  %v1687_v26 = vmul.f32 1.442695, %v1672_v41  ;;  %v1711_v54 = vmul.f32 1.442695, %v1696_v42  ;;  %v1683_v57 = vmul.f32 1.442695, %v1670_v46 }
 0x410   : > { %v4744_v52 = vpop.eup %3666  ;;  %3690 = vpow2.f32 %v1709_v0  ;;  %v1540_v28 = vadd.f32 %v4705_v19, %v4741_v45  ;;  %v1707_v63 = vmul.f32 1.442695, %v1694_v51  ;;  %v1531_v6 = vmul.f32 0.0, %v3651_v1 }
 0x411   : > { %v3669_v56 = vpop.eup %3668  ;;  %3692 = vpow2.f32 %v1705_v36  ;;  %v1713_v4 = vmul.f32 %v4744_v52, %v1538_v59  ;;  %v1541_v38 = vadd.f32 %v4717_v44, %v4752_v62  ;;  %v1031_v9 = vrot.slane %v4639_v34, %v1030_v12 }
 0x412   : > { %v4748_v60 = vpop.eup %3670  ;;  %3694 = vpow2.f32 %v1687_v26  ;;  %v1715_v10 = vmul.f32 %v4735_v40, %v1540_v28  ;;  %v1539_v22 = vadd.f32 %v4724_v7, %v1531_v6  ;;  %v4765_v27 = vmul.f32 0.0, %v3659_v25 }
 0x413   : > { %v4757_v5 = vpop.eup %3672  ;;  %3696 = vpow2.f32 %v1711_v54  ;;  %v4767_v1 = vmul.f32 0.0, %v3655_v11  ;;  %v1279_v34 = vadd.f32 %v4655_v47, %v1031_v9  ;;  %v4773_v46 = vmul.f32 0.0, %v3669_v56 }
 0x414   : > { %v3675_v2 = vpop.eup %3674  ;;  %3698 = vpow2.f32 %v1683_v57  ;;  %v1721_v13 = vadd.f32 %v4757_v5, %v1713_v4  ;;  %v1723_v58 = vadd.f32 %v4738_v43, %v1715_v10  ;;  %v1542_v11 = vadd.f32 %v4731_v39, %v4765_v27 }
 0x415   : > { %3700 = vpow2.f32 %v1707_v63  ;;  %v1544_v25 = vadd.f32 %v4727_v17, %v4767_v1  ;;  %v1271_v57 = vadd.f32 %v4657_v48, %v1031_v9  ;;  %v1282_v59 = vadd.f32 %v4659_v49, %v1031_v9 }
 0x416   : > { %v3677_v55 = vpop.eup %3676  ;;  %3702 = vrcp.f32 %v1721_v13  ;;  %v1535_v47 = vmul.f32 0.0, %v3675_v2  ;;  %v1274_v56 = vadd.f32 %v4661_v50, %v1031_v9  ;;  %v1548_v10 = vmul.f32 %v4705_v19, %v1279_v34 }
 0x417   : > { %v3679_v14 = vpop.eup %3678  ;;  %v1716_v29 = vmul.f32 %v3677_v55, %v1541_v38  ;;  %v1549_v38 = vmul.f32 %v4717_v44, %v1282_v59  ;;  %v1545_v48 = vadd.f32 %v4748_v60, %v4773_v46  ;;  %v1546_v2 = vmul.f32 %v4709_v35, %v1271_v57 }
 0x418   : > { %v3681_v30 = vpop.eup %3680  ;;  %v1547_v13 = vmul.f32 %v4724_v7, %v1274_v56  ;;  %v1287_v19 = vadd.f32 %v4670_v61, %v1031_v9  ;;  %v1298_v44 = vadd.f32 %v4678_v8, %v1031_v9  ;;  %v1556_v35 = vadd.f32 %v1548_v10, %v4741_v45 }
 0x419   : > { %v3683_v0 = vpop.eup %3682  ;;  %v1724_v36 = vadd.f32 %v3679_v14, %v1716_v29  ;;  %v1714_v41 = vmul.f32 %v3681_v30, %v1539_v22  ;;  %v1295_v22 = vadd.f32 %v4663_v53, %v1031_v9  ;;  %v1557_v7 = vadd.f32 %v1549_v38, %v4752_v62 }
 0x41a   : > { %v4770_v42 = vpop.eup %3684  ;;  %v1554_v53 = vadd.f32 %v1546_v2, %v4733_v37  ;;  %v1555_v33 = vadd.f32 %v1547_v13, %v1531_v6  ;;  %v1740_v61 = vmul.f32 %v3679_v14, %v1298_v44  ;;  %v1731_v62 = vmul.f32 %v4735_v40, %v1556_v35 }
 0x41b   : > { %v3687_v51 = vpop.eup %3686  ;;  %3704 = vrcp.f32 %v1724_v36  ;;  %v1722_v26 = vadd.f32 %v3683_v0, %v1714_v41  ;;  %v1719_v63 = vmul.f32 %v4770_v42, %v1544_v25  ;;  %v1732_v31 = vmul.f32 %v3677_v55, %v1557_v7 }
 0x41c   : > { %v4779_v54 = vpop.eup %3688  ;;  %3706 = vrcp.f32 %v1723_v58  ;;  %v1543_v58 = vadd.f32 %v3687_v51, %v1535_v47  ;;  %v1739_v45 = vmul.f32 %v4738_v43, %v1295_v22  ;;  %v1550_v37 = vmul.f32 %v4731_v39, %v1271_v57 }
 0x41d   : > { %v4783_v12 = vpop.eup %3690  ;;  %3708 = vrcp.f32 %v1722_v26  ;;  %v1717_v28 = vmul.f32 %v4779_v54, %v1542_v11  ;;  %v1290_v26 = vadd.f32 %v4684_v18, %v1031_v9  ;;  %v1729_v18 = vmul.f32 %v4744_v52, %v1554_v53 }
 0x41e   : > { %v4788_v4 = vpop.eup %3692  ;;  %v1727_v11 = vadd.f32 %v4783_v12, %v1719_v63  ;;  %v1730_v9 = vmul.f32 %v3681_v30, %v1555_v33  ;;  %v1748_v14 = vadd.f32 %v1740_v61, %v1732_v31  ;;  %v1551_v55 = vmul.f32 %v3687_v51, %v1274_v56 }
 0x41f   : > { %v3695_v49 = vpop.eup %3694  ;;  %v1725_v50 = vadd.f32 %v4788_v4, %v1717_v28  ;;  %v1738_v63 = vmul.f32 %v3683_v0, %v1290_v26  ;;  %v1552_v38 = vmul.f32 %v4727_v17, %v1279_v34  ;;  %v1747_v0 = vadd.f32 %v1739_v45, %v1731_v62 }
 0x420   : > { %v3697_v29 = vpop.eup %3696  ;;  %v1720_v36 = vmul.f32 %v3695_v49, %v1545_v48  ;;  %v1737_v48 = vmul.f32 %v4757_v5, %v1287_v19  ;;  %v1553_v5 = vmul.f32 %v4748_v60, %v1282_v59  ;;  %v1558_v40 = vadd.f32 %v1550_v37, %v4765_v27  ;;  %v3767_v37 = vld [vmem:[#allocation2] sm:$0xff] }
 0x421   : > { %v3699_v41 = vpop.eup %3698  ;;  %3710 = vrcp.f32 %v1725_v50  ;;  %v1746_v33 = vadd.f32 %v1738_v63, %v1730_v9  ;;  %v1559_v57 = vadd.f32 %v1551_v55, %v1535_v47  ;;  %v1560_v60 = vadd.f32 %v1552_v38, %v4767_v1 }
 0x422   : > { %v1718_v25 = vmul.f32 %v3699_v41, %v1543_v58  ;;  %v1728_v28 = vadd.f32 %v3697_v29, %v1720_v36  ;;  %v3701_v32 = vpop.eup %3700  ;;  %v1745_v52 = vadd.f32 %v1737_v48, %v1729_v18  ;;  %v1561_v58 = vadd.f32 %v1553_v5, %v4773_v46  ;;  %v3766_v18 = vld [vmem:[#allocation2 + $0x30] sm:$0xff] }
 0x423   : > { %v3703_v10 = vpop.eup %3702  ;;  %v1733_v51 = vmul.f32 %v4779_v54, %v1558_v40  ;;  %v1744_v34 = vmul.f32 %v3697_v29, %v1298_v44  ;;  %v1734_v56 = vmul.f32 %v3699_v41, %v1559_v57  ;;  %v1741_v36 = vmul.f32 %v4788_v4, %v1287_v19 }
 0x424   : > { %v1726_v8 = vadd.f32 %v3701_v32, %v1718_v25  ;;  %3712 = vrcp.f32 %v1728_v28  ;;  %v1761_v43 = vmul.f32 %v3703_v10, %v1745_v52  ;;  %v1736_v17 = vmul.f32 %v3695_v49, %v1561_v58 }
 0x425   : > { %3714 = vrcp.f32 %v1727_v11  ;;  %v1742_v11 = vmul.f32 %v3701_v32, %v1290_v26  ;;  %v1735_v35 = vmul.f32 %v4770_v42, %v1560_v60  ;;  %v1743_v27 = vmul.f32 %v4783_v12, %v1295_v22  ;;  %v3147_v42 = vld [vmem:[%s5208_s22] ss:$0 sm:$0xff] }
 0x426   : > { %3716 = vrcp.f32 %v1726_v8  ;;  %v1752_v1 = vadd.f32 %v1744_v34, %v1736_v17  ;;  %v1749_v25 = vadd.f32 %v1741_v36, %v1733_v51 }
 0x427   : > { %v1750_v54 = vadd.f32 %v1742_v11, %v1734_v56  ;;  %v1751_v29 = vadd.f32 %v1743_v27, %v1735_v35 }
 0x428   : > { %v3705_v6 = vpop.eup %3704 }
 0x429   : > { %v3707_v2 = vpop.eup %3706  ;;  %v1764_v13 = vmul.f32 %v3705_v6, %v1748_v14 }
 0x42a   : > { %v3709_v30 = vpop.eup %3708  ;;  %v1763_v39 = vmul.f32 %v3707_v2, %v1747_v0 }
 0x42b   : > { %v1762_v50 = vmul.f32 %v3709_v30, %v1746_v33 }
 0x42c   : > { %v1770_v59 = vpack.c.bf16 %v1764_v13, %v1763_v39 }
 0x42d   : > { %v1769_v31 = vpack.c.bf16 %v1762_v50, %v1761_v43 }
 0x42e   : > { %v3711_v46 = vpop.eup %3710 }
 0x42f   : > { %3374 = vmatprep.mubr.bf16.mxu0 %v1769_v31  ;;  %v1765_v41 = vmul.f32 %v3711_v46, %v1749_v25 }
 0x430   : > { %3375 = vmatmul.mubr.bf16.vlgmr.msra.gmra.mxu0 %v1770_v59 }
 0x431   : > { %v3713_v47 = vpop.eup %3712 }
 0x432   : > { %v3715_v7 = vpop.eup %3714  ;;  %v1768_v44 = vmul.f32 %v3713_v47, %v1752_v1 }
 0x433   : > { %v3717_v49 = vpop.eup %3716  ;;  %v1767_v4 = vmul.f32 %v3715_v7, %v1751_v29 }
 0x434   : > { %v1766_v28 = vmul.f32 %v3717_v49, %v1750_v54 }
 0x435   : > { %v1772_v19 = vpack.c.bf16 %v1768_v44, %v1767_v4 }
 0x436   : > { %v1771_v32 = vpack.c.bf16 %v1766_v28, %v1765_v41 }
 0x438   : > { %3378 = vmatprep.mubr.bf16.mxu0 %v1771_v32 }
 0x439   : > { %3379 = vmatmul.mubr.bf16.gmra.mxu0 %v1772_v19 }
 0x4f0   : > { %v3376_v12 = vpop.f32.mrf.mxu0 }
 0x4f1   : > { %v1887_v22 = vadd.f32 %v3376_v12, %v3147_v42 }
 0x4f2   : > { %v1878_v26 = vpop.f32.mrf.mxu0 }
 0x4f3   : > { %v1879_v53 = vadd.f32 %v3147_v42, %v1878_v26  ;;  %v1911_v48 = vadd.f32 %v1887_v22, %v4611_v15  ;;  %v3622_v26 = vld [vmem:[%s4514_s19 + $0x38] sm:$0xff]  }
 0x4f4   : > { %v3377_v61 = vpop.f32.mrf.mxu0  ;;  %3382 = vmatprep.subr.bf16.mxu1 %v3622_v26 }
 0x4f5   : > { %v1890_v8 = vadd.f32 %v3377_v61, %v3147_v42  ;;  %1923 = vadd.xlane.f32.xlu1 %v1911_v48  ;;  %v1909_v9 = vadd.f32 %v3766_v18, %v1879_v53  ;;  %3383 = vmatpush3.bf16.msra.mxu1 %v3622_v26  ;;  %v3624_v61 = vld [vmem:[%s4514_s19 + $0x28] sm:$0xff]   ;;  %v3626_v18 = vld [vmem:[%s4514_s19 + $0x18] sm:$0xff]  }
 0x4f6   : > { %v1881_v63 = vpop.f32.mrf.mxu0 }
 0x4f7   : > { %v1882_v45 = vadd.f32 %v3147_v42, %v1881_v63  ;;  %1919 = vadd.xlane.f32.xlu0 %v1909_v9  ;;  %v1912_v62 = vadd.f32 %v1890_v8, %v4613_v16  ;;  %v3625_v8 = vld [vmem:[%s4514_s19 + $0x20] sm:$0xff]   ;;  %v3628_v63 = vld [vmem:[%s4514_s19 + $0x8] sm:$0xff]  }
 0x4f9   : > { %v3380_v10 = vpop.f32.mrf.mxu0  ;;  %1925 = vadd.xlane.f32.xlu1 %v1912_v62  ;;  %v1910_v5 = vadd.f32 %v3767_v37, %v1882_v45  ;;  %v3629_v45 = vld [vmem:[%s4514_s19] sm:$0xff]  }
 0x4fa   : > { %v1903_v38 = vadd.f32 %v3380_v10, %v3147_v42 }
 0x4fb   : > { %v1894_v6 = vpop.f32.mrf.mxu0  ;;  %1921 = vadd.xlane.f32.xlu0 %v1910_v5 }
 0x4fc   : > { %v1895_v14 = vadd.f32 %v3147_v42, %v1894_v6  ;;  %v1915_v0 = vadd.f32 %v1903_v38, %v4627_v23 }
 0x4fd   : > { %v3381_v55 = vpop.f32.mrf.mxu0 }
 0x4fe   : > { %v1913_v15 = vadd.f32 %v1895_v14, %v4619_v20  ;;  %v1906_v33 = vadd.f32 %v3381_v55, %v3147_v42 }
 0x4ff   : > { %v1897_v2 = vpop.f32.mrf.mxu0 }
 0x500   : > { %v1898_v52 = vadd.f32 %v3147_v42, %v1897_v2  ;;  %1927 = vadd.xlane.f32.xlu0 %v1913_v15  ;;  %v1916_v16 = vadd.f32 %v1906_v33, %v4629_v24 }
 0x502   : > { %v1914_v30 = vadd.f32 %v1898_v52, %v4621_v21 }
 0x504   : > { %1929 = vadd.xlane.f32.xlu1 %v1914_v30  ;;  %1931 = vadd.xlane.f32.xlu0 %v1915_v0 }
 0x508   : > { %1933 = vadd.xlane.f32.xlu1 %v1916_v16 }
 0x57e   : > { %v1924_v13 = vpop.xlane.xlu1 %1923 }
 0x57f   : > { %v1937_v43 = vmul.f32 0.03125, %v1924_v13 }
 0x580   : > { %v1920_v50 = vpop.xlane.xlu0 %1919 }
 0x581   : > { %v1935_v40 = vmul.f32 0.03125, %v1920_v50  ;;  %v1945_v39 = vsub.f32 %v1911_v48, %v1937_v43  ;;  %v3623_v48 = vld [vmem:[%s4514_s19 + $0x30] sm:$0xff]  }
 0x582   : > { %v1926_v58 = vpop.xlane.xlu1 %1925  ;;  %3384 = vmatprep.subr.bf16.mxu1 %v3623_v48 }
 0x583   : > { %v1943_v20 = vsub.f32 %v1909_v9, %v1935_v40  ;;  %v1938_v57 = vmul.f32 0.03125, %v1926_v58  ;;  %v4834_v23 = vmul.f32 %v4538_v3, %v1945_v39  ;;  %3385 = vmatpush3.bf16.msra.mxu1 %v3623_v48  ;;  %v3627_v9 = vld [vmem:[%s4514_s19 + $0x10] sm:$0xff]  }
 0x584   : > { %v1922_v60 = vpop.xlane.xlu0 %1921  ;;  %3386 = vmatprep.subr.bf16.mxu1 %v3624_v61 }
 0x585   : > { %v4831_v31 = vmul.f32 %v4538_v3, %v1943_v20  ;;  %v1936_v21 = vmul.f32 0.03125, %v1922_v60  ;;  %v1946_v51 = vsub.f32 %v1912_v62, %v1938_v57  ;;  %v1961_v35 = vmul.f32 %v4834_v23, %v4834_v23 }
 0x587   : > { %v1944_v17 = vsub.f32 %v1910_v5, %v1936_v21  ;;  %v1959_v24 = vmul.f32 %v4831_v31, %v4831_v31  ;;  %v4842_v36 = vmul.f32 %v4538_v3, %v1946_v51  ;;  %3387 = vmatpush3.bf16.msra.mxu1 %v3624_v61 }
 0x588   : > { %3388 = vmatprep.subr.bf16.mxu1 %v3625_v8 }
 0x589   : > { %v4839_v34 = vmul.f32 %v4538_v3, %v1944_v17  ;;  %v1928_v59 = vpop.xlane.xlu0 %1927  ;;  %1967 = vadd.xlane.f32.xlu0 %v1959_v24  ;;  %v1962_v54 = vmul.f32 %v4842_v36, %v4842_v36  ;;  %v3156_v17 = vld [vmem:[%s5209_s17] ss:$0 sm:$0xff] }
 0x58a   : > { %v1939_v56 = vmul.f32 0.03125, %v1928_v59 }
 0x58b   : > { %v1960_v11 = vmul.f32 %v4839_v34, %v4839_v34  ;;  %3389 = vmatpush3.bf16.msra.mxu1 %v3625_v8 }
 0x58c   : > { %v1947_v27 = vsub.f32 %v1913_v15, %v1939_v56  ;;  %3390 = vmatprep.subr.bf16.mxu1 %v3626_v18 }
 0x58d   : > { %v1930_v46 = vpop.xlane.xlu1 %1929  ;;  %v1932_v47 = vpop.xlane.xlu0 %1931  ;;  %1969 = vadd.xlane.f32.xlu1 %v1960_v11  ;;  %1971 = vadd.xlane.f32.xlu0 %v1961_v35 }
 0x58e   : > { %v4849_v1 = vmul.f32 %v4538_v3, %v1947_v27  ;;  %v1940_v7 = vmul.f32 0.03125, %v1930_v46  ;;  %v1941_v25 = vmul.f32 0.03125, %v1932_v47  ;;  %v3157_v27 = vld [vmem:[%s5210_s9] ss:$0 sm:$0xff] }
 0x58f   : > { %3391 = vmatpush3.bf16.msra.mxu1 %v3626_v18 }
 0x590   : > { %v1948_v49 = vsub.f32 %v1914_v30, %v1940_v7  ;;  %v1949_v29 = vsub.f32 %v1915_v0, %v1941_v25  ;;  %v1963_v44 = vmul.f32 %v4849_v1, %v4849_v1  ;;  %3392 = vmatprep.subr.bf16.mxu1 %v3627_v9 }
 0x591   : > { %v1934_v41 = vpop.xlane.xlu1 %1933  ;;  %1973 = vadd.xlane.f32.xlu1 %v1962_v54 }
 0x592   : > { %v4856_v28 = vmul.f32 %v4538_v3, %v1948_v49  ;;  %v4859_v4 = vmul.f32 %v4538_v3, %v1949_v29  ;;  %v1942_v32 = vmul.f32 0.03125, %v1934_v41  ;;  %1975 = vadd.xlane.f32.xlu0 %v1963_v44 }
 0x593   : > { %3393 = vmatpush3.bf16.msra.mxu1 %v3627_v9 }
 0x594   : > { %v1950_v19 = vsub.f32 %v1916_v16, %v1942_v32  ;;  %v1964_v42 = vmul.f32 %v4856_v28, %v4856_v28  ;;  %v1965_v12 = vmul.f32 %v4859_v4, %v4859_v4  ;;  %3394 = vmatprep.subr.bf16.mxu1 %v3628_v63 }
 0x596   : > { %v4866_v22 = vmul.f32 %v4538_v3, %v1950_v19  ;;  %1977 = vadd.xlane.f32.xlu1 %v1964_v42  ;;  %1979 = vadd.xlane.f32.xlu0 %v1965_v12 }
 0x597   : > { %3395 = vmatpush3.bf16.msra.mxu1 %v3628_v63 }
 0x598   : > { %v1966_v53 = vmul.f32 %v4866_v22, %v4866_v22  ;;  %3396 = vmatprep.subr.bf16.mxu1 %v3629_v45 }
 0x59a   : > { %1981 = vadd.xlane.f32.xlu1 %v1966_v53 }
 0x59b   : > { %3397 = vmatpush3.bf16.msra.mxu1 %v3629_v45 }
 0x612   : > { %v1968_v62 = vpop.xlane.xlu0 %1967 }
 0x613   : > { %v1983_v10 = vmul.f32 0.03125, %v1968_v62  ;;  %v3630_v62 = vld [vmem:[%s4561_s30 + $0x38] sm:$0xff]  }
 0x614   : > { %3406 = vmatprep.subr.bf16.mxu0 %v3630_v62  ;;  %3450 = vmatprep.subr.bf16.mxu1 %v3630_v62 }
 0x615   : > { %v1991_v37 = vadd.f32 1e-05, %v1983_v10  ;;  %3407 = vmatpush3.bf16.msra.mxu0 %v3630_v62  ;;  %v3632_v10 = vld [vmem:[%s4561_s30 + $0x28] sm:$0xff]  }
 0x616   : > { %v1970_v5 = vpop.xlane.xlu1 %1969  ;;  %v1972_v6 = vpop.xlane.xlu0 %1971 }
 0x617   : > { %3718 = vrsqrt.f32 %v1991_v37  ;;  %v1984_v14 = vmul.f32 0.03125, %v1970_v5  ;;  %v1985_v55 = vmul.f32 0.03125, %v1972_v6  ;;  %v3633_v37 = vld [vmem:[%s4561_s30 + $0x20] sm:$0xff]   ;;  %v3634_v5 = vld [vmem:[%s4561_s30 + $0x18] sm:$0xff]   ;;  %v3635_v6 = vld [vmem:[%s4561_s30 + $0x10] sm:$0xff]  }
 0x619   : > { %v1992_v38 = vadd.f32 1e-05, %v1984_v14  ;;  %v1993_v15 = vadd.f32 1e-05, %v1985_v55  ;;  %v3636_v14 = vld [vmem:[%s4561_s30 + $0x8] sm:$0xff]   ;;  %v3637_v55 = vld [vmem:[%s4561_s30] sm:$0xff]  }
 0x61a   : > { %v1974_v2 = vpop.xlane.xlu1 %1973 }
 0x61b   : > { %3720 = vrsqrt.f32 %v1992_v38  ;;  %v1986_v52 = vmul.f32 0.03125, %v1974_v2  ;;  %v1976_v33 = vpop.xlane.xlu0 %1975  ;;  %v3158_v38 = vld [vmem:[%s691_s25] ss:$0 sm:$0xff] }
 0x61c   : > { %3722 = vrsqrt.f32 %v1993_v15  ;;  %v1987_v30 = vmul.f32 0.03125, %v1976_v33 }
 0x61d   : > { %v1994_v0 = vadd.f32 1e-05, %v1986_v52 }
 0x61e   : > { %v1995_v16 = vadd.f32 1e-05, %v1987_v30 }
 0x61f   : > { %3724 = vrsqrt.f32 %v1994_v0  ;;  %v1978_v13 = vpop.xlane.xlu1 %1977  ;;  %v1980_v43 = vpop.xlane.xlu0 %1979 }
 0x620   : > { %3726 = vrsqrt.f32 %v1995_v16  ;;  %v1988_v50 = vmul.f32 0.03125, %v1978_v13  ;;  %v1989_v40 = vmul.f32 0.03125, %v1980_v43 }
 0x622   : > { %v1996_v58 = vadd.f32 1e-05, %v1988_v50  ;;  %v1997_v39 = vadd.f32 1e-05, %v1989_v40 }
 0x623   : > { %v1982_v20 = vpop.xlane.xlu1 %1981 }
 0x624   : > { %v3719_v57 = vpop.eup %3718  ;;  %3728 = vrsqrt.f32 %v1996_v58  ;;  %v1990_v60 = vmul.f32 0.03125, %v1982_v20 }
 0x625   : > { %3730 = vrsqrt.f32 %v1997_v39  ;;  %v2007_v21 = vmul.f32 %v3719_v57, %v4831_v31 }
 0x626   : > { %v1998_v51 = vadd.f32 1e-05, %v1990_v60 }
 0x627   : > { %v2021_v11 = vmul.f32 %v3156_v17, %v2007_v21 }
 0x628   : > { %v3721_v24 = vpop.eup %3720  ;;  %3732 = vrsqrt.f32 %v1998_v51 }
 0x629   : > { %v3723_v59 = vpop.eup %3722  ;;  %v2008_v56 = vmul.f32 %v3721_v24, %v4839_v34  ;;  %v4892_v25 = vadd.f32 %v3157_v27, %v2021_v11 }
 0x62a   : > { %v2009_v35 = vmul.f32 %v3723_v59, %v4834_v23 }
 0x62b   : > { %v2022_v31 = vmul.f32 %v3156_v17, %v2008_v56 }
 0x62c   : > { %v3725_v46 = vpop.eup %3724  ;;  %v2023_v49 = vmul.f32 %v3156_v17, %v2009_v35 }
 0x62d   : > { %v3727_v47 = vpop.eup %3726  ;;  %v2010_v7 = vmul.f32 %v3725_v46, %v4842_v36  ;;  %v4894_v54 = vadd.f32 %v3157_v27, %v2022_v31 }
 0x62e   : > { %v2011_v34 = vmul.f32 %v3727_v47, %v4849_v1  ;;  %v4899_v41 = vadd.f32 %v3157_v27, %v2023_v49 }
 0x62f   : > { %v2043_v23 = vpack.c.bf16 %v4894_v54, %v4892_v25  ;;  %v2024_v29 = vmul.f32 %v3156_v17, %v2010_v7 }
 0x630   : > { %v2025_v42 = vmul.f32 %v3156_v17, %v2011_v34 }
 0x631   : > { %v3729_v44 = vpop.eup %3728  ;;  %3398 = vmatprep.mubr.bf16.mxu1 %v2043_v23  ;;  %v4901_v32 = vadd.f32 %v3157_v27, %v2024_v29 }
 0x632   : > { %v3731_v19 = vpop.eup %3730  ;;  %v2012_v36 = vmul.f32 %v3729_v44, %v4856_v28  ;;  %v4907_v48 = vadd.f32 %v3157_v27, %v2025_v42 }
 0x633   : > { %v2044_v12 = vpack.c.bf16 %v4901_v32, %v4899_v41  ;;  %v2013_v1 = vmul.f32 %v3731_v19, %v4859_v4 }
 0x634   : > { %v2026_v26 = vmul.f32 %v3156_v17, %v2012_v36 }
 0x635   : > { %v3733_v53 = vpop.eup %3732  ;;  %3399 = vmatmul.mubr.bf16.vlgmr.msra.gmra.mxu1 %v2044_v12  ;;  %v2027_v18 = vmul.f32 %v3156_v17, %v2013_v1 }
 0x636   : > { %v4909_v61 = vadd.f32 %v3157_v27, %v2026_v26  ;;  %v2014_v8 = vmul.f32 %v3733_v53, %v4866_v22  ;;  %3458 = vmatpush3.bf16.msra.mxu1 %v3630_v62  ;;  %v3631_v22 = vld [vmem:[%s4561_s30 + $0x30] sm:$0xff]  }
 0x637   : > { %v4914_v63 = vadd.f32 %v3157_v27, %v2027_v18  ;;  %3408 = vmatprep.subr.bf16.mxu0 %v3631_v22  ;;  %3451 = vmatprep.subr.bf16.mxu1 %v3631_v22 }
 0x638   : > { %v2045_v28 = vpack.c.bf16 %v4909_v61, %v4907_v48  ;;  %v2028_v9 = vmul.f32 %v3156_v17, %v2014_v8  ;;  %3409 = vmatpush3.bf16.msra.mxu0 %v3631_v22 }
 0x639   : > { %3410 = vmatprep.subr.bf16.mxu0 %v3632_v10 }
 0x63a   : > { %3402 = vmatprep.mubr.bf16.mxu1 %v2045_v28  ;;  %v4916_v4 = vadd.f32 %v3157_v27, %v2028_v9  ;;  %3459 = vmatpush3.bf16.msra.mxu1 %v3631_v22 }
 0x63b   : > { %3452 = vmatprep.subr.bf16.mxu1 %v3632_v10 }
 0x63c   : > { %v2046_v45 = vpack.c.bf16 %v4916_v4, %v4914_v63  ;;  %3411 = vmatpush3.bf16.msra.mxu0 %v3632_v10 }
 0x63d   : > { %3412 = vmatprep.subr.bf16.mxu0 %v3633_v37 }
 0x63e   : > { %3403 = vmatmul.mubr.bf16.gmra.mxu1 %v2046_v45 }
 0x63f   : > { %3460 = vmatpush3.bf16.msra.mxu1 %v3632_v10 }
 0x640   : > { %3453 = vmatprep.subr.bf16.mxu1 %v3633_v37  ;;  %3413 = vmatpush3.bf16.msra.mxu0 %v3633_v37 }
 0x641   : > { %3414 = vmatprep.subr.bf16.mxu0 %v3634_v5 }
 0x643   : > { %3461 = vmatpush3.bf16.msra.mxu1 %v3633_v37 }
 0x644   : > { %3454 = vmatprep.subr.bf16.mxu1 %v3634_v5  ;;  %3415 = vmatpush3.bf16.msra.mxu0 %v3634_v5 }
 0x645   : > { %3416 = vmatprep.subr.bf16.mxu0 %v3635_v6 }
 0x647   : > { %3462 = vmatpush3.bf16.msra.mxu1 %v3634_v5 }
 0x648   : > { %3455 = vmatprep.subr.bf16.mxu1 %v3635_v6  ;;  %3417 = vmatpush3.bf16.msra.mxu0 %v3635_v6 }
 0x649   : > { %3418 = vmatprep.subr.bf16.mxu0 %v3636_v14 }
 0x64b   : > { %3463 = vmatpush3.bf16.msra.mxu1 %v3635_v6 }
 0x64c   : > { %3456 = vmatprep.subr.bf16.mxu1 %v3636_v14  ;;  %3419 = vmatpush3.bf16.msra.mxu0 %v3636_v14 }
 0x64d   : > { %3420 = vmatprep.subr.bf16.mxu0 %v3637_v55 }
 0x64f   : > { %3464 = vmatpush3.bf16.msra.mxu1 %v3636_v14 }
 0x650   : > { %3457 = vmatprep.subr.bf16.mxu1 %v3637_v55  ;;  %3421 = vmatpush3.bf16.msra.mxu0 %v3637_v55 }
 0x653   : > { %3465 = vmatpush3.bf16.msra.mxu1 %v3637_v55 }
 0x6f5   : > { %v3400_v15 = vpop.f32.mrf.mxu1 }
 0x6f6   : > { %v4933_v2 = vadd.f32 %v3400_v15, %v3158_v38 }
 0x6f7   : > { %v2152_v52 = vpop.f32.mrf.mxu1 }
 0x6f8   : > { %v2193_v33 = vmul.f32 0.044715, %v4933_v2  ;;  %v4936_v30 = vadd.f32 %v3158_v38, %v2152_v52 }
 0x6f9   : > { %v3401_v0 = vpop.f32.mrf.mxu1 }
 0x6fa   : > { %v2201_v16 = vmul.f32 %v2193_v33, %v4933_v2  ;;  %v2191_v13 = vmul.f32 0.044715, %v4936_v30  ;;  %v2164_v43 = vadd.f32 %v3401_v0, %v3158_v38 }
 0x6fb   : > { %v2155_v50 = vpop.f32.mrf.mxu1 }
 0x6fc   : > { %v2209_v40 = vmul.f32 %v2201_v16, %v4933_v2  ;;  %v2199_v58 = vmul.f32 %v2191_v13, %v4936_v30  ;;  %v2194_v39 = vmul.f32 0.044715, %v2164_v43  ;;  %v2156_v20 = vadd.f32 %v3158_v38, %v2155_v50 }
 0x6fe   : > { %v2217_v57 = vadd.f32 %v2209_v40, %v4933_v2  ;;  %v2207_v60 = vmul.f32 %v2199_v58, %v4936_v30  ;;  %v2202_v21 = vmul.f32 %v2194_v39, %v2164_v43  ;;  %v3404_v51 = vpop.f32.mrf.mxu1  ;;  %v2192_v17 = vmul.f32 0.044715, %v2156_v20 }
 0x6ff   : > { %v4944_v24 = vadd.f32 %v3404_v51, %v3158_v38  ;;  %v2186_v40 = vmul.f32 0.5, %v2164_v43  ;;  %v2183_v39 = vmul.f32 0.5, %v4936_v30 }
 0x700   : > { %v2210_v59 = vmul.f32 %v2202_v21, %v2164_v43  ;;  %v2168_v56 = vpop.f32.mrf.mxu1  ;;  %v2215_v11 = vadd.f32 %v2207_v60, %v4936_v30  ;;  %v2200_v35 = vmul.f32 %v2192_v17, %v2156_v20  ;;  %v2225_v46 = vmul.f32 0.7978846, %v2217_v57 }
 0x701   : > { %v2197_v27 = vmul.f32 0.044715, %v4944_v24  ;;  %v4948_v31 = vadd.f32 %v3158_v38, %v2168_v56  ;;  %v2184_v57 = vmul.f32 0.5, %v2156_v20  ;;  %v2185_v21 = vmul.f32 0.5, %v4933_v2 }
 0x702   : > { %v2218_v47 = vadd.f32 %v2210_v59, %v2164_v43  ;;  %v3405_v7 = vpop.f32.mrf.mxu1  ;;  %v2223_v49 = vmul.f32 0.7978846, %v2215_v11  ;;  %v2208_v34 = vmul.f32 %v2200_v35, %v2156_v20 }
 0x703   : > { %v2205_v23 = vmul.f32 %v2197_v27, %v4944_v24  ;;  %v2195_v29 = vmul.f32 0.044715, %v4948_v31  ;;  %v2180_v44 = vadd.f32 %v3405_v7, %v3158_v38 }
 0x704   : > { %v2226_v19 = vmul.f32 0.7978846, %v2218_v47  ;;  %v2171_v36 = vpop.f32.mrf.mxu1  ;;  %3734 = vtanh.f32 %v2223_v49  ;;  %v2216_v53 = vadd.f32 %v2208_v34, %v2156_v20  ;;  %v2187_v20 = vmul.f32 0.5, %v4948_v31 }
 0x705   : > { %v2213_v42 = vmul.f32 %v2205_v23, %v4944_v24  ;;  %v2203_v12 = vmul.f32 %v2195_v29, %v4948_v31  ;;  %v2198_v1 = vmul.f32 0.044715, %v2180_v44  ;;  %v2172_v26 = vadd.f32 %v3158_v38, %v2171_v36 }
 0x706   : > { %3736 = vtanh.f32 %v2226_v19  ;;  %v2224_v45 = vmul.f32 0.7978846, %v2216_v53  ;;  %v2190_v34 = vmul.f32 0.5, %v2180_v44  ;;  %v2189_v29 = vmul.f32 0.5, %v4944_v24 }
 0x707   : > { %3738 = vtanh.f32 %v2225_v46  ;;  %v2221_v8 = vadd.f32 %v2213_v42, %v4944_v24  ;;  %v2211_v18 = vmul.f32 %v2203_v12, %v4948_v31  ;;  %v2206_v28 = vmul.f32 %v2198_v1, %v2180_v44 }
 0x708   : > { %v2196_v9 = vmul.f32 0.044715, %v2172_v26  ;;  %3740 = vtanh.f32 %v2224_v45  ;;  %v2188_v2 = vmul.f32 0.5, %v2172_v26 }
 0x709   : > { %v2229_v62 = vmul.f32 0.7978846, %v2221_v8  ;;  %v2214_v22 = vmul.f32 %v2206_v28, %v2180_v44  ;;  %v2219_v10 = vadd.f32 %v2211_v18, %v4948_v31 }
 0x70a   : > { %v2204_v37 = vmul.f32 %v2196_v9, %v2172_v26 }
 0x70b   : > { %v2222_v5 = vadd.f32 %v2214_v22, %v2180_v44  ;;  %v2227_v6 = vmul.f32 0.7978846, %v2219_v10  ;;  %3742 = vtanh.f32 %v2229_v62  ;;  %v3167_v44 = vld [vmem:[%s694_s7] ss:$0 sm:$0xff] }
 0x70c   : > { %v2212_v14 = vmul.f32 %v2204_v37, %v2172_v26 }
 0x70d   : > { %v2230_v55 = vmul.f32 0.7978846, %v2222_v5  ;;  %3744 = vtanh.f32 %v2227_v6 }
 0x70e   : > { %v2220_v38 = vadd.f32 %v2212_v14, %v2172_v26 }
 0x70f   : > { %3746 = vtanh.f32 %v2230_v55 }
 0x710   : > { %v2228_v15 = vmul.f32 0.7978846, %v2220_v38 }
 0x711   : > { %v3735_v52 = vpop.eup %3734 }
 0x712   : > { %3748 = vtanh.f32 %v2228_v15  ;;  %v2239_v13 = vadd.f32 1.0, %v3735_v52 }
 0x713   : > { %v3737_v33 = vpop.eup %3736 }
 0x714   : > { %v3739_v0 = vpop.eup %3738  ;;  %v2242_v16 = vadd.f32 1.0, %v3737_v33  ;;  %v2247_v59 = vmul.f32 %v2239_v13, %v2183_v39 }
 0x715   : > { %v3741_v50 = vpop.eup %3740  ;;  %v2241_v58 = vadd.f32 1.0, %v3739_v0 }
 0x716   : > { %v2240_v60 = vadd.f32 1.0, %v3741_v50  ;;  %v2250_v51 = vmul.f32 %v2242_v16, %v2186_v40 }
 0x717   : > { %v2249_v35 = vmul.f32 %v2241_v58, %v2185_v21 }
 0x718   : > { %v3743_v17 = vpop.eup %3742  ;;  %v2248_v56 = vmul.f32 %v2240_v60, %v2184_v57 }
 0x719   : > { %v2256_v47 = vpack.c.bf16 %v2250_v51, %v2249_v35  ;;  %v2245_v30 = vadd.f32 1.0, %v3743_v17 }
 0x71a   : > { %v3745_v11 = vpop.eup %3744  ;;  %v2255_v46 = vpack.c.bf16 %v2248_v56, %v2247_v59 }
 0x71b   : > { %v2243_v49 = vadd.f32 1.0, %v3745_v11  ;;  %v2253_v12 = vmul.f32 %v2245_v30, %v2189_v29 }
 0x71c   : > { %v3747_v27 = vpop.eup %3746  ;;  %3422 = vmatprep.mubr.bf16.mxu0 %v2255_v46 }
 0x71d   : > { %v2246_v7 = vadd.f32 1.0, %v3747_v27  ;;  %3423 = vmatmul.mubr.bf16.vlgmr.msra.gmra.mxu0 %v2256_v47  ;;  %v2251_v36 = vmul.f32 %v2243_v49, %v2187_v20 }
 0x71f   : > { %v3749_v43 = vpop.eup %3748  ;;  %v2254_v19 = vmul.f32 %v2246_v7, %v2190_v34 }
 0x720   : > { %v2244_v23 = vadd.f32 1.0, %v3749_v43 }
 0x721   : > { %v2258_v53 = vpack.c.bf16 %v2254_v19, %v2253_v12 }
 0x722   : > { %v2252_v42 = vmul.f32 %v2244_v23, %v2188_v2 }
 0x724   : > { %v2257_v1 = vpack.c.bf16 %v2252_v42, %v2251_v36 }
 0x726   : > { %3426 = vmatprep.mubr.bf16.mxu1 %v2257_v1 }
 0x727   : > { %3427 = vmatmul.mubr.bf16.vlgmr.msra.gmra.mxu1 %v2258_v53 }
 0x7dd   : > { %v3424_v8 = vpop.f32.mrf.mxu0 }
 0x7de   : > { %v2373_v18 = vadd.f32 %v3424_v8, %v3167_v44 }
 0x7df   : > { %v2364_v31 = vpop.f32.mrf.mxu0 }
 0x7e0   : > { %v2365_v26 = vadd.f32 %v3167_v44, %v2364_v31  ;;  %v2397_v28 = vadd.f32 %v2373_v18, %v4899_v41 }
 0x7e1   : > { %v3425_v24 = vpop.f32.mrf.mxu0 }
 0x7e2   : > { %v2376_v9 = vadd.f32 %v3425_v24, %v3167_v44  ;;  %2409 = vadd.xlane.f32.xlu0 %v2397_v28  ;;  %v2395_v10 = vadd.f32 %v2365_v26, %v4892_v25 }
 0x7e3   : > { %v2367_v45 = vpop.f32.mrf.mxu0 }
 0x7e4   : > { %v2368_v62 = vadd.f32 %v3167_v44, %v2367_v45  ;;  %v2398_v22 = vadd.f32 %v2376_v9, %v4901_v32 }
 0x7e6   : > { %2411 = vadd.xlane.f32.xlu1 %v2398_v22  ;;  %2405 = vadd.xlane.f32.xlu0 %v2395_v10  ;;  %v2396_v14 = vadd.f32 %v2368_v62, %v4894_v54 }
 0x7e7   : > { %v3428_v37 = vpop.f32.mrf.mxu1 }
 0x7e8   : > { %v2389_v38 = vadd.f32 %v3428_v37, %v3167_v44 }
 0x7e9   : > { %v2380_v5 = vpop.f32.mrf.mxu1 }
 0x7ea   : > { %v2381_v6 = vadd.f32 %v3167_v44, %v2380_v5  ;;  %2407 = vadd.xlane.f32.xlu1 %v2396_v14  ;;  %v2401_v25 = vadd.f32 %v2389_v38, %v4914_v63 }
 0x7eb   : > { %v3429_v55 = vpop.f32.mrf.mxu1 }
 0x7ec   : > { %v2399_v41 = vadd.f32 %v2381_v6, %v4907_v48  ;;  %v2392_v33 = vadd.f32 %v3429_v55, %v3167_v44 }
 0x7ed   : > { %v2383_v15 = vpop.f32.mrf.mxu1 }
 0x7ee   : > { %v2384_v52 = vadd.f32 %v3167_v44, %v2383_v15  ;;  %2413 = vadd.xlane.f32.xlu0 %v2399_v41  ;;  %v2402_v0 = vadd.f32 %v2392_v33, %v4916_v4 }
 0x7f0   : > { %v2400_v32 = vadd.f32 %v2384_v52, %v4909_v61 }
 0x7f2   : > { %2415 = vadd.xlane.f32.xlu1 %v2400_v32  ;;  %2417 = vadd.xlane.f32.xlu0 %v2401_v25 }
 0x7f6   : > { %2419 = vadd.xlane.f32.xlu1 %v2402_v0 }
 0x86b   : > { %v2410_v16 = vpop.xlane.xlu0 %2409 }
 0x86c   : > { %v2423_v54 = vmul.f32 0.03125, %v2410_v16 }
 0x86e   : > { %v2431_v13 = vsub.f32 %v2397_v28, %v2423_v54 }
 0x86f   : > { %v2412_v50 = vpop.xlane.xlu1 %2411  ;;  %v2406_v40 = vpop.xlane.xlu0 %2405 }
 0x870   : > { %v4975_v48 = vmul.f32 %v4538_v3, %v2431_v13  ;;  %v2424_v58 = vmul.f32 0.03125, %v2412_v50  ;;  %v2421_v39 = vmul.f32 0.03125, %v2406_v40  ;;  %v3177_v13 = vld [vmem:[%s700_s15] ss:$0 sm:$0xff] }
 0x872   : > { %v2432_v57 = vsub.f32 %v2398_v22, %v2424_v58  ;;  %v2429_v60 = vsub.f32 %v2395_v10, %v2421_v39  ;;  %v2447_v61 = vmul.f32 %v4975_v48, %v4975_v48 }
 0x873   : > { %v2408_v63 = vpop.xlane.xlu1 %2407 }
 0x874   : > { %v4980_v21 = vmul.f32 %v4538_v3, %v2432_v57  ;;  %v4983_v4 = vmul.f32 %v4538_v3, %v2429_v60  ;;  %v2422_v51 = vmul.f32 0.03125, %v2408_v63  ;;  %2457 = vadd.xlane.f32.xlu0 %v2447_v61 }
 0x876   : > { %v2430_v59 = vsub.f32 %v2396_v14, %v2422_v51  ;;  %v2448_v11 = vmul.f32 %v4980_v21, %v4980_v21  ;;  %v2445_v35 = vmul.f32 %v4983_v4, %v4983_v4 }
 0x877   : > { %v2414_v17 = vpop.xlane.xlu0 %2413 }
 0x878   : > { %v2425_v56 = vmul.f32 0.03125, %v2414_v17  ;;  %v4990_v27 = vmul.f32 %v4538_v3, %v2430_v59  ;;  %2459 = vadd.xlane.f32.xlu1 %v2448_v11  ;;  %2453 = vadd.xlane.f32.xlu0 %v2445_v35 }
 0x87a   : > { %v2433_v46 = vsub.f32 %v2399_v41, %v2425_v56  ;;  %v2446_v30 = vmul.f32 %v4990_v27, %v4990_v27 }
 0x87b   : > { %v2416_v47 = vpop.xlane.xlu1 %2415  ;;  %v2418_v7 = vpop.xlane.xlu0 %2417 }
 0x87c   : > { %v4993_v49 = vmul.f32 %v4538_v3, %v2433_v46  ;;  %v2426_v43 = vmul.f32 0.03125, %v2416_v47  ;;  %v2427_v34 = vmul.f32 0.03125, %v2418_v7  ;;  %2455 = vadd.xlane.f32.xlu1 %v2446_v30 }
 0x87e   : > { %v2434_v20 = vsub.f32 %v2400_v32, %v2426_v43  ;;  %v2435_v2 = vsub.f32 %v2401_v25, %v2427_v34  ;;  %v2449_v23 = vmul.f32 %v4993_v49, %v4993_v49  ;;  %v3176_v25 = vld [vmem:[%s697_s0] ss:$0 sm:$0xff] }
 0x87f   : > { %v2420_v29 = vpop.xlane.xlu1 %2419 }
 0x880   : > { %v5000_v19 = vmul.f32 %v4538_v3, %v2434_v20  ;;  %v5003_v36 = vmul.f32 %v4538_v3, %v2435_v2  ;;  %v2428_v42 = vmul.f32 0.03125, %v2420_v29  ;;  %2461 = vadd.xlane.f32.xlu0 %v2449_v23 }
 0x882   : > { %v2436_v12 = vsub.f32 %v2402_v0, %v2428_v42  ;;  %v2450_v1 = vmul.f32 %v5000_v19, %v5000_v19  ;;  %v2451_v53 = vmul.f32 %v5003_v36, %v5003_v36 }
 0x884   : > { %v5010_v44 = vmul.f32 %v4538_v3, %v2436_v12  ;;  %2463 = vadd.xlane.f32.xlu1 %v2450_v1  ;;  %2465 = vadd.xlane.f32.xlu0 %v2451_v53 }
 0x886   : > { %v2452_v8 = vmul.f32 %v5010_v44, %v5010_v44 }
 0x888   : > { %2467 = vadd.xlane.f32.xlu1 %v2452_v8 }
 0x8fd   : > { %v2458_v18 = vpop.xlane.xlu0 %2457 }
 0x8fe   : > { %v2471_v31 = vmul.f32 0.03125, %v2458_v18 }
 0x900   : > { %v2479_v26 = vadd.f32 1e-05, %v2471_v31 }
 0x901   : > { %v2460_v28 = vpop.xlane.xlu1 %2459  ;;  %v2454_v24 = vpop.xlane.xlu0 %2453 }
 0x902   : > { %3750 = vrsqrt.f32 %v2479_v26  ;;  %v2472_v9 = vmul.f32 0.03125, %v2460_v28  ;;  %v2469_v45 = vmul.f32 0.03125, %v2454_v24 }
 0x904   : > { %v2480_v62 = vadd.f32 1e-05, %v2472_v9  ;;  %v2477_v22 = vadd.f32 1e-05, %v2469_v45 }
 0x905   : > { %v2456_v10 = vpop.xlane.xlu1 %2455 }
 0x906   : > { %3752 = vrsqrt.f32 %v2480_v62  ;;  %v2470_v3 = vmul.f32 0.03125, %v2456_v10 }
 0x907   : > { %3754 = vrsqrt.f32 %v2477_v22 }
 0x908   : > { %v2478_v5 = vadd.f32 1e-05, %v2470_v3 }
 0x909   : > { %v2462_v37 = vpop.xlane.xlu0 %2461 }
 0x90a   : > { %v2473_v6 = vmul.f32 0.03125, %v2462_v37  ;;  %3756 = vrsqrt.f32 %v2478_v5 }
 0x90c   : > { %v2481_v14 = vadd.f32 1e-05, %v2473_v6 }
 0x90d   : > { %v2464_v55 = vpop.xlane.xlu1 %2463  ;;  %v2466_v38 = vpop.xlane.xlu0 %2465 }
 0x90e   : > { %3758 = vrsqrt.f32 %v2481_v14  ;;  %v2474_v41 = vmul.f32 0.03125, %v2464_v55  ;;  %v2475_v15 = vmul.f32 0.03125, %v2466_v38 }
 0x90f   : > { %v3751_v32 = vpop.eup %3750 }
 0x910   : > { %v2482_v52 = vadd.f32 1e-05, %v2474_v41  ;;  %v2483_v33 = vadd.f32 1e-05, %v2475_v15  ;;  %v2495_v16 = vmul.f32 %v3751_v32, %v4975_v48 }
 0x911   : > { %v2468_v0 = vpop.xlane.xlu1 %2467 }
 0x912   : > { %3760 = vrsqrt.f32 %v2482_v52  ;;  %v2476_v54 = vmul.f32 0.03125, %v2468_v0  ;;  %v2509_v50 = vmul.f32 %v3176_v25, %v2495_v16 }
 0x913   : > { %3762 = vrsqrt.f32 %v2483_v33  ;;  %v3753_v58 = vpop.eup %3752 }
 0x914   : > { %v2484_v40 = vadd.f32 1e-05, %v2476_v54  ;;  %v3755_v39 = vpop.eup %3754  ;;  %v5025_v57 = vadd.f32 %v3177_v13, %v2509_v50  ;;  %v2496_v60 = vmul.f32 %v3753_v58, %v4980_v21 }
 0x915   : > { %v2493_v61 = vmul.f32 %v3755_v39, %v4983_v4 }
 0x916   : > { %3764 = vrsqrt.f32 %v2484_v40  ;;  %2531 = vst [vmem:[#allocation2 + $0x8] sm:$0xff] %v5025_v57  ;;  %v2510_v48 = vmul.f32 %v3176_v25, %v2496_v60 }
 0x917   : > { %v3757_v63 = vpop.eup %3756  ;;  %v2507_v51 = vmul.f32 %v3176_v25, %v2493_v61 }
 0x918   : > { %v5030_v17 = vadd.f32 %v3177_v13, %v2510_v48  ;;  %v2494_v59 = vmul.f32 %v3757_v63, %v4990_v27 }
 0x919   : > { %v5033_v11 = vadd.f32 %v3177_v13, %v2507_v51 }
 0x91a   : > { %2532 = vst [vmem:[#allocation2 + $0x10] sm:$0xff] %v5030_v17  ;;  %v2508_v35 = vmul.f32 %v3176_v25, %v2494_v59 }
 0x91b   : > { %v3759_v56 = vpop.eup %3758  ;;  %2529 = vst [vmem:[#allocation2 + $0x30] sm:$0xff] %v5033_v11 }
 0x91c   : > { %v2497_v21 = vmul.f32 %v3759_v56, %v4993_v49  ;;  %v5038_v4 = vadd.f32 %v3177_v13, %v2508_v35 }
 0x91e   : > { %v2511_v46 = vmul.f32 %v3176_v25, %v2497_v21  ;;  %2530 = vst [vmem:[#allocation2] sm:$0xff] %v5038_v4 }
 0x91f   : > { %v3761_v47 = vpop.eup %3760 }
 0x920   : > { %v3763_v7 = vpop.eup %3762  ;;  %v5041_v43 = vadd.f32 %v3177_v13, %v2511_v46  ;;  %v2498_v27 = vmul.f32 %v3761_v47, %v5000_v19 }
 0x921   : > { %v2499_v34 = vmul.f32 %v3763_v7, %v5003_v36 }
 0x922   : > { %2533 = vst [vmem:[#allocation2 + $0x28] sm:$0xff] %v5041_v43  ;;  %v2512_v30 = vmul.f32 %v3176_v25, %v2498_v27 }
 0x923   : > { %v3765_v20 = vpop.eup %3764  ;;  %v2513_v49 = vmul.f32 %v3176_v25, %v2499_v34 }
 0x924   : > { %v2526_v2 = vadd.f32 %v3177_v13, %v2512_v30  ;;  %v2500_v23 = vmul.f32 %v3765_v20, %v5010_v44 }
 0x925   : > { %v5047_v29 = vadd.f32 %v3177_v13, %v2513_v49 }
 0x926   : > { %2534 = vst [vmem:[#allocation2 + $0x20] sm:$0xff] %v2526_v2  ;;  %v2514_v42 = vmul.f32 %v3176_v25, %v2500_v23  ;;  %2540 = sbr.rel (%p3178_p2) target bundleno = 2839 (0xb17), region = 127 }
 0x927   : > { %2535 = vst [vmem:[#allocation2 + $0x18] sm:$0xff] %v5047_v29 }
 0x928   : > { %v5050_v12 = vadd.f32 %v3177_v13, %v2514_v42 }
 0x92a   : > { %2536 = vst [vmem:[#allocation2 + $0x38] sm:$0xff] %v5050_v12 }
 0x92b   : > { %s4143_s15 = smov [#allocation41]  }
 0x92c   : > { %s2548_s21 = sshll.u32 %s4143_s15, 4  ;;  %s2549_s21 = int_to_ptr.vmem [resolvable:$true] %s2548_s21 }
 0x92d   : > { %s4014_s0 = scalar_lea.vmem %s2549_s21, 1024  ;;  %p4019_p10 = scmp.lt.s32.totalorder %s2549_s21, %s2549_s21 }
 0x92e   : > { %p4015_p5 = scmp.ne.s32.totalorder %s2549_s21, %s4014_s0  ;;  %p4020_p11 = scmp.lt.s32.totalorder %s4014_s0, %s4014_s0 }
 0x930   : > { %p4021_p13 = por %p4020_p11, %p4019_p10 }
 0x932   : > { %p4022_p1 = pnand %p4021_p13, %p4015_p5 }
 0x934   : > { %4025 = shalt.err (!%p4022_p1)  }
 0x935   : > { %s5214_s24 = sld [smem:[#allocation88_spill]] }
 0x93b   : > { %2551 = dma.hbm_to_vmem [thread:$0]  %s5214_s24, 1024, %s2549_s21, [#allocation45] }
 0x93c   : > { %4090 = dma.done.wait [#allocation45], 1024 }
 0x93d   : > { %4091 = vsyncadd [#allocation45], 4294966272 }
 0x93e   : > { %s5215_s19 = sld [smem:[#allocation89_spill]] }
 0x944   : > { %v2574_v19 = vld [vmem:[%s5215_s19] sm:$0x1] }
 0x945   : > { %2575 = vst [vmem:[#allocation42] sm:$0x1] %v2574_v19 }
 0x946   : > { %2601 = vsyncadd [#allocation48], 16 }
 0x947   : > { %4092 = dma.done.wait [#allocation48], 16 }
 0x948   : > { %4093 = vsyncadd [#allocation48], 4294967280 }
 0x949   : > { %s2609_s20 = sld [smem:[#allocation0]]   ;;  %s4144_s17 = smov [#allocation43]  }
 0x94a   : > { %s2617_s27 = sshll.u32 %s4144_s17, 4  ;;  %s4145_s28 = smov 256   ;;  %s2618_s27 = int_to_ptr.vmem [resolvable:$true] %s2617_s27 }
 0x94b   : > { %2621 = sst [smem:[#allocation52]] %s4145_s28  ;;  %s4146_s9 = smov 2  }
 0x94c   : > { %2623 = sst [smem:[#allocation52 + $0x1]] %s4145_s28  ;;  %s4147_s18 = smov 64  }
 0x94d   : > { %2625 = sst [smem:[#allocation52 + $0x2]] %s4146_s9  ;;  %s4148_s30 = smov 128  }
 0x94e   : > { %2627 = sst [smem:[#allocation52 + $0x3]] %s4147_s18  ;;  %s4149_s23 = smov 4  }
 0x94f   : > { %s3179_s26 = sshll.u32 %s2609_s20, 26  ;;  %2629 = sst [smem:[#allocation52 + $0x4]] %s4148_s30 }
 0x950   : > { %s3180_s25 = sadd.s32 134217728, %s3179_s26  ;;  %2631 = sst [smem:[#allocation52 + $0x5]] %s4146_s9 }
 0x951   : > { %2633 = sst [smem:[#allocation52 + $0x6]] %s4148_s30  ;;  %s4150_s7 = smov [#allocation50]  }
 0x952   : > { %2635 = sst [smem:[#allocation52 + $0x7]] %s4147_s18  ;;  %s4151_s6 = smov 131072  }
 0x953   : > { %2637 = sst [smem:[#allocation52 + $0x8]] %s4149_s23 }
 0x954   : > { %s5216_s4 = sld [smem:[#allocation90_spill]] }
 0x95a   : > { %2639 = dma.general %s5216_s4, 2048, %s2618_s27, %s4150_s7, %s4151_s6, [#allocation52], %s3180_s25, 0  }
 0x95b   : > { %4094 = dma.done.wait [#allocation50], 2048 }
 0x95c   : > { %4095 = vsyncadd [#allocation50], 4294965248 }
 0x95d   : > { %s5217_s21 = sld [smem:[#allocation91_spill]] }
 0x963   : > { %v2662_v36 = vld [vmem:[%s5217_s21] sm:$0x3] }
 0x964   : > { %2663 = vst [vmem:[#allocation44] sm:$0x3] %v2662_v36 }
 0x965   : > { %2689 = vsyncadd [#allocation53], 32 }
 0x966   : > { %4096 = dma.done.wait [#allocation53], 32 }
 0x967   : > { %4097 = vsyncadd [#allocation53], 4294967264  ;;  %v2722_v1 = vld [vmem:[#allocation41 + $0x38] sm:$0xff]  ;;  %v2693_v53 = vadd.f32 %v5038_v4, %v5033_v11  ;;  %v2702_v44 = vadd.f32 %v2526_v2, %v5041_v43  ;;  %v4152_v8 = vmov 0.0   ;;  %vm4153_vm3 = vmmov 0   ;;  %v2721_v28 = vld [vmem:[#allocation41 + $0x30] sm:$0xff] }
 0x968   : > { %3430 = vmatprep.subr.bf16.mxu0 %v4152_v8  ;;  %3446 = vmatprep.mubr.msk.bf16.mxu0 %vm4153_vm3, %v4152_v8  ;;  %v2795_v26 = vld [vmem:[#allocation43 + $0x78] sm:$0xff]  ;;  %v2794_v24 = vld [vmem:[#allocation43 + $0x70] sm:$0xff]  ;;  %v2793_v9 = vld [vmem:[#allocation43 + $0x68] sm:$0xff]  ;;  %vm2734_vm4 = vcmask 1041409   ;;  %v4154_v43 = vmov 0  }
 0x969   : > { %3431 = vmatpush3.bf16.msra.mxu0 %v2722_v1  ;;  %v2694_v18 = vadd.f32 %v2693_v53, %v5025_v57  ;;  %v2703_v31 = vadd.f32 %v2702_v44, %v5047_v29  ;;  %2808 = vmatprep.subr.bf16.mxu1 %v2795_v26  ;;  %v2792_v22 = vld [vmem:[#allocation43 + $0x60] sm:$0xff]  ;;  %v2791_v37 = vld [vmem:[#allocation43 + $0x58] sm:$0xff]  ;;  %v2790_v55 = vld [vmem:[#allocation43 + $0x50] sm:$0xff] }
 0x96a   : > { %3432 = vmatprep.subr.bf16.mxu0 %v4152_v8  ;;  %2809 = vmatpush1.bf16.msra.mxu1 %v2794_v24  ;;  %v2720_v5 = vld [vmem:[#allocation41 + $0x28] sm:$0xff]  ;;  %v2719_v52 = vld [vmem:[#allocation41 + $0x20] sm:$0xff]  ;;  %v2718_v13 = vld [vmem:[#allocation41 + $0x18] sm:$0xff] }
 0x96b   : > { %v2695_v45 = vadd.f32 %v2694_v18, %v5030_v17  ;;  %v2704_v62 = vadd.f32 %v2703_v31, %v5050_v12  ;;  %2810 = vmatprep.subr.bf16.mxu1 %v2793_v9  ;;  %v2789_v15 = vld [vmem:[#allocation43 + $0x48] sm:$0xff]  ;;  %v2788_v25 = vld [vmem:[#allocation43 + $0x40] sm:$0xff]  ;;  %v2787_v54 = vld [vmem:[#allocation43 + $0x38] sm:$0xff]  ;;  %2840 = vmatprep.mubr.bf16.mxu1 %v4154_v43 }
 0x96c   : > { %v2786_v58 = vld [vmem:[#allocation43 + $0x30] sm:$0xff]  ;;  %v2785_v60 = vld [vmem:[#allocation43 + $0x28] sm:$0xff]  ;;  %v2784_v51 = vld [vmem:[#allocation43 + $0x20] sm:$0xff] }
 0x96d   : > { %3433 = vmatpush3.bf16.msra.mxu0 %v2721_v28  ;;  %v2696_v10 = vrot.slane %v2695_v45, 4  ;;  %v2705_v3 = vrot.slane %v2704_v62, 4  ;;  %v2717_v61 = vld [vmem:[#allocation41 + $0x10] sm:$0xff]  ;;  %v2783_v56 = vld [vmem:[#allocation43 + $0x18] sm:$0xff]  ;;  %v2716_v11 = vld [vmem:[#allocation41 + $0x8] sm:$0xff] }
 0x96e   : > { %3434 = vmatprep.subr.bf16.mxu0 %v4152_v8  ;;  %2811 = vmatpush1.bf16.msra.mxu1 %v2792_v22  ;;  %v2715_v21 = vld [vmem:[#allocation41] sm:$0xff]  ;;  %v2782_v46 = vld [vmem:[#allocation43 + $0x10] sm:$0xff]  ;;  %v2781_v47 = vld [vmem:[#allocation43 + $0x8] sm:$0xff] }
 0x96f   : > { %v2697_v6 = vadd.f32 %v2696_v10, %v2695_v45  ;;  %v2706_v14 = vadd.f32 %v2705_v3, %v2704_v62  ;;  %2812 = vmatprep.subr.bf16.mxu1 %v2791_v37  ;;  %v2780_v7 = vld [vmem:[#allocation43] sm:$0xff]  ;;  %v3181_v27 = vld [vmem:[#allocation42] ss:$0 sm:$0xff]  ;;  %v5218_v12 = vld [vmem:[#allocation73_spill] sm:$0xff] }
 0x970   : > { %v2796_v42 = vld [vmem:[#allocation44] sm:$0x3]  ;;  %v5219_v19 = vsub.s32 0, %v5218_v12  ;;  %v5220_v1 = vsub.s32 1, %v5218_v12 }
 0x971   : > { %3435 = vmatpush3.bf16.msra.mxu0 %v2720_v5  ;;  %v2698_v38 = vrot.slane %v2697_v6, 2  ;;  %v2707_v41 = vrot.slane %v2706_v14, 2 }
 0x972   : > { %3436 = vmatprep.subr.bf16.mxu0 %v4152_v8  ;;  %2813 = vmatpush1.bf16.msra.mxu1 %v2790_v55  ;;  %v2801_v36 = vrot.slane %v2796_v42, %v5219_v19  ;;  %v2805_v53 = vrot.slane %v2796_v42, %v5220_v1 }
 0x973   : > { %v2699_v33 = vadd.f32 %v2698_v38, %v2697_v6  ;;  %v2708_v32 = vadd.f32 %v2707_v41, %v2706_v14  ;;  %2814 = vmatprep.subr.bf16.mxu1 %v2789_v15 }
 0x975   : > { %3437 = vmatpush3.bf16.msra.mxu0 %v2719_v52  ;;  %v2700_v0 = vrot.slane %v2699_v33, 1  ;;  %v2709_v16 = vrot.slane %v2708_v32, 1 }
 0x976   : > { %3438 = vmatprep.subr.bf16.mxu0 %v4152_v8  ;;  %2815 = vmatpush1.bf16.msra.mxu1 %v2788_v25 }
 0x977   : > { %v2701_v50 = vadd.f32 %v2700_v0, %v2699_v33  ;;  %v2710_v40 = vadd.f32 %v2709_v16, %v2708_v32  ;;  %2816 = vmatprep.subr.bf16.mxu1 %v2787_v54 }
 0x979   : > { %3439 = vmatpush3.bf16.msra.mxu0 %v2718_v13  ;;  %v2711_v39 = vmul.f32 0.03125, %v2701_v50  ;;  %v2712_v57 = vmul.f32 0.03125, %v2710_v40 }
 0x97a   : > { %3440 = vmatprep.subr.bf16.mxu0 %v4152_v8  ;;  %2817 = vmatpush1.bf16.msra.mxu1 %v2786_v58 }
 0x97b   : > { %v2713_v48 = vpack.c.bf16 %v2711_v39, %v2711_v39  ;;  %v2714_v63 = vpack.c.bf16 %v2712_v57, %v2712_v57  ;;  %2818 = vmatprep.subr.bf16.mxu1 %v2785_v60 }
 0x97d   : > { %3441 = vmatpush3.bf16.msra.mxu0 %v2717_v61  ;;  %v2732_v17 = vunpack.c.l.b16 %v2713_v48  ;;  %v2733_v59 = vunpack.c.l.b16 %v2714_v63 }
 0x97e   : > { %3442 = vmatprep.subr.bf16.mxu0 %v4152_v8  ;;  %2819 = vmatpush1.bf16.msra.mxu1 %v2784_v51 }
 0x97f   : > { %2820 = vmatprep.subr.bf16.mxu1 %v2783_v56  ;;  %v2735_v35 = vsel %vm2734_vm4, %v2733_v59, %v2732_v17 }
 0x980   : > { %v2736_v4 = vpack.c.b16 %v2735_v35, %v2735_v35 }
 0x981   : > { %3443 = vmatpush3.bf16.msra.mxu0 %v2716_v11 }
 0x982   : > { %3444 = vmatprep.subr.bf16.mxu0 %v4152_v8  ;;  %2821 = vmatpush1.bf16.msra.mxu1 %v2782_v46 }
 0x983   : > { %2822 = vmatprep.subr.bf16.mxu1 %v2781_v47 }
 0x985   : > { %3445 = vmatpush3.bf16.msra.mxu0 %v2715_v21 }
 0x986   : > { %2823 = vmatpush1.bf16.msra.mxu1 %v2780_v7 }
 0x988   : > { %3447 = vmatmul.mubr.bf16.vlgmr.msra.gmra.mxu0 %v2736_v4 }
 0xa48   : > { %v2772_v34 = vpop.f32.mrf.mxu0 }
 0xa49   : > { %v2773_v30 = vadd.f32 %v3181_v27, %v2772_v34 }
 0xa4a   : > { %v3448_v20 = vpop.f32.mrf.mxu0 }
 0xa4b   : > { %v2778_v49 = vmax.f32 %v2773_v30, 0.0 }
 0xa4c   : > { %v2775_v2 = vpop.f32.mrf.mxu0 }
 0xa4d   : > { %v2779_v23 = vpack.c.bf16 %v2778_v49, %v2778_v49 }
 0xa4e   : > { %v3449_v29 = vpop.f32.mrf.mxu0 }
 0xa4f   : > { %2841 = vmatmul.mubr.bf16.vlgmr.msra.gmra.mxu1 %v2779_v23 }
 0xb0f   : > { %v2842_v44 = vpop.f32.mrf.mxu1 }
 0xb10   : > { %v2843_v18 = vadd.f32 %v2842_v44, %v2801_v36 }
 0xb11   : > { %v2844_v8 = vpop.f32.mrf.mxu1 }
 0xb12   : > { %v2845_v31 = vadd.f32 %v2844_v8, %v2805_v53 }
 0xb13   : > { %v2846_v26 = vpop.f32.mrf.mxu1 }
 0xb14   : > { %v2851_v28 = vcombine.low %v2843_v18, %v2845_v31 }
 0xb15   : > { %v2847_v24 = vpop.f32.mrf.mxu1 }
 0xb16   : > { %3182 = vst.sshfl [vmem:[#allocation14] sm:$0x33 pattern:$0x76325410] %v2851_v28 }
 0xb17 PF: > { %p3506_p3 = scmp.eq.s32.totalorder %s4401_s1, 1  ;;  %s4155_s0 = smov [#allocation14]  }
 0xb18   : > { %s2868_s3 = sshll.u32 %s4155_s0, 4  ;;  %s2869_s3 = int_to_ptr.vmem [resolvable:$true] %s2868_s3 }
 0xb19   : > { %s4026_s16 = scalar_lea.vmem %s2869_s3, 64  ;;  %p4033_p8 = scmp.lt.s32.totalorder %s2869_s3, %s2869_s3 }
 0xb1a   : > { %p4027_p6 = scmp.ne.s32.totalorder %s2869_s3, %s4026_s16  ;;  %p4034_p7 = scmp.lt.s32.totalorder %s4026_s16, %s4026_s16 }
 0xb1c   : > { %p4028_p0 = pnand %p4027_p6, %p3506_p3  ;;  %p4035_p9 = por %p4034_p7, %p4033_p8 }
 0xb1e   : > { %p4029_p4 = pneg %p4028_p0 }
 0xb20   : > { %p4036_p12 = pnand %p4035_p9, %p4029_p4 }
 0xb22   : > { %4039 = shalt.err (!%p4036_p12)
}
 0xb23   : > { %s5221_s22 = sld [smem:[#allocation92_spill]] }
 0xb29   : > { %3483 = dma.vmem_to_hbm [thread:$0]  (%p3506_p3), %s2869_s3, 64, %s5221_s22, [#allocation7]  }
 0xb2a   : > { %4099 = dma.done.wait (%p3506_p3), [#allocation7], 64  }
 0xb2b   : > { %4101 = vsyncadd (%p3506_p3), [#allocation7], 4294967232 }
 0xb2c PF: > { %s5222_s25 = sld [smem:[#allocation71_spill]] }
 0xb2d   : > { %s5223_s4 = sld [smem:[#allocation69_spill]] }
 0xb2e   : > { %s5224_s30 = sld [smem:[#allocation70_spill]] }
 0xb2f   : > { %s5225_s24 = sld [smem:[#allocation72_spill]] }
 0xb32   : > { %p38_p2 = scmp.ge.s32.totalorder %s5222_s25, 4  }
 0xb34   :  { %40 = sbr.rel (!%p38_p2) target bundleno = 27 (0x1b), region = 315 }
 0xb39   :  { %2881 = vsyncpa [#allocation6], 1 }
 0xb3a   :  { %2883 = vsyncpa [#allocation6 + $0x1], 1 }
 0xb3b   :  { %2884 = vsyncpa [#allocation9], 1 }
 0xb3c   :  { %2886 = vsyncpa [#allocation9 + $0x1], 1 }
 0xb3d   :  { %2887 = vsyncpa [#allocation12], 1 }
 0xb3e   :  { %2889 = vsyncpa [#allocation12 + $0x1], 1 }
 0xb3f   :  { %2890 = vsyncpa [#allocation7], 1 }
 0xb40   :  { %2892 = vsyncpa [#allocation7 + $0x1], 1 }

</bundles_post_ra>
